<compile_context>
chip_gen: v7x
topology: tpu7x:2x2x1
jax: 0.10.0
libtpu: 0.0.40
codegen_flags: <defaults>
</compile_context>

<pallas_src>
import math

import jax
import jax.numpy as jnp
import numpy as np
from jax.experimental import pallas as pl
from jax.experimental.pallas import tpu as pltpu

# ---------------- small config consistent with VisionTransformer ----------------
IMG = 16            # img_size
PATCH = 4           # patch_size
IN_CHANS = 3        # in_chans
EMBED = 32          # embed_dim
DEPTH = 2           # depth
HEADS = 4           # num_heads
HEAD_DIM = EMBED // HEADS
MLP_HIDDEN = int(EMBED * 4.0)       # mlp_ratio = 4.0
NUM_CLASSES = 16
NUM_PATCHES = (IMG // PATCH) * (IMG // PATCH)
SEQ = NUM_PATCHES + 1               # +1 cls token
CPP = IN_CHANS * PATCH * PATCH      # per-patch flattened features
LN_EPS = 1e-5                       # torch.nn.LayerNorm default
INIT_SCALE = 0.001
BB_TARGET = 8                       # images per grid step (8*17=136 MXU rows)


def _layernorm(h, w, b):
    mu = jnp.mean(h, axis=-1, keepdims=True)
    var = jnp.mean((h - mu) ** 2, axis=-1, keepdims=True)
    return (h - mu) * jax.lax.rsqrt(var + LN_EPS) * w + b


def _erf_approx(x):
    # Abramowitz & Stegun 7.1.26 polynomial erf, |err| < 1.5e-7 (keeps the
    # exact-GELU semantics of torch.nn.GELU; built only from exp/abs/mul/add).
    # TODO(synk): swap for jax.lax.erf if/when erf_p gets a Mosaic lowering.
    a1, a2, a3, a4, a5 = 0.254829592, -0.284496736, 1.421413741, -1.453152027, 1.061405429
    pp = 0.3275911
    ax = jnp.abs(x)
    t = 1.0 / (1.0 + pp * ax)
    y = 1.0 - (((((a5 * t + a4) * t + a3) * t + a2) * t + a1) * t) * jnp.exp(-ax * ax)
    return jnp.where(x >= 0.0, y, -y)


# ------------------------------ the fused Pallas kernel ------------------------------

def vit_kernel(patches_ref, maskb_ref, pool_ref, convw_ref, tokbase_ref,
               vecp_ref, qkvw_ref, projw_ref, fc1wb_ref, fc2w_ref, headwb_ref,
               o_ref):
    scale = HEAD_DIM ** (-0.5)
    inv_sqrt2 = 1.0 / math.sqrt(2.0)

    vp = vecp_ref[...]            # (6*DEPTH+2, D): per-block LN w/b, proj_b, fc2_b; fc_norm
    mb = maskb_ref[...]           # (T, T) block-diagonal additive mask (0 / -1e9)

    # ---- patch embedding for the whole batch tile: one (T, CPP) @ (CPP, D) matmul.
    # tokbase already folds conv bias + pos embed + cls token; cls row is LAST per
    # image, so the 16 patch rows stay sublane-aligned (no prepend shift).
    x = jnp.dot(patches_ref[0], convw_ref[...],
                preferred_element_type=jnp.float32) + tokbase_ref[...]       # (T, D)

    # ---- transformer blocks (static Python loop over DEPTH) ----
    for d in range(DEPTH):
        r = 6 * d
        # attention branch: LN1 -> fused QKV -> per-head softmax(QK^T)V -> fused proj
        h = _layernorm(x, vp[r + 0:r + 1], vp[r + 1:r + 2])
        qkv = jnp.dot(h, qkvw_ref[d], preferred_element_type=jnp.float32)    # (T, 3D)
        heads = []
        for hh in range(HEADS):
            c = hh * HEAD_DIM
            q = qkv[:, c:c + HEAD_DIM] * scale
            k = qkv[:, EMBED + c:EMBED + c + HEAD_DIM]
            v = qkv[:, 2 * EMBED + c:2 * EMBED + c + HEAD_DIM]
            # contract last dims directly ('nd,md->nm'): no explicit transpose
            s = jax.lax.dot_general(q, k, (((1,), (1,)), ((), ())),
                                    preferred_element_type=jnp.float32)      # (T, T)
            s = s + mb                                 # block-diagonal (per-image) mask
            s = s - jnp.max(s, axis=-1, keepdims=True)
            p = jnp.exp(s)
            p = p * pl.reciprocal(jnp.sum(p, axis=-1, keepdims=True), approx=True)
            heads.append(jnp.dot(p, v, preferred_element_type=jnp.float32))  # (T, hd)
        o = jnp.concatenate(heads, axis=-1)                                  # (T, D)
        x = x + jnp.dot(o, projw_ref[d],
                        preferred_element_type=jnp.float32) + vp[r + 2:r + 3]

        # MLP branch: LN2 -> fc1(+bias folded into fc1wb) -> GELU(exact) -> fc2
        h2 = _layernorm(x, vp[r + 3:r + 4], vp[r + 4:r + 5])
        w1b = fc1wb_ref[d]                                                   # (D+1, H)
        m = jnp.dot(h2, w1b[:EMBED],
                    preferred_element_type=jnp.float32) + w1b[EMBED:EMBED + 1]
        m = 0.5 * m * (1.0 + _erf_approx(m * inv_sqrt2))
        x = x + jnp.dot(m, fc2w_ref[d],
                        preferred_element_type=jnp.float32) + vp[r + 5:r + 6]

    # ---- head: mean-pool via precomputed (BB, T) pooling matmul, fc_norm, classifier
    t = jnp.dot(pool_ref[...], x, preferred_element_type=jnp.float32)        # (BB, D)
    fr = 6 * DEPTH
    t = _layernorm(t, vp[fr:fr + 1], vp[fr + 1:fr + 2])
    hw = headwb_ref[...]                                                     # (D+1, C)
    o_ref[0] = jnp.dot(t, hw[:EMBED],
                       preferred_element_type=jnp.float32) + hw[EMBED:EMBED + 1]


# ------------------------------ host-side wrapper ------------------------------

def vit_forward(x_nchw, params, *, bb_target=BB_TARGET):
    B, C, H, W = x_nchw.shape

    # ---- batch tiling: BB images per grid step ----
    if B > bb_target:
        BB = bb_target
        num_tiles = pl.cdiv(B, BB)          # >= 2: batch tiles shard across TCs
    else:
        BB = B
        num_tiles = 1
    # TODO(synk): on v7x (2 TCs) with 2 <= B <= bb_target one could halve BB and use
    # num_tiles=2 to occupy both cores, trading MXU-row fill for core parallelism.
    B_pad = num_tiles * BB
    T = BB * SEQ

    # ---- patch extraction (pure layout glue) + zero cls row per image so the kernel
    # block is already the (T, CPP) slab it multiplies (no in-kernel reshape/concat).
    patches = x_nchw.reshape(B, C, H // PATCH, PATCH, W // PATCH, PATCH)
    patches = patches.transpose(0, 2, 4, 1, 3, 5).reshape(B, NUM_PATCHES, CPP)
    if B_pad != B:
        patches = jnp.concatenate(
            [patches, jnp.zeros((B_pad - B, NUM_PATCHES, CPP), patches.dtype)], axis=0)
    patches = jnp.concatenate(
        [patches, jnp.zeros((B_pad, 1, CPP), patches.dtype)], axis=1)        # cls slot
    patches = patches.reshape(num_tiles, T, CPP)

    # ---- weight packing: a few lane-dense replicated inputs instead of 21 tiny ones
    conv_w = params["conv_w"].reshape(EMBED, CPP).T                          # (CPP, D)
    conv_b = params["conv_b"].reshape(1, EMBED)
    cls = params["cls_token"].reshape(1, EMBED)
    pos = params["pos_embed"].reshape(SEQ, EMBED)
    # token base rows (cls LAST): patch rows get conv_b + pos[1:], cls row gets cls + pos[0]
    base = jnp.concatenate([pos[1:] + conv_b, pos[0:1] + cls], axis=0)       # (SEQ, D)
    tokbase = jnp.tile(base, (BB, 1))                                        # (T, D)

    rows = []
    for blk in params["blocks"]:
        rows += [blk["ln1_w"], blk["ln1_b"], blk["proj_b"],
                 blk["ln2_w"], blk["ln2_b"], blk["fc2_b"]]
    rows += [params["fc_norm_w"], params["fc_norm_b"]]
    vecp = jnp.concatenate([r.reshape(1, EMBED) for r in rows], axis=0)      # (14, D)

    qkv_w = jnp.stack([blk["qkv_w"] for blk in params["blocks"]])            # (DEPTH, D, 3D)
    proj_w = jnp.stack([blk["proj_w"] for blk in params["blocks"]])          # (DEPTH, D, D)
    fc1_wb = jnp.stack([jnp.concatenate(
        [blk["fc1_w"], blk["fc1_b"].reshape(1, MLP_HIDDEN)], axis=0)
        for blk in params["blocks"]])                                        # (DEPTH, D+1, H)
    fc2_w = jnp.stack([blk["fc2_w"] for blk in params["blocks"]])            # (DEPTH, H, D)
    head_wb = jnp.concatenate(
        [params["head_w"], params["head_b"].reshape(1, NUM_CLASSES)], axis=0)  # (D+1, C)

    # ---- per-tile constants: block-diagonal attention mask and mean-pool matrix
    img_ids = np.repeat(np.arange(BB), SEQ)
    maskb = jnp.asarray(
        np.where(img_ids[:, None] == img_ids[None, :], 0.0, -1e9).astype(np.float32))
    pool_np = np.zeros((BB, T), np.float32)
    for b in range(BB):
        pool_np[b, b * SEQ:b * SEQ + NUM_PATCHES] = 1.0 / NUM_PATCHES
    pool = jnp.asarray(pool_np)

    weights = [maskb, pool, conv_w, tokbase, vecp,
               qkv_w, proj_w, fc1_wb, fc2_w, head_wb]

    def rep(a):
        # replicated full-array block; constant block index across the grid so the
        # pipeline does not re-DMA it between steps.
        return pl.BlockSpec(a.shape, lambda i, _n=a.ndim: (0,) * _n)

    out = pl.pallas_call(
        vit_kernel,
        out_shape=jax.ShapeDtypeStruct((num_tiles, BB, NUM_CLASSES), jnp.float32),
        grid=(num_tiles,),
        in_specs=[pl.BlockSpec((1, T, CPP), lambda i: (i, 0, 0))]
                 + [rep(a) for a in weights],
        out_specs=pl.BlockSpec((1, BB, NUM_CLASSES), lambda i: (i, 0, 0)),
        compiler_params=pltpu.CompilerParams(dimension_semantics=("parallel",)),
    )(patches, *weights)
    return out.reshape(B_pad, NUM_CLASSES)[:B]


# ------------------------------ parameter init ------------------------------

def trunc_normal(key, shape, std=0.02):
    return std * jax.random.truncated_normal(key, -2.0, 2.0, shape, jnp.float32)


def init_params(key):
    ki = iter(jax.random.split(key, 64))
    p = {}
    p["conv_w"] = trunc_normal(next(ki), (EMBED, IN_CHANS, PATCH, PATCH))
    p["conv_b"] = jnp.zeros((EMBED,), jnp.float32)
    p["cls_token"] = trunc_normal(next(ki), (1, 1, EMBED))
    p["pos_embed"] = trunc_normal(next(ki), (1, SEQ, EMBED))
    blocks = []
    for i in range(DEPTH):
        rescale = 1.0 / math.sqrt(2.0 * (i + 1))       # fix_init_weight()
        qkv_w = trunc_normal(next(ki), (3 * EMBED, EMBED))            # torch (out, in)
        proj_w = trunc_normal(next(ki), (EMBED, EMBED)) * rescale
        fc1_w = trunc_normal(next(ki), (MLP_HIDDEN, EMBED))
        fc2_w = trunc_normal(next(ki), (EMBED, MLP_HIDDEN)) * rescale
        blocks.append(dict(
            ln1_w=jnp.ones((1, EMBED), jnp.float32),
            ln1_b=jnp.zeros((1, EMBED), jnp.float32),
            qkv_w=qkv_w.T,                   # (D, 3D): y = x @ W.T, qkv_bias=False
            proj_w=proj_w.T,                 # (D, D)  (input-major)
            proj_b=jnp.zeros((1, EMBED), jnp.float32),
            ln2_w=jnp.ones((1, EMBED), jnp.float32),
            ln2_b=jnp.zeros((1, EMBED), jnp.float32),
            fc1_w=fc1_w.T,                   # (D, H)
            fc1_b=jnp.zeros((1, MLP_HIDDEN), jnp.float32),
            fc2_w=fc2_w.T,                   # (H, D)
            fc2_b=jnp.zeros((1, EMBED), jnp.float32),
        ))
    p["blocks"] = blocks
    p["fc_norm_w"] = jnp.ones((1, EMBED), jnp.float32)
    p["fc_norm_b"] = jnp.zeros((1, EMBED), jnp.float32)
    p["head_w"] = (trunc_normal(next(ki), (NUM_CLASSES, EMBED)) * INIT_SCALE).T   # (D, C)
    p["head_b"] = jnp.zeros((1, NUM_CLASSES), jnp.float32)
    return p


# ------------------------------ pure-JAX reference ------------------------------

def vit_reference(x_nchw, params):
    B, C, H, W = x_nchw.shape
    patches = x_nchw.reshape(B, C, H // PATCH, PATCH, W // PATCH, PATCH)
    patches = patches.transpose(0, 2, 4, 1, 3, 5).reshape(B, NUM_PATCHES, CPP)
    x = patches @ params["conv_w"].reshape(EMBED, -1).T + params["conv_b"]
    cls = jnp.broadcast_to(params["cls_token"], (B, 1, EMBED))
    x = jnp.concatenate([cls, x], axis=1) + params["pos_embed"]
    for p in params["blocks"]:
        h = _layernorm(x, p["ln1_w"], p["ln1_b"])
        qkv = (h @ p["qkv_w"]).reshape(B, SEQ, 3, HEADS, HEAD_DIM).transpose(2, 0, 3, 1, 4)
        q, k, v = qkv[0] * HEAD_DIM ** (-0.5), qkv[1], qkv[2]
        attn = jax.nn.softmax(jnp.einsum("bhqd,bhkd->bhqk", q, k), axis=-1)
        o = jnp.einsum("bhqk,bhkd->bhqd", attn, v).transpose(0, 2, 1, 3).reshape(B, SEQ, EMBED)
        x = x + (o @ p["proj_w"] + p["proj_b"])
        h2 = _layernorm(x, p["ln2_w"], p["ln2_b"])
        m = h2 @ p["fc1_w"] + p["fc1_b"]
        m = 0.5 * m * (1.0 + jax.scipy.special.erf(m / math.sqrt(2.0)))   # exact GELU
        x = x + (m @ p["fc2_w"] + p["fc2_b"])
    t = jnp.mean(x[:, 1:, :], axis=1)
    t = _layernorm(t, params["fc_norm_w"], params["fc_norm_b"])
    return t @ params["head_w"] + params["head_b"]


if __name__ == "__main__":
    key = jax.random.PRNGKey(0)
    pkey, xkey = jax.random.split(key)
    params = init_params(pkey)

    # batch=2: single grid step, both images in one token slab (block-diag mask active)
    x = jax.random.normal(xkey, (2, IN_CHANS, IMG, IMG), jnp.float32)
    fwd = jax.jit(vit_forward)
    out = jax.block_until_ready(fwd(x, params))
    assert out.shape == (2, NUM_CLASSES) and out.dtype == jnp.float32
    ref = jax.block_until_ready(vit_reference(x, params))
    np.testing.assert_allclose(np.asarray(out), np.asarray(ref), rtol=5e-2, atol=1e-6)

    # batch=10: exercises BB=8 tiles, 2 parallel grid steps, and batch padding
    x2 = jax.random.normal(jax.random.PRNGKey(1), (10, IN_CHANS, IMG, IMG), jnp.float32)
    out2 = jax.block_until_ready(jax.jit(vit_forward)(x2, params))
    ref2 = jax.block_until_ready(vit_reference(x2, params))
    np.testing.assert_allclose(np.asarray(out2), np.asarray(ref2), rtol=5e-2, atol=1e-6)

    print("KERNEL_OK")
</pallas_src>

<mosaic_0001>
module attributes {stable_mosaic.version = 11 : i64} {
  func.func @vit_kernel(%arg0: i32, %arg1: memref<1x34x48xf32, #tpu.memory_space<vmem>>, %arg2: memref<34x34xf32, #tpu.memory_space<vmem>>, %arg3: memref<2x34xf32, #tpu.memory_space<vmem>>, %arg4: memref<48x32xf32, #tpu.memory_space<vmem>>, %arg5: memref<34x32xf32, #tpu.memory_space<vmem>>, %arg6: memref<14x32xf32, #tpu.memory_space<vmem>>, %arg7: memref<2x32x96xf32, #tpu.memory_space<vmem>>, %arg8: memref<2x32x32xf32, #tpu.memory_space<vmem>>, %arg9: memref<2x33x128xf32, #tpu.memory_space<vmem>>, %arg10: memref<2x128x32xf32, #tpu.memory_space<vmem>>, %arg11: memref<33x16xf32, #tpu.memory_space<vmem>>, %arg12: memref<1x2x16xf32, #tpu.memory_space<vmem>>) attributes {dimension_semantics = [#tpu.dimension_semantics<parallel>], iteration_bounds = array<i64: 1>, scalar_prefetch = 0 : i64, scratch_operands = 0 : i64, tpu.core_type = #tpu.core_type<tc>, window_params = [{transform_indices = @transform_0, window_bounds = array<i64: 1, 34, 48>}, {pipeline_mode = #tpu.pipeline_mode<synchronous>, transform_indices = @transform_1, window_bounds = array<i64: 34, 34>}, {pipeline_mode = #tpu.pipeline_mode<synchronous>, transform_indices = @transform_2, window_bounds = array<i64: 2, 34>}, {pipeline_mode = #tpu.pipeline_mode<synchronous>, transform_indices = @transform_3, window_bounds = array<i64: 48, 32>}, {pipeline_mode = #tpu.pipeline_mode<synchronous>, transform_indices = @transform_4, window_bounds = array<i64: 34, 32>}, {pipeline_mode = #tpu.pipeline_mode<synchronous>, transform_indices = @transform_5, window_bounds = array<i64: 14, 32>}, {pipeline_mode = #tpu.pipeline_mode<synchronous>, transform_indices = @transform_6, window_bounds = array<i64: 2, 32, 96>}, {pipeline_mode = #tpu.pipeline_mode<synchronous>, transform_indices = @transform_7, window_bounds = array<i64: 2, 32, 32>}, {pipeline_mode = #tpu.pipeline_mode<synchronous>, transform_indices = @transform_8, window_bounds = array<i64: 2, 33, 128>}, {pipeline_mode = #tpu.pipeline_mode<synchronous>, transform_indices = @transform_9, window_bounds = array<i64: 2, 128, 32>}, {pipeline_mode = #tpu.pipeline_mode<synchronous>, transform_indices = @transform_10, window_bounds = array<i64: 33, 16>}, {transform_indices = @transform_11, window_bounds = array<i64: 1, 2, 16>}]} {
    %c0 = arith.constant 0 : index
    %c0_0 = arith.constant 0 : index
    %0 = vector.load %arg6[%c0, %c0_0] : memref<14x32xf32, #tpu.memory_space<vmem>>, vector<14x32xf32>
    %c0_1 = arith.constant 0 : index
    %c0_2 = arith.constant 0 : index
    %1 = vector.load %arg2[%c0_1, %c0_2] : memref<34x34xf32, #tpu.memory_space<vmem>>, vector<34x34xf32>
    %c0_3 = arith.constant 0 : index
    %c0_4 = arith.constant 0 : index
    %c0_5 = arith.constant 0 : index
    %2 = vector.load %arg1[%c0_3, %c0_4, %c0_5] : memref<1x34x48xf32, #tpu.memory_space<vmem>>, vector<1x34x48xf32>
    %3 = vector.shape_cast %2 : vector<1x34x48xf32> to vector<34x48xf32>
    %c0_6 = arith.constant 0 : index
    %c0_7 = arith.constant 0 : index
    %4 = vector.load %arg4[%c0_6, %c0_7] : memref<48x32xf32, #tpu.memory_space<vmem>>, vector<48x32xf32>
    %cst = arith.constant dense<0.000000e+00> : vector<34x32xf32>
    %5 = tpu.matmul %3, %4, %cst {dimension_numbers = #tpu.dot_dimension_numbers<[1], [0], [0], [1], [0, 0, 1, 1], [], []>} : vector<34x48xf32>, vector<48x32xf32>, vector<34x32xf32> -> vector<34x32xf32>
    %c0_8 = arith.constant 0 : index
    %c0_9 = arith.constant 0 : index
    %6 = vector.load %arg5[%c0_8, %c0_9] : memref<34x32xf32, #tpu.memory_space<vmem>>, vector<34x32xf32>
    %7 = arith.addf %5, %6 : vector<34x32xf32>
    %8 = vector.extract_strided_slice %0 {offsets = [0, 0], sizes = [1, 32], strides = [1, 1]} : vector<14x32xf32> to vector<1x32xf32>
    %9 = vector.extract_strided_slice %0 {offsets = [1, 0], sizes = [1, 32], strides = [1, 1]} : vector<14x32xf32> to vector<1x32xf32>
    %cst_10 = arith.constant dense<0.000000e+00> : vector<34xf32>
    %10 = vector.multi_reduction <add>, %7, %cst_10 [1] : vector<34x32xf32> to vector<34xf32>
    %11 = vector.shape_cast %10 : vector<34xf32> to vector<34x1xf32>
    %cst_11 = arith.constant 3.200000e+01 : f32
    %12 = vector.broadcast %cst_11 : f32 to vector<34x1xf32>
    %13 = arith.divf %11, %12 : vector<34x1xf32>
    %14 = vector.broadcast %13 : vector<34x1xf32> to vector<34x32xf32>
    %15 = arith.subf %7, %14 : vector<34x32xf32>
    %16 = arith.mulf %15, %15 : vector<34x32xf32>
    %cst_12 = arith.constant dense<0.000000e+00> : vector<34xf32>
    %17 = vector.multi_reduction <add>, %16, %cst_12 [1] : vector<34x32xf32> to vector<34xf32>
    %18 = vector.shape_cast %17 : vector<34xf32> to vector<34x1xf32>
    %cst_13 = arith.constant 3.200000e+01 : f32
    %19 = vector.broadcast %cst_13 : f32 to vector<34x1xf32>
    %20 = arith.divf %18, %19 : vector<34x1xf32>
    %21 = vector.broadcast %13 : vector<34x1xf32> to vector<34x32xf32>
    %22 = arith.subf %7, %21 : vector<34x32xf32>
    %cst_14 = arith.constant 9.99999974E-6 : f32
    %23 = vector.broadcast %cst_14 : f32 to vector<34x1xf32>
    %24 = arith.addf %20, %23 : vector<34x1xf32>
    %25 = math.rsqrt %24 : vector<34x1xf32>
    %26 = vector.broadcast %25 : vector<34x1xf32> to vector<34x32xf32>
    %27 = arith.mulf %22, %26 : vector<34x32xf32>
    %28 = vector.broadcast %8 : vector<1x32xf32> to vector<34x32xf32>
    %29 = arith.mulf %27, %28 : vector<34x32xf32>
    %30 = vector.broadcast %9 : vector<1x32xf32> to vector<34x32xf32>
    %31 = arith.addf %29, %30 : vector<34x32xf32>
    %c0_15 = arith.constant 0 : index
    %c0_16 = arith.constant 0 : index
    %c0_17 = arith.constant 0 : index
    %32 = vector.load %arg7[%c0_15, %c0_16, %c0_17] : memref<2x32x96xf32, #tpu.memory_space<vmem>>, vector<1x32x96xf32>
    %33 = vector.shape_cast %32 : vector<1x32x96xf32> to vector<32x96xf32>
    %cst_18 = arith.constant dense<0.000000e+00> : vector<34x96xf32>
    %34 = tpu.matmul %31, %33, %cst_18 {dimension_numbers = #tpu.dot_dimension_numbers<[1], [0], [0], [1], [0, 0, 1, 1], [], []>} : vector<34x32xf32>, vector<32x96xf32>, vector<34x96xf32> -> vector<34x96xf32>
    %35 = vector.extract_strided_slice %34 {offsets = [0, 0], sizes = [34, 8], strides = [1, 1]} : vector<34x96xf32> to vector<34x8xf32>
    %cst_19 = arith.constant 0.353553385 : f32
    %36 = vector.broadcast %cst_19 : f32 to vector<34x8xf32>
    %37 = arith.mulf %35, %36 : vector<34x8xf32>
    %38 = vector.extract_strided_slice %34 {offsets = [0, 32], sizes = [34, 8], strides = [1, 1]} : vector<34x96xf32> to vector<34x8xf32>
    %39 = vector.extract_strided_slice %34 {offsets = [0, 64], sizes = [34, 8], strides = [1, 1]} : vector<34x96xf32> to vector<34x8xf32>
    %cst_20 = arith.constant dense<0.000000e+00> : vector<34x34xf32>
    %40 = tpu.matmul %37, %38, %cst_20 {dimension_numbers = #tpu.dot_dimension_numbers<[1], [1], [0], [0], [0, 0, 1, 0], [], []>} : vector<34x8xf32>, vector<34x8xf32>, vector<34x34xf32> -> vector<34x34xf32>
    %41 = arith.addf %40, %1 : vector<34x34xf32>
    %cst_21 = arith.constant dense<0xFF800000> : vector<34xf32>
    %42 = vector.multi_reduction <maximumf>, %41, %cst_21 [1] : vector<34x34xf32> to vector<34xf32>
    %43 = vector.shape_cast %42 : vector<34xf32> to vector<34x1xf32>
    %44 = vector.broadcast %43 : vector<34x1xf32> to vector<34x34xf32>
    %45 = arith.subf %41, %44 : vector<34x34xf32>
    %46 = math.exp %45 : vector<34x34xf32>
    %cst_22 = arith.constant dense<0.000000e+00> : vector<34xf32>
    %47 = vector.multi_reduction <add>, %46, %cst_22 [1] : vector<34x34xf32> to vector<34xf32>
    %48 = vector.shape_cast %47 : vector<34xf32> to vector<34x1xf32>
    %49 = tpu.reciprocal %48 {approx = true} : vector<34x1xf32> -> vector<34x1xf32>
    %50 = vector.broadcast %49 : vector<34x1xf32> to vector<34x34xf32>
    %51 = arith.mulf %46, %50 : vector<34x34xf32>
    %cst_23 = arith.constant dense<0.000000e+00> : vector<34x8xf32>
    %52 = tpu.matmul %51, %39, %cst_23 {dimension_numbers = #tpu.dot_dimension_numbers<[1], [0], [0], [1], [0, 0, 1, 1], [], []>} : vector<34x34xf32>, vector<34x8xf32>, vector<34x8xf32> -> vector<34x8xf32>
    %53 = vector.extract_strided_slice %34 {offsets = [0, 8], sizes = [34, 8], strides = [1, 1]} : vector<34x96xf32> to vector<34x8xf32>
    %cst_24 = arith.constant 0.353553385 : f32
    %54 = vector.broadcast %cst_24 : f32 to vector<34x8xf32>
    %55 = arith.mulf %53, %54 : vector<34x8xf32>
    %56 = vector.extract_strided_slice %34 {offsets = [0, 40], sizes = [34, 8], strides = [1, 1]} : vector<34x96xf32> to vector<34x8xf32>
    %57 = vector.extract_strided_slice %34 {offsets = [0, 72], sizes = [34, 8], strides = [1, 1]} : vector<34x96xf32> to vector<34x8xf32>
    %cst_25 = arith.constant dense<0.000000e+00> : vector<34x34xf32>
    %58 = tpu.matmul %55, %56, %cst_25 {dimension_numbers = #tpu.dot_dimension_numbers<[1], [1], [0], [0], [0, 0, 1, 0], [], []>} : vector<34x8xf32>, vector<34x8xf32>, vector<34x34xf32> -> vector<34x34xf32>
    %59 = arith.addf %58, %1 : vector<34x34xf32>
    %cst_26 = arith.constant dense<0xFF800000> : vector<34xf32>
    %60 = vector.multi_reduction <maximumf>, %59, %cst_26 [1] : vector<34x34xf32> to vector<34xf32>
    %61 = vector.shape_cast %60 : vector<34xf32> to vector<34x1xf32>
    %62 = vector.broadcast %61 : vector<34x1xf32> to vector<34x34xf32>
    %63 = arith.subf %59, %62 : vector<34x34xf32>
    %64 = math.exp %63 : vector<34x34xf32>
    %cst_27 = arith.constant dense<0.000000e+00> : vector<34xf32>
    %65 = vector.multi_reduction <add>, %64, %cst_27 [1] : vector<34x34xf32> to vector<34xf32>
    %66 = vector.shape_cast %65 : vector<34xf32> to vector<34x1xf32>
    %67 = tpu.reciprocal %66 {approx = true} : vector<34x1xf32> -> vector<34x1xf32>
    %68 = vector.broadcast %67 : vector<34x1xf32> to vector<34x34xf32>
    %69 = arith.mulf %64, %68 : vector<34x34xf32>
    %cst_28 = arith.constant dense<0.000000e+00> : vector<34x8xf32>
    %70 = tpu.matmul %69, %57, %cst_28 {dimension_numbers = #tpu.dot_dimension_numbers<[1], [0], [0], [1], [0, 0, 1, 1], [], []>} : vector<34x34xf32>, vector<34x8xf32>, vector<34x8xf32> -> vector<34x8xf32>
    %71 = vector.extract_strided_slice %34 {offsets = [0, 16], sizes = [34, 8], strides = [1, 1]} : vector<34x96xf32> to vector<34x8xf32>
    %cst_29 = arith.constant 0.353553385 : f32
    %72 = vector.broadcast %cst_29 : f32 to vector<34x8xf32>
    %73 = arith.mulf %71, %72 : vector<34x8xf32>
    %74 = vector.extract_strided_slice %34 {offsets = [0, 48], sizes = [34, 8], strides = [1, 1]} : vector<34x96xf32> to vector<34x8xf32>
    %75 = vector.extract_strided_slice %34 {offsets = [0, 80], sizes = [34, 8], strides = [1, 1]} : vector<34x96xf32> to vector<34x8xf32>
    %cst_30 = arith.constant dense<0.000000e+00> : vector<34x34xf32>
    %76 = tpu.matmul %73, %74, %cst_30 {dimension_numbers = #tpu.dot_dimension_numbers<[1], [1], [0], [0], [0, 0, 1, 0], [], []>} : vector<34x8xf32>, vector<34x8xf32>, vector<34x34xf32> -> vector<34x34xf32>
    %77 = arith.addf %76, %1 : vector<34x34xf32>
    %cst_31 = arith.constant dense<0xFF800000> : vector<34xf32>
    %78 = vector.multi_reduction <maximumf>, %77, %cst_31 [1] : vector<34x34xf32> to vector<34xf32>
    %79 = vector.shape_cast %78 : vector<34xf32> to vector<34x1xf32>
    %80 = vector.broadcast %79 : vector<34x1xf32> to vector<34x34xf32>
    %81 = arith.subf %77, %80 : vector<34x34xf32>
    %82 = math.exp %81 : vector<34x34xf32>
    %cst_32 = arith.constant dense<0.000000e+00> : vector<34xf32>
    %83 = vector.multi_reduction <add>, %82, %cst_32 [1] : vector<34x34xf32> to vector<34xf32>
    %84 = vector.shape_cast %83 : vector<34xf32> to vector<34x1xf32>
    %85 = tpu.reciprocal %84 {approx = true} : vector<34x1xf32> -> vector<34x1xf32>
    %86 = vector.broadcast %85 : vector<34x1xf32> to vector<34x34xf32>
    %87 = arith.mulf %82, %86 : vector<34x34xf32>
    %cst_33 = arith.constant dense<0.000000e+00> : vector<34x8xf32>
    %88 = tpu.matmul %87, %75, %cst_33 {dimension_numbers = #tpu.dot_dimension_numbers<[1], [0], [0], [1], [0, 0, 1, 1], [], []>} : vector<34x34xf32>, vector<34x8xf32>, vector<34x8xf32> -> vector<34x8xf32>
    %89 = vector.extract_strided_slice %34 {offsets = [0, 24], sizes = [34, 8], strides = [1, 1]} : vector<34x96xf32> to vector<34x8xf32>
    %cst_34 = arith.constant 0.353553385 : f32
    %90 = vector.broadcast %cst_34 : f32 to vector<34x8xf32>
    %91 = arith.mulf %89, %90 : vector<34x8xf32>
    %92 = vector.extract_strided_slice %34 {offsets = [0, 56], sizes = [34, 8], strides = [1, 1]} : vector<34x96xf32> to vector<34x8xf32>
    %93 = vector.extract_strided_slice %34 {offsets = [0, 88], sizes = [34, 8], strides = [1, 1]} : vector<34x96xf32> to vector<34x8xf32>
    %cst_35 = arith.constant dense<0.000000e+00> : vector<34x34xf32>
    %94 = tpu.matmul %91, %92, %cst_35 {dimension_numbers = #tpu.dot_dimension_numbers<[1], [1], [0], [0], [0, 0, 1, 0], [], []>} : vector<34x8xf32>, vector<34x8xf32>, vector<34x34xf32> -> vector<34x34xf32>
    %95 = arith.addf %94, %1 : vector<34x34xf32>
    %cst_36 = arith.constant dense<0xFF800000> : vector<34xf32>
    %96 = vector.multi_reduction <maximumf>, %95, %cst_36 [1] : vector<34x34xf32> to vector<34xf32>
    %97 = vector.shape_cast %96 : vector<34xf32> to vector<34x1xf32>
    %98 = vector.broadcast %97 : vector<34x1xf32> to vector<34x34xf32>
    %99 = arith.subf %95, %98 : vector<34x34xf32>
    %100 = math.exp %99 : vector<34x34xf32>
    %cst_37 = arith.constant dense<0.000000e+00> : vector<34xf32>
    %101 = vector.multi_reduction <add>, %100, %cst_37 [1] : vector<34x34xf32> to vector<34xf32>
    %102 = vector.shape_cast %101 : vector<34xf32> to vector<34x1xf32>
    %103 = tpu.reciprocal %102 {approx = true} : vector<34x1xf32> -> vector<34x1xf32>
    %104 = vector.broadcast %103 : vector<34x1xf32> to vector<34x34xf32>
    %105 = arith.mulf %100, %104 : vector<34x34xf32>
    %cst_38 = arith.constant dense<0.000000e+00> : vector<34x8xf32>
    %106 = tpu.matmul %105, %93, %cst_38 {dimension_numbers = #tpu.dot_dimension_numbers<[1], [0], [0], [1], [0, 0, 1, 1], [], []>} : vector<34x34xf32>, vector<34x8xf32>, vector<34x8xf32> -> vector<34x8xf32>
    %107 = tpu.concatenate %52, %70, %88, %106 in 1 : vector<34x8xf32>, vector<34x8xf32>, vector<34x8xf32>, vector<34x8xf32> -> vector<34x32xf32>
    %c0_39 = arith.constant 0 : index
    %c0_40 = arith.constant 0 : index
    %c0_41 = arith.constant 0 : index
    %108 = vector.load %arg8[%c0_39, %c0_40, %c0_41] : memref<2x32x32xf32, #tpu.memory_space<vmem>>, vector<1x32x32xf32>
    %109 = vector.shape_cast %108 : vector<1x32x32xf32> to vector<32x32xf32>
    %cst_42 = arith.constant dense<0.000000e+00> : vector<34x32xf32>
    %110 = tpu.matmul %107, %109, %cst_42 {dimension_numbers = #tpu.dot_dimension_numbers<[1], [0], [0], [1], [0, 0, 1, 1], [], []>} : vector<34x32xf32>, vector<32x32xf32>, vector<34x32xf32> -> vector<34x32xf32>
    %111 = arith.addf %7, %110 : vector<34x32xf32>
    %112 = vector.extract_strided_slice %0 {offsets = [2, 0], sizes = [1, 32], strides = [1, 1]} : vector<14x32xf32> to vector<1x32xf32>
    %113 = vector.broadcast %112 : vector<1x32xf32> to vector<34x32xf32>
    %114 = arith.addf %111, %113 : vector<34x32xf32>
    %115 = vector.extract_strided_slice %0 {offsets = [3, 0], sizes = [1, 32], strides = [1, 1]} : vector<14x32xf32> to vector<1x32xf32>
    %116 = vector.extract_strided_slice %0 {offsets = [4, 0], sizes = [1, 32], strides = [1, 1]} : vector<14x32xf32> to vector<1x32xf32>
    %cst_43 = arith.constant dense<0.000000e+00> : vector<34xf32>
    %117 = vector.multi_reduction <add>, %114, %cst_43 [1] : vector<34x32xf32> to vector<34xf32>
    %118 = vector.shape_cast %117 : vector<34xf32> to vector<34x1xf32>
    %cst_44 = arith.constant 3.200000e+01 : f32
    %119 = vector.broadcast %cst_44 : f32 to vector<34x1xf32>
    %120 = arith.divf %118, %119 : vector<34x1xf32>
    %121 = vector.broadcast %120 : vector<34x1xf32> to vector<34x32xf32>
    %122 = arith.subf %114, %121 : vector<34x32xf32>
    %123 = arith.mulf %122, %122 : vector<34x32xf32>
    %cst_45 = arith.constant dense<0.000000e+00> : vector<34xf32>
    %124 = vector.multi_reduction <add>, %123, %cst_45 [1] : vector<34x32xf32> to vector<34xf32>
    %125 = vector.shape_cast %124 : vector<34xf32> to vector<34x1xf32>
    %cst_46 = arith.constant 3.200000e+01 : f32
    %126 = vector.broadcast %cst_46 : f32 to vector<34x1xf32>
    %127 = arith.divf %125, %126 : vector<34x1xf32>
    %128 = vector.broadcast %120 : vector<34x1xf32> to vector<34x32xf32>
    %129 = arith.subf %114, %128 : vector<34x32xf32>
    %cst_47 = arith.constant 9.99999974E-6 : f32
    %130 = vector.broadcast %cst_47 : f32 to vector<34x1xf32>
    %131 = arith.addf %127, %130 : vector<34x1xf32>
    %132 = math.rsqrt %131 : vector<34x1xf32>
    %133 = vector.broadcast %132 : vector<34x1xf32> to vector<34x32xf32>
    %134 = arith.mulf %129, %133 : vector<34x32xf32>
    %135 = vector.broadcast %115 : vector<1x32xf32> to vector<34x32xf32>
    %136 = arith.mulf %134, %135 : vector<34x32xf32>
    %137 = vector.broadcast %116 : vector<1x32xf32> to vector<34x32xf32>
    %138 = arith.addf %136, %137 : vector<34x32xf32>
    %c0_48 = arith.constant 0 : index
    %c0_49 = arith.constant 0 : index
    %c0_50 = arith.constant 0 : index
    %139 = vector.load %arg9[%c0_48, %c0_49, %c0_50] : memref<2x33x128xf32, #tpu.memory_space<vmem>>, vector<1x33x128xf32>
    %140 = vector.shape_cast %139 : vector<1x33x128xf32> to vector<33x128xf32>
    %141 = vector.extract_strided_slice %140 {offsets = [0, 0], sizes = [32, 128], strides = [1, 1]} : vector<33x128xf32> to vector<32x128xf32>
    %cst_51 = arith.constant dense<0.000000e+00> : vector<34x128xf32>
    %142 = tpu.matmul %138, %141, %cst_51 {dimension_numbers = #tpu.dot_dimension_numbers<[1], [0], [0], [1], [0, 0, 1, 1], [], []>} : vector<34x32xf32>, vector<32x128xf32>, vector<34x128xf32> -> vector<34x128xf32>
    %143 = vector.extract_strided_slice %140 {offsets = [32, 0], sizes = [1, 128], strides = [1, 1]} : vector<33x128xf32> to vector<1x128xf32>
    %144 = vector.broadcast %143 : vector<1x128xf32> to vector<34x128xf32>
    %145 = arith.addf %142, %144 : vector<34x128xf32>
    %cst_52 = arith.constant 5.000000e-01 : f32
    %146 = vector.broadcast %cst_52 : f32 to vector<34x128xf32>
    %147 = arith.mulf %146, %145 : vector<34x128xf32>
    %cst_53 = arith.constant 0.707106769 : f32
    %148 = vector.broadcast %cst_53 : f32 to vector<34x128xf32>
    %149 = arith.mulf %145, %148 : vector<34x128xf32>
    %150 = math.absf %149 : vector<34x128xf32>
    %cst_54 = arith.constant 0.327591091 : f32
    %151 = vector.broadcast %cst_54 : f32 to vector<34x128xf32>
    %152 = arith.mulf %151, %150 : vector<34x128xf32>
    %cst_55 = arith.constant 1.000000e+00 : f32
    %153 = vector.broadcast %cst_55 : f32 to vector<34x128xf32>
    %154 = arith.addf %153, %152 : vector<34x128xf32>
    %cst_56 = arith.constant 1.000000e+00 : f32
    %155 = vector.broadcast %cst_56 : f32 to vector<34x128xf32>
    %156 = arith.divf %155, %154 : vector<34x128xf32>
    %cst_57 = arith.constant 1.06140542 : f32
    %157 = vector.broadcast %cst_57 : f32 to vector<34x128xf32>
    %158 = arith.mulf %157, %156 : vector<34x128xf32>
    %cst_58 = arith.constant -1.45315206 : f32
    %159 = vector.broadcast %cst_58 : f32 to vector<34x128xf32>
    %160 = arith.addf %158, %159 : vector<34x128xf32>
    %161 = arith.mulf %160, %156 : vector<34x128xf32>
    %cst_59 = arith.constant 1.42141378 : f32
    %162 = vector.broadcast %cst_59 : f32 to vector<34x128xf32>
    %163 = arith.addf %161, %162 : vector<34x128xf32>
    %164 = arith.mulf %163, %156 : vector<34x128xf32>
    %cst_60 = arith.constant -0.284496725 : f32
    %165 = vector.broadcast %cst_60 : f32 to vector<34x128xf32>
    %166 = arith.addf %164, %165 : vector<34x128xf32>
    %167 = arith.mulf %166, %156 : vector<34x128xf32>
    %cst_61 = arith.constant 0.254829586 : f32
    %168 = vector.broadcast %cst_61 : f32 to vector<34x128xf32>
    %169 = arith.addf %167, %168 : vector<34x128xf32>
    %170 = arith.mulf %169, %156 : vector<34x128xf32>
    %cst_62 = arith.constant 0.000000e+00 : f32
    %171 = vector.broadcast %cst_62 : f32 to vector<34x128xf32>
    %172 = arith.subf %171, %150 : vector<34x128xf32>
    %173 = arith.mulf %172, %150 : vector<34x128xf32>
    %174 = math.exp %173 : vector<34x128xf32>
    %175 = arith.mulf %170, %174 : vector<34x128xf32>
    %cst_63 = arith.constant 1.000000e+00 : f32
    %176 = vector.broadcast %cst_63 : f32 to vector<34x128xf32>
    %177 = arith.subf %176, %175 : vector<34x128xf32>
    %cst_64 = arith.constant 0.000000e+00 : f32
    %178 = vector.broadcast %cst_64 : f32 to vector<34x128xf32>
    %179 = arith.cmpf oge, %149, %178 : vector<34x128xf32>
    %cst_65 = arith.constant 0.000000e+00 : f32
    %180 = vector.broadcast %cst_65 : f32 to vector<34x128xf32>
    %181 = arith.subf %180, %177 : vector<34x128xf32>
    %182 = arith.select %179, %177, %181 : vector<34x128xi1>, vector<34x128xf32>
    %cst_66 = arith.constant 1.000000e+00 : f32
    %183 = vector.broadcast %cst_66 : f32 to vector<34x128xf32>
    %184 = arith.addf %183, %182 : vector<34x128xf32>
    %185 = arith.mulf %147, %184 : vector<34x128xf32>
    %c0_67 = arith.constant 0 : index
    %c0_68 = arith.constant 0 : index
    %c0_69 = arith.constant 0 : index
    %186 = vector.load %arg10[%c0_67, %c0_68, %c0_69] : memref<2x128x32xf32, #tpu.memory_space<vmem>>, vector<1x128x32xf32>
    %187 = vector.shape_cast %186 : vector<1x128x32xf32> to vector<128x32xf32>
    %cst_70 = arith.constant dense<0.000000e+00> : vector<34x32xf32>
    %188 = tpu.matmul %185, %187, %cst_70 {dimension_numbers = #tpu.dot_dimension_numbers<[1], [0], [0], [1], [0, 0, 1, 1], [], []>} : vector<34x128xf32>, vector<128x32xf32>, vector<34x32xf32> -> vector<34x32xf32>
    %189 = arith.addf %114, %188 : vector<34x32xf32>
    %190 = vector.extract_strided_slice %0 {offsets = [5, 0], sizes = [1, 32], strides = [1, 1]} : vector<14x32xf32> to vector<1x32xf32>
    %191 = vector.broadcast %190 : vector<1x32xf32> to vector<34x32xf32>
    %192 = arith.addf %189, %191 : vector<34x32xf32>
    %193 = vector.extract_strided_slice %0 {offsets = [6, 0], sizes = [1, 32], strides = [1, 1]} : vector<14x32xf32> to vector<1x32xf32>
    %194 = vector.extract_strided_slice %0 {offsets = [7, 0], sizes = [1, 32], strides = [1, 1]} : vector<14x32xf32> to vector<1x32xf32>
    %cst_71 = arith.constant dense<0.000000e+00> : vector<34xf32>
    %195 = vector.multi_reduction <add>, %192, %cst_71 [1] : vector<34x32xf32> to vector<34xf32>
    %196 = vector.shape_cast %195 : vector<34xf32> to vector<34x1xf32>
    %cst_72 = arith.constant 3.200000e+01 : f32
    %197 = vector.broadcast %cst_72 : f32 to vector<34x1xf32>
    %198 = arith.divf %196, %197 : vector<34x1xf32>
    %199 = vector.broadcast %198 : vector<34x1xf32> to vector<34x32xf32>
    %200 = arith.subf %192, %199 : vector<34x32xf32>
    %201 = arith.mulf %200, %200 : vector<34x32xf32>
    %cst_73 = arith.constant dense<0.000000e+00> : vector<34xf32>
    %202 = vector.multi_reduction <add>, %201, %cst_73 [1] : vector<34x32xf32> to vector<34xf32>
    %203 = vector.shape_cast %202 : vector<34xf32> to vector<34x1xf32>
    %cst_74 = arith.constant 3.200000e+01 : f32
    %204 = vector.broadcast %cst_74 : f32 to vector<34x1xf32>
    %205 = arith.divf %203, %204 : vector<34x1xf32>
    %206 = vector.broadcast %198 : vector<34x1xf32> to vector<34x32xf32>
    %207 = arith.subf %192, %206 : vector<34x32xf32>
    %cst_75 = arith.constant 9.99999974E-6 : f32
    %208 = vector.broadcast %cst_75 : f32 to vector<34x1xf32>
    %209 = arith.addf %205, %208 : vector<34x1xf32>
    %210 = math.rsqrt %209 : vector<34x1xf32>
    %211 = vector.broadcast %210 : vector<34x1xf32> to vector<34x32xf32>
    %212 = arith.mulf %207, %211 : vector<34x32xf32>
    %213 = vector.broadcast %193 : vector<1x32xf32> to vector<34x32xf32>
    %214 = arith.mulf %212, %213 : vector<34x32xf32>
    %215 = vector.broadcast %194 : vector<1x32xf32> to vector<34x32xf32>
    %216 = arith.addf %214, %215 : vector<34x32xf32>
    %c1 = arith.constant 1 : index
    %c0_76 = arith.constant 0 : index
    %c0_77 = arith.constant 0 : index
    %217 = vector.load %arg7[%c1, %c0_76, %c0_77] : memref<2x32x96xf32, #tpu.memory_space<vmem>>, vector<1x32x96xf32>
    %218 = vector.shape_cast %217 : vector<1x32x96xf32> to vector<32x96xf32>
    %cst_78 = arith.constant dense<0.000000e+00> : vector<34x96xf32>
    %219 = tpu.matmul %216, %218, %cst_78 {dimension_numbers = #tpu.dot_dimension_numbers<[1], [0], [0], [1], [0, 0, 1, 1], [], []>} : vector<34x32xf32>, vector<32x96xf32>, vector<34x96xf32> -> vector<34x96xf32>
    %220 = vector.extract_strided_slice %219 {offsets = [0, 0], sizes = [34, 8], strides = [1, 1]} : vector<34x96xf32> to vector<34x8xf32>
    %cst_79 = arith.constant 0.353553385 : f32
    %221 = vector.broadcast %cst_79 : f32 to vector<34x8xf32>
    %222 = arith.mulf %220, %221 : vector<34x8xf32>
    %223 = vector.extract_strided_slice %219 {offsets = [0, 32], sizes = [34, 8], strides = [1, 1]} : vector<34x96xf32> to vector<34x8xf32>
    %224 = vector.extract_strided_slice %219 {offsets = [0, 64], sizes = [34, 8], strides = [1, 1]} : vector<34x96xf32> to vector<34x8xf32>
    %cst_80 = arith.constant dense<0.000000e+00> : vector<34x34xf32>
    %225 = tpu.matmul %222, %223, %cst_80 {dimension_numbers = #tpu.dot_dimension_numbers<[1], [1], [0], [0], [0, 0, 1, 0], [], []>} : vector<34x8xf32>, vector<34x8xf32>, vector<34x34xf32> -> vector<34x34xf32>
    %226 = arith.addf %225, %1 : vector<34x34xf32>
    %cst_81 = arith.constant dense<0xFF800000> : vector<34xf32>
    %227 = vector.multi_reduction <maximumf>, %226, %cst_81 [1] : vector<34x34xf32> to vector<34xf32>
    %228 = vector.shape_cast %227 : vector<34xf32> to vector<34x1xf32>
    %229 = vector.broadcast %228 : vector<34x1xf32> to vector<34x34xf32>
    %230 = arith.subf %226, %229 : vector<34x34xf32>
    %231 = math.exp %230 : vector<34x34xf32>
    %cst_82 = arith.constant dense<0.000000e+00> : vector<34xf32>
    %232 = vector.multi_reduction <add>, %231, %cst_82 [1] : vector<34x34xf32> to vector<34xf32>
    %233 = vector.shape_cast %232 : vector<34xf32> to vector<34x1xf32>
    %234 = tpu.reciprocal %233 {approx = true} : vector<34x1xf32> -> vector<34x1xf32>
    %235 = vector.broadcast %234 : vector<34x1xf32> to vector<34x34xf32>
    %236 = arith.mulf %231, %235 : vector<34x34xf32>
    %cst_83 = arith.constant dense<0.000000e+00> : vector<34x8xf32>
    %237 = tpu.matmul %236, %224, %cst_83 {dimension_numbers = #tpu.dot_dimension_numbers<[1], [0], [0], [1], [0, 0, 1, 1], [], []>} : vector<34x34xf32>, vector<34x8xf32>, vector<34x8xf32> -> vector<34x8xf32>
    %238 = vector.extract_strided_slice %219 {offsets = [0, 8], sizes = [34, 8], strides = [1, 1]} : vector<34x96xf32> to vector<34x8xf32>
    %cst_84 = arith.constant 0.353553385 : f32
    %239 = vector.broadcast %cst_84 : f32 to vector<34x8xf32>
    %240 = arith.mulf %238, %239 : vector<34x8xf32>
    %241 = vector.extract_strided_slice %219 {offsets = [0, 40], sizes = [34, 8], strides = [1, 1]} : vector<34x96xf32> to vector<34x8xf32>
    %242 = vector.extract_strided_slice %219 {offsets = [0, 72], sizes = [34, 8], strides = [1, 1]} : vector<34x96xf32> to vector<34x8xf32>
    %cst_85 = arith.constant dense<0.000000e+00> : vector<34x34xf32>
    %243 = tpu.matmul %240, %241, %cst_85 {dimension_numbers = #tpu.dot_dimension_numbers<[1], [1], [0], [0], [0, 0, 1, 0], [], []>} : vector<34x8xf32>, vector<34x8xf32>, vector<34x34xf32> -> vector<34x34xf32>
    %244 = arith.addf %243, %1 : vector<34x34xf32>
    %cst_86 = arith.constant dense<0xFF800000> : vector<34xf32>
    %245 = vector.multi_reduction <maximumf>, %244, %cst_86 [1] : vector<34x34xf32> to vector<34xf32>
    %246 = vector.shape_cast %245 : vector<34xf32> to vector<34x1xf32>
    %247 = vector.broadcast %246 : vector<34x1xf32> to vector<34x34xf32>
    %248 = arith.subf %244, %247 : vector<34x34xf32>
    %249 = math.exp %248 : vector<34x34xf32>
    %cst_87 = arith.constant dense<0.000000e+00> : vector<34xf32>
    %250 = vector.multi_reduction <add>, %249, %cst_87 [1] : vector<34x34xf32> to vector<34xf32>
    %251 = vector.shape_cast %250 : vector<34xf32> to vector<34x1xf32>
    %252 = tpu.reciprocal %251 {approx = true} : vector<34x1xf32> -> vector<34x1xf32>
    %253 = vector.broadcast %252 : vector<34x1xf32> to vector<34x34xf32>
    %254 = arith.mulf %249, %253 : vector<34x34xf32>
    %cst_88 = arith.constant dense<0.000000e+00> : vector<34x8xf32>
    %255 = tpu.matmul %254, %242, %cst_88 {dimension_numbers = #tpu.dot_dimension_numbers<[1], [0], [0], [1], [0, 0, 1, 1], [], []>} : vector<34x34xf32>, vector<34x8xf32>, vector<34x8xf32> -> vector<34x8xf32>
    %256 = vector.extract_strided_slice %219 {offsets = [0, 16], sizes = [34, 8], strides = [1, 1]} : vector<34x96xf32> to vector<34x8xf32>
    %cst_89 = arith.constant 0.353553385 : f32
    %257 = vector.broadcast %cst_89 : f32 to vector<34x8xf32>
    %258 = arith.mulf %256, %257 : vector<34x8xf32>
    %259 = vector.extract_strided_slice %219 {offsets = [0, 48], sizes = [34, 8], strides = [1, 1]} : vector<34x96xf32> to vector<34x8xf32>
    %260 = vector.extract_strided_slice %219 {offsets = [0, 80], sizes = [34, 8], strides = [1, 1]} : vector<34x96xf32> to vector<34x8xf32>
    %cst_90 = arith.constant dense<0.000000e+00> : vector<34x34xf32>
    %261 = tpu.matmul %258, %259, %cst_90 {dimension_numbers = #tpu.dot_dimension_numbers<[1], [1], [0], [0], [0, 0, 1, 0], [], []>} : vector<34x8xf32>, vector<34x8xf32>, vector<34x34xf32> -> vector<34x34xf32>
    %262 = arith.addf %261, %1 : vector<34x34xf32>
    %cst_91 = arith.constant dense<0xFF800000> : vector<34xf32>
    %263 = vector.multi_reduction <maximumf>, %262, %cst_91 [1] : vector<34x34xf32> to vector<34xf32>
    %264 = vector.shape_cast %263 : vector<34xf32> to vector<34x1xf32>
    %265 = vector.broadcast %264 : vector<34x1xf32> to vector<34x34xf32>
    %266 = arith.subf %262, %265 : vector<34x34xf32>
    %267 = math.exp %266 : vector<34x34xf32>
    %cst_92 = arith.constant dense<0.000000e+00> : vector<34xf32>
    %268 = vector.multi_reduction <add>, %267, %cst_92 [1] : vector<34x34xf32> to vector<34xf32>
    %269 = vector.shape_cast %268 : vector<34xf32> to vector<34x1xf32>
    %270 = tpu.reciprocal %269 {approx = true} : vector<34x1xf32> -> vector<34x1xf32>
    %271 = vector.broadcast %270 : vector<34x1xf32> to vector<34x34xf32>
    %272 = arith.mulf %267, %271 : vector<34x34xf32>
    %cst_93 = arith.constant dense<0.000000e+00> : vector<34x8xf32>
    %273 = tpu.matmul %272, %260, %cst_93 {dimension_numbers = #tpu.dot_dimension_numbers<[1], [0], [0], [1], [0, 0, 1, 1], [], []>} : vector<34x34xf32>, vector<34x8xf32>, vector<34x8xf32> -> vector<34x8xf32>
    %274 = vector.extract_strided_slice %219 {offsets = [0, 24], sizes = [34, 8], strides = [1, 1]} : vector<34x96xf32> to vector<34x8xf32>
    %cst_94 = arith.constant 0.353553385 : f32
    %275 = vector.broadcast %cst_94 : f32 to vector<34x8xf32>
    %276 = arith.mulf %274, %275 : vector<34x8xf32>
    %277 = vector.extract_strided_slice %219 {offsets = [0, 56], sizes = [34, 8], strides = [1, 1]} : vector<34x96xf32> to vector<34x8xf32>
    %278 = vector.extract_strided_slice %219 {offsets = [0, 88], sizes = [34, 8], strides = [1, 1]} : vector<34x96xf32> to vector<34x8xf32>
    %cst_95 = arith.constant dense<0.000000e+00> : vector<34x34xf32>
    %279 = tpu.matmul %276, %277, %cst_95 {dimension_numbers = #tpu.dot_dimension_numbers<[1], [1], [0], [0], [0, 0, 1, 0], [], []>} : vector<34x8xf32>, vector<34x8xf32>, vector<34x34xf32> -> vector<34x34xf32>
    %280 = arith.addf %279, %1 : vector<34x34xf32>
    %cst_96 = arith.constant dense<0xFF800000> : vector<34xf32>
    %281 = vector.multi_reduction <maximumf>, %280, %cst_96 [1] : vector<34x34xf32> to vector<34xf32>
    %282 = vector.shape_cast %281 : vector<34xf32> to vector<34x1xf32>
    %283 = vector.broadcast %282 : vector<34x1xf32> to vector<34x34xf32>
    %284 = arith.subf %280, %283 : vector<34x34xf32>
    %285 = math.exp %284 : vector<34x34xf32>
    %cst_97 = arith.constant dense<0.000000e+00> : vector<34xf32>
    %286 = vector.multi_reduction <add>, %285, %cst_97 [1] : vector<34x34xf32> to vector<34xf32>
    %287 = vector.shape_cast %286 : vector<34xf32> to vector<34x1xf32>
    %288 = tpu.reciprocal %287 {approx = true} : vector<34x1xf32> -> vector<34x1xf32>
    %289 = vector.broadcast %288 : vector<34x1xf32> to vector<34x34xf32>
    %290 = arith.mulf %285, %289 : vector<34x34xf32>
    %cst_98 = arith.constant dense<0.000000e+00> : vector<34x8xf32>
    %291 = tpu.matmul %290, %278, %cst_98 {dimension_numbers = #tpu.dot_dimension_numbers<[1], [0], [0], [1], [0, 0, 1, 1], [], []>} : vector<34x34xf32>, vector<34x8xf32>, vector<34x8xf32> -> vector<34x8xf32>
    %292 = tpu.concatenate %237, %255, %273, %291 in 1 : vector<34x8xf32>, vector<34x8xf32>, vector<34x8xf32>, vector<34x8xf32> -> vector<34x32xf32>
    %c1_99 = arith.constant 1 : index
    %c0_100 = arith.constant 0 : index
    %c0_101 = arith.constant 0 : index
    %293 = vector.load %arg8[%c1_99, %c0_100, %c0_101] : memref<2x32x32xf32, #tpu.memory_space<vmem>>, vector<1x32x32xf32>
    %294 = vector.shape_cast %293 : vector<1x32x32xf32> to vector<32x32xf32>
    %cst_102 = arith.constant dense<0.000000e+00> : vector<34x32xf32>
    %295 = tpu.matmul %292, %294, %cst_102 {dimension_numbers = #tpu.dot_dimension_numbers<[1], [0], [0], [1], [0, 0, 1, 1], [], []>} : vector<34x32xf32>, vector<32x32xf32>, vector<34x32xf32> -> vector<34x32xf32>
    %296 = arith.addf %192, %295 : vector<34x32xf32>
    %297 = vector.extract_strided_slice %0 {offsets = [8, 0], sizes = [1, 32], strides = [1, 1]} : vector<14x32xf32> to vector<1x32xf32>
    %298 = vector.broadcast %297 : vector<1x32xf32> to vector<34x32xf32>
    %299 = arith.addf %296, %298 : vector<34x32xf32>
    %300 = vector.extract_strided_slice %0 {offsets = [9, 0], sizes = [1, 32], strides = [1, 1]} : vector<14x32xf32> to vector<1x32xf32>
    %301 = vector.extract_strided_slice %0 {offsets = [10, 0], sizes = [1, 32], strides = [1, 1]} : vector<14x32xf32> to vector<1x32xf32>
    %cst_103 = arith.constant dense<0.000000e+00> : vector<34xf32>
    %302 = vector.multi_reduction <add>, %299, %cst_103 [1] : vector<34x32xf32> to vector<34xf32>
    %303 = vector.shape_cast %302 : vector<34xf32> to vector<34x1xf32>
    %cst_104 = arith.constant 3.200000e+01 : f32
    %304 = vector.broadcast %cst_104 : f32 to vector<34x1xf32>
    %305 = arith.divf %303, %304 : vector<34x1xf32>
    %306 = vector.broadcast %305 : vector<34x1xf32> to vector<34x32xf32>
    %307 = arith.subf %299, %306 : vector<34x32xf32>
    %308 = arith.mulf %307, %307 : vector<34x32xf32>
    %cst_105 = arith.constant dense<0.000000e+00> : vector<34xf32>
    %309 = vector.multi_reduction <add>, %308, %cst_105 [1] : vector<34x32xf32> to vector<34xf32>
    %310 = vector.shape_cast %309 : vector<34xf32> to vector<34x1xf32>
    %cst_106 = arith.constant 3.200000e+01 : f32
    %311 = vector.broadcast %cst_106 : f32 to vector<34x1xf32>
    %312 = arith.divf %310, %311 : vector<34x1xf32>
    %313 = vector.broadcast %305 : vector<34x1xf32> to vector<34x32xf32>
    %314 = arith.subf %299, %313 : vector<34x32xf32>
    %cst_107 = arith.constant 9.99999974E-6 : f32
    %315 = vector.broadcast %cst_107 : f32 to vector<34x1xf32>
    %316 = arith.addf %312, %315 : vector<34x1xf32>
    %317 = math.rsqrt %316 : vector<34x1xf32>
    %318 = vector.broadcast %317 : vector<34x1xf32> to vector<34x32xf32>
    %319 = arith.mulf %314, %318 : vector<34x32xf32>
    %320 = vector.broadcast %300 : vector<1x32xf32> to vector<34x32xf32>
    %321 = arith.mulf %319, %320 : vector<34x32xf32>
    %322 = vector.broadcast %301 : vector<1x32xf32> to vector<34x32xf32>
    %323 = arith.addf %321, %322 : vector<34x32xf32>
    %c1_108 = arith.constant 1 : index
    %c0_109 = arith.constant 0 : index
    %c0_110 = arith.constant 0 : index
    %324 = vector.load %arg9[%c1_108, %c0_109, %c0_110] : memref<2x33x128xf32, #tpu.memory_space<vmem>>, vector<1x33x128xf32>
    %325 = vector.shape_cast %324 : vector<1x33x128xf32> to vector<33x128xf32>
    %326 = vector.extract_strided_slice %325 {offsets = [0, 0], sizes = [32, 128], strides = [1, 1]} : vector<33x128xf32> to vector<32x128xf32>
    %cst_111 = arith.constant dense<0.000000e+00> : vector<34x128xf32>
    %327 = tpu.matmul %323, %326, %cst_111 {dimension_numbers = #tpu.dot_dimension_numbers<[1], [0], [0], [1], [0, 0, 1, 1], [], []>} : vector<34x32xf32>, vector<32x128xf32>, vector<34x128xf32> -> vector<34x128xf32>
    %328 = vector.extract_strided_slice %325 {offsets = [32, 0], sizes = [1, 128], strides = [1, 1]} : vector<33x128xf32> to vector<1x128xf32>
    %329 = vector.broadcast %328 : vector<1x128xf32> to vector<34x128xf32>
    %330 = arith.addf %327, %329 : vector<34x128xf32>
    %cst_112 = arith.constant 5.000000e-01 : f32
    %331 = vector.broadcast %cst_112 : f32 to vector<34x128xf32>
    %332 = arith.mulf %331, %330 : vector<34x128xf32>
    %cst_113 = arith.constant 0.707106769 : f32
    %333 = vector.broadcast %cst_113 : f32 to vector<34x128xf32>
    %334 = arith.mulf %330, %333 : vector<34x128xf32>
    %335 = math.absf %334 : vector<34x128xf32>
    %cst_114 = arith.constant 0.327591091 : f32
    %336 = vector.broadcast %cst_114 : f32 to vector<34x128xf32>
    %337 = arith.mulf %336, %335 : vector<34x128xf32>
    %cst_115 = arith.constant 1.000000e+00 : f32
    %338 = vector.broadcast %cst_115 : f32 to vector<34x128xf32>
    %339 = arith.addf %338, %337 : vector<34x128xf32>
    %cst_116 = arith.constant 1.000000e+00 : f32
    %340 = vector.broadcast %cst_116 : f32 to vector<34x128xf32>
    %341 = arith.divf %340, %339 : vector<34x128xf32>
    %cst_117 = arith.constant 1.06140542 : f32
    %342 = vector.broadcast %cst_117 : f32 to vector<34x128xf32>
    %343 = arith.mulf %342, %341 : vector<34x128xf32>
    %cst_118 = arith.constant -1.45315206 : f32
    %344 = vector.broadcast %cst_118 : f32 to vector<34x128xf32>
    %345 = arith.addf %343, %344 : vector<34x128xf32>
    %346 = arith.mulf %345, %341 : vector<34x128xf32>
    %cst_119 = arith.constant 1.42141378 : f32
    %347 = vector.broadcast %cst_119 : f32 to vector<34x128xf32>
    %348 = arith.addf %346, %347 : vector<34x128xf32>
    %349 = arith.mulf %348, %341 : vector<34x128xf32>
    %cst_120 = arith.constant -0.284496725 : f32
    %350 = vector.broadcast %cst_120 : f32 to vector<34x128xf32>
    %351 = arith.addf %349, %350 : vector<34x128xf32>
    %352 = arith.mulf %351, %341 : vector<34x128xf32>
    %cst_121 = arith.constant 0.254829586 : f32
    %353 = vector.broadcast %cst_121 : f32 to vector<34x128xf32>
    %354 = arith.addf %352, %353 : vector<34x128xf32>
    %355 = arith.mulf %354, %341 : vector<34x128xf32>
    %cst_122 = arith.constant 0.000000e+00 : f32
    %356 = vector.broadcast %cst_122 : f32 to vector<34x128xf32>
    %357 = arith.subf %356, %335 : vector<34x128xf32>
    %358 = arith.mulf %357, %335 : vector<34x128xf32>
    %359 = math.exp %358 : vector<34x128xf32>
    %360 = arith.mulf %355, %359 : vector<34x128xf32>
    %cst_123 = arith.constant 1.000000e+00 : f32
    %361 = vector.broadcast %cst_123 : f32 to vector<34x128xf32>
    %362 = arith.subf %361, %360 : vector<34x128xf32>
    %cst_124 = arith.constant 0.000000e+00 : f32
    %363 = vector.broadcast %cst_124 : f32 to vector<34x128xf32>
    %364 = arith.cmpf oge, %334, %363 : vector<34x128xf32>
    %cst_125 = arith.constant 0.000000e+00 : f32
    %365 = vector.broadcast %cst_125 : f32 to vector<34x128xf32>
    %366 = arith.subf %365, %362 : vector<34x128xf32>
    %367 = arith.select %364, %362, %366 : vector<34x128xi1>, vector<34x128xf32>
    %cst_126 = arith.constant 1.000000e+00 : f32
    %368 = vector.broadcast %cst_126 : f32 to vector<34x128xf32>
    %369 = arith.addf %368, %367 : vector<34x128xf32>
    %370 = arith.mulf %332, %369 : vector<34x128xf32>
    %c1_127 = arith.constant 1 : index
    %c0_128 = arith.constant 0 : index
    %c0_129 = arith.constant 0 : index
    %371 = vector.load %arg10[%c1_127, %c0_128, %c0_129] : memref<2x128x32xf32, #tpu.memory_space<vmem>>, vector<1x128x32xf32>
    %372 = vector.shape_cast %371 : vector<1x128x32xf32> to vector<128x32xf32>
    %cst_130 = arith.constant dense<0.000000e+00> : vector<34x32xf32>
    %373 = tpu.matmul %370, %372, %cst_130 {dimension_numbers = #tpu.dot_dimension_numbers<[1], [0], [0], [1], [0, 0, 1, 1], [], []>} : vector<34x128xf32>, vector<128x32xf32>, vector<34x32xf32> -> vector<34x32xf32>
    %374 = arith.addf %299, %373 : vector<34x32xf32>
    %375 = vector.extract_strided_slice %0 {offsets = [11, 0], sizes = [1, 32], strides = [1, 1]} : vector<14x32xf32> to vector<1x32xf32>
    %376 = vector.broadcast %375 : vector<1x32xf32> to vector<34x32xf32>
    %377 = arith.addf %374, %376 : vector<34x32xf32>
    %c0_131 = arith.constant 0 : index
    %c0_132 = arith.constant 0 : index
    %378 = vector.load %arg3[%c0_131, %c0_132] : memref<2x34xf32, #tpu.memory_space<vmem>>, vector<2x34xf32>
    %cst_133 = arith.constant dense<0.000000e+00> : vector<2x32xf32>
    %379 = tpu.matmul %378, %377, %cst_133 {dimension_numbers = #tpu.dot_dimension_numbers<[1], [0], [0], [1], [0, 0, 1, 1], [], []>} : vector<2x34xf32>, vector<34x32xf32>, vector<2x32xf32> -> vector<2x32xf32>
    %380 = vector.extract_strided_slice %0 {offsets = [12, 0], sizes = [1, 32], strides = [1, 1]} : vector<14x32xf32> to vector<1x32xf32>
    %381 = vector.extract_strided_slice %0 {offsets = [13, 0], sizes = [1, 32], strides = [1, 1]} : vector<14x32xf32> to vector<1x32xf32>
    %cst_134 = arith.constant dense<0.000000e+00> : vector<2xf32>
    %382 = vector.multi_reduction <add>, %379, %cst_134 [1] : vector<2x32xf32> to vector<2xf32>
    %383 = vector.shape_cast %382 : vector<2xf32> to vector<2x1xf32>
    %cst_135 = arith.constant 3.200000e+01 : f32
    %384 = vector.broadcast %cst_135 : f32 to vector<2x1xf32>
    %385 = arith.divf %383, %384 : vector<2x1xf32>
    %386 = vector.broadcast %385 : vector<2x1xf32> to vector<2x32xf32>
    %387 = arith.subf %379, %386 : vector<2x32xf32>
    %388 = arith.mulf %387, %387 : vector<2x32xf32>
    %cst_136 = arith.constant dense<0.000000e+00> : vector<2xf32>
    %389 = vector.multi_reduction <add>, %388, %cst_136 [1] : vector<2x32xf32> to vector<2xf32>
    %390 = vector.shape_cast %389 : vector<2xf32> to vector<2x1xf32>
    %cst_137 = arith.constant 3.200000e+01 : f32
    %391 = vector.broadcast %cst_137 : f32 to vector<2x1xf32>
    %392 = arith.divf %390, %391 : vector<2x1xf32>
    %393 = vector.broadcast %385 : vector<2x1xf32> to vector<2x32xf32>
    %394 = arith.subf %379, %393 : vector<2x32xf32>
    %cst_138 = arith.constant 9.99999974E-6 : f32
    %395 = vector.broadcast %cst_138 : f32 to vector<2x1xf32>
    %396 = arith.addf %392, %395 : vector<2x1xf32>
    %397 = math.rsqrt %396 : vector<2x1xf32>
    %398 = vector.broadcast %397 : vector<2x1xf32> to vector<2x32xf32>
    %399 = arith.mulf %394, %398 : vector<2x32xf32>
    %400 = vector.broadcast %380 : vector<1x32xf32> to vector<2x32xf32>
    %401 = arith.mulf %399, %400 : vector<2x32xf32>
    %402 = vector.broadcast %381 : vector<1x32xf32> to vector<2x32xf32>
    %403 = arith.addf %401, %402 : vector<2x32xf32>
    %c0_139 = arith.constant 0 : index
    %c0_140 = arith.constant 0 : index
    %404 = vector.load %arg11[%c0_139, %c0_140] : memref<33x16xf32, #tpu.memory_space<vmem>>, vector<33x16xf32>
    %405 = vector.extract_strided_slice %404 {offsets = [0, 0], sizes = [32, 16], strides = [1, 1]} : vector<33x16xf32> to vector<32x16xf32>
    %cst_141 = arith.constant dense<0.000000e+00> : vector<2x16xf32>
    %406 = tpu.matmul %403, %405, %cst_141 {dimension_numbers = #tpu.dot_dimension_numbers<[1], [0], [0], [1], [0, 0, 1, 1], [], []>} : vector<2x32xf32>, vector<32x16xf32>, vector<2x16xf32> -> vector<2x16xf32>
    %407 = vector.extract_strided_slice %404 {offsets = [32, 0], sizes = [1, 16], strides = [1, 1]} : vector<33x16xf32> to vector<1x16xf32>
    %408 = vector.broadcast %407 : vector<1x16xf32> to vector<2x16xf32>
    %409 = arith.addf %406, %408 : vector<2x16xf32>
    %c0_142 = arith.constant 0 : index
    %c0_143 = arith.constant 0 : index
    %c0_144 = arith.constant 0 : index
    %410 = vector.load %arg12[%c0_142, %c0_143, %c0_144] : memref<1x2x16xf32, #tpu.memory_space<vmem>>, vector<1x2x16xf32>
    %411 = vector.shape_cast %410 : vector<1x2x16xf32> to vector<2x16xf32>
    %412 = vector.shape_cast %409 : vector<2x16xf32> to vector<1x2x16xf32>
    tpu.vector_store %arg12[%c0_142, %c0_143, %c0_144], %412 {strides = array<i32>} : memref<1x2x16xf32, #tpu.memory_space<vmem>>, vector<1x2x16xf32>,
    return
  }
  func.func @transform_0(%arg0: i32) -> (i32, i32, i32) {
    %c0_i32 = arith.constant 0 : i32
    %c0_i32_0 = arith.constant 0 : i32
    %c0_i32_1 = arith.constant 0 : i32
    return %arg0, %c0_i32, %c0_i32_0 : i32, i32, i32
  }
  func.func @transform_1(%arg0: i32) -> (i32, i32) {
    %c0_i32 = arith.constant 0 : i32
    %c0_i32_0 = arith.constant 0 : i32
    %c0_i32_1 = arith.constant 0 : i32
    return %c0_i32, %c0_i32_0 : i32, i32
  }
  func.func @transform_2(%arg0: i32) -> (i32, i32) {
    %c0_i32 = arith.constant 0 : i32
    %c0_i32_0 = arith.constant 0 : i32
    %c0_i32_1 = arith.constant 0 : i32
    return %c0_i32, %c0_i32_0 : i32, i32
  }
  func.func @transform_3(%arg0: i32) -> (i32, i32) {
    %c0_i32 = arith.constant 0 : i32
    %c0_i32_0 = arith.constant 0 : i32
    %c0_i32_1 = arith.constant 0 : i32
    return %c0_i32, %c0_i32_0 : i32, i32
  }
  func.func @transform_4(%arg0: i32) -> (i32, i32) {
    %c0_i32 = arith.constant 0 : i32
    %c0_i32_0 = arith.constant 0 : i32
    %c0_i32_1 = arith.constant 0 : i32
    return %c0_i32, %c0_i32_0 : i32, i32
  }
  func.func @transform_5(%arg0: i32) -> (i32, i32) {
    %c0_i32 = arith.constant 0 : i32
    %c0_i32_0 = arith.constant 0 : i32
    %c0_i32_1 = arith.constant 0 : i32
    return %c0_i32, %c0_i32_0 : i32, i32
  }
  func.func @transform_6(%arg0: i32) -> (i32, i32, i32) {
    %c0_i32 = arith.constant 0 : i32
    %c0_i32_0 = arith.constant 0 : i32
    %c0_i32_1 = arith.constant 0 : i32
    %c0_i32_2 = arith.constant 0 : i32
    return %c0_i32, %c0_i32_0, %c0_i32_1 : i32, i32, i32
  }
  func.func @transform_7(%arg0: i32) -> (i32, i32, i32) {
    %c0_i32 = arith.constant 0 : i32
    %c0_i32_0 = arith.constant 0 : i32
    %c0_i32_1 = arith.constant 0 : i32
    %c0_i32_2 = arith.constant 0 : i32
    return %c0_i32, %c0_i32_0, %c0_i32_1 : i32, i32, i32
  }
  func.func @transform_8(%arg0: i32) -> (i32, i32, i32) {
    %c0_i32 = arith.constant 0 : i32
    %c0_i32_0 = arith.constant 0 : i32
    %c0_i32_1 = arith.constant 0 : i32
    %c0_i32_2 = arith.constant 0 : i32
    return %c0_i32, %c0_i32_0, %c0_i32_1 : i32, i32, i32
  }
  func.func @transform_9(%arg0: i32) -> (i32, i32, i32) {
    %c0_i32 = arith.constant 0 : i32
    %c0_i32_0 = arith.constant 0 : i32
    %c0_i32_1 = arith.constant 0 : i32
    %c0_i32_2 = arith.constant 0 : i32
    return %c0_i32, %c0_i32_0, %c0_i32_1 : i32, i32, i32
  }
  func.func @transform_10(%arg0: i32) -> (i32, i32) {
    %c0_i32 = arith.constant 0 : i32
    %c0_i32_0 = arith.constant 0 : i32
    %c0_i32_1 = arith.constant 0 : i32
    return %c0_i32, %c0_i32_0 : i32, i32
  }
  func.func @transform_11(%arg0: i32) -> (i32, i32, i32) {
    %c0_i32 = arith.constant 0 : i32
    %c0_i32_0 = arith.constant 0 : i32
    %c0_i32_1 = arith.constant 0 : i32
    return %arg0, %c0_i32, %c0_i32_0 : i32, i32, i32
  }
}

</mosaic_0001>

<bundles_post_ra>
// kernel: tile.9
= control target key start
LH: loop header
LB: loop body
LE: loop exit
PB: predicated region body
PF: predicated region fallthrough
CT: control target
= control target key end

     0   :  { %vm3_vm0 = vcmask 261120   ;;  %s11_s6 = smov 3  ;;  %s74_s0 = inlined_call_operand.vmem [shape: f32[2,17,32], index: 0, kind: input, shape index: {}]   ;;  %s75_s1 = inlined_call_operand.vmem [shape: f32[34,32], index: 1, kind: output, shape index: {}]  }
   0x1   :  { %v2_v0 = vld [vmem:[%s74_s0] sm:$0xff]   ;;  %v26_v1 = vld [vmem:[%s74_s0 + $0x8] sm:$0xff]  }
   0x2   :  { %v28_v2 = vld [vmem:[%s74_s0 + $0x10] ss:$8 sm:%s11_s6]   ;;  %4 = vst.msk [vmem:[%s75_s1] sm:$0xff] %vm3_vm0, %v2_v0   ;;  %27 = vst.msk [vmem:[%s75_s1 + $0x8] sm:$0xff] %vm3_vm0, %v26_v1  }
   0x3   :  { %29 = vst.msk [vmem:[%s75_s1 + $0x10] sm:$0x3] %vm3_vm0, %v28_v2   ;;  %v30_v3 = vld [vmem:[%s74_s0 + $0x19] sm:$0xff]   ;;  %v32_v4 = vld [vmem:[%s74_s0 + $0x21] sm:$0xff]  }
   0x4   :  { %31 = vst.msk [vmem:[%s75_s1 + $0x12] sm:$0xff] %vm3_vm0, %v30_v3   ;;  %33 = vst.msk [vmem:[%s75_s1 + $0x1a] sm:$0xff] %vm3_vm0, %v32_v4  }

// kernel: vit_forward.1
= control target key start
LH: loop header
LB: loop body
LE: loop exit
PB: predicated region body
PF: predicated region fallthrough
CT: control target
= control target key end

     0   :  { %v6347_v3 = vmov 0.0|0.0   ;;  %vm6348_vm0 = vmmov 0   ;;  %v6349_v6 = vmov 0.0   ;;  %s8312_s0 = inlined_call_operand.vmem [shape: f32[1,34,48], index: 0, kind: input, shape index: {}]   ;;  %s8313_s1 = inlined_call_operand.vmem [shape: f32[34,34], index: 1, kind: input, shape index: {}]   ;;  %s8314_s2 = inlined_call_operand.vmem [shape: f32[2,34], index: 2, kind: input, shape index: {}]   ;;  %s8315_s3 = inlined_call_operand.vmem [shape: f32[48,32], index: 3, kind: input, shape index: {}]   ;;  %s8316_s4 = inlined_call_operand.vmem [shape: f32[34,32], index: 4, kind: input, shape index: {}]   ;;  %s8317_s5 = inlined_call_operand.vmem [shape: f32[14,32], index: 5, kind: input, shape index: {}]   ;;  %s8318_s6 = inlined_call_operand.vmem [shape: f32[2,32,96], index: 6, kind: input, shape index: {}]   ;;  %s8319_s7 = inlined_call_operand.vmem [shape: f32[2,32,32], index: 7, kind: input, shape index: {}]   ;;  %s8320_s8 = inlined_call_operand.vmem [shape: f32[2,33,128], index: 8, kind: input, shape index: {}]   ;;  %s8321_s9 = inlined_call_operand.vmem [shape: f32[2,128,32], index: 9, kind: input, shape index: {}]   ;;  %s8322_s10 = inlined_call_operand.vmem [shape: f32[33,16], index: 10, kind: input, shape index: {}]   ;;  %s8323_s11 = inlined_call_operand.hbm [shape: f32[1,2,16], index: 11, kind: output, shape index: {}]  }
   0x1   :  { %v51_v0 = vld [vmem:[%s8315_s3] sm:$0xff]  ;;  %v52_v1 = vld [vmem:[%s8315_s3 + $0x8] sm:$0xff]  ;;  %v53_v2 = vld [vmem:[%s8315_s3 + $0x10] sm:$0xff]  ;;  %5680 = vmatprep.subr.bf16.mxu0 %v6347_v3  ;;  %5009 = vmatprep.mubr.msk.f32.mxu0 %vm6348_vm0, %v6349_v6 }
   0x2   :  { %v5681_v4 = vpack.c.bf16 %v52_v1, %v51_v0  ;;  %v54_v5 = vld [vmem:[%s8315_s3 + $0x18] sm:$0xff]  ;;  %5689 = vmatprep.subr.bf16.mxu1 %v6347_v3  ;;  %5032 = vmatprep.mubr.msk.f32.mxu1 %vm6348_vm0, %v6349_v6  ;;  %v55_v8 = vld [vmem:[%s8315_s3 + $0x20] sm:$0xff]  ;;  %v56_v9 = vld [vmem:[%s8315_s3 + $0x28] sm:$0xff] }
   0x3   :  { %v5684_v7 = vpack.c.bf16 %v54_v5, %v53_v2 }
   0x4   :  { %5682 = vmatpush3.bf16.msra.mxu0 %v5681_v4 }
   0x5   :  { %5683 = vmatprep.subr.bf16.mxu0 %v6347_v3 }
   0x6   :  { %16 = vsyncpa [#allocation3], 0  ;;  %v5687_v10 = vpack.c.bf16 %v56_v9, %v55_v8  ;;  %v46_v11 = vld [vmem:[%s8312_s0] sm:$0xff]  ;;  %vm62_vm1 = vcmask 392192   ;;  %v47_v12 = vld [vmem:[%s8312_s0 + $0x8] sm:$0xff]  ;;  %vm168_vm2 = vcmask 261120  }
   0x7   :  { %v48_v13 = vld [vmem:[%s8312_s0 + $0x10] sm:$0xff]  ;;  %v49_v14 = vld [vmem:[%s8312_s0 + $0x18] sm:$0xff]  ;;  %v50_v15 = vld [vmem:[%s8312_s0 + $0x20] sm:$0x3]  ;;  %vm181_vm3 = vcmask 254976   ;;  %s6350_s17 = smov 96  }
   0x8   :  { %5685 = vmatpush3.bf16.msra.mxu0 %v5684_v7  ;;  %v57_v16 = vld [vmem:[%s8316_s4] sm:$0xff]  ;;  %v58_v20 = vld [vmem:[%s8316_s4 + $0x8] sm:$0xff]  ;;  %v59_v25 = vld [vmem:[%s8316_s4 + $0x10] sm:$0xff]  ;;  %s6351_s18 = smov 88   ;;  %s6352_s19 = smov 80   ;;  %vm383_vm4 = vcmask 64512  }
   0x9   :  { %5686 = vmatprep.subr.bf16.mxu0 %v6347_v3  ;;  %v60_v30 = vld [vmem:[%s8316_s4 + $0x18] sm:$0xff]  ;;  %v61_v35 = vld [vmem:[%s8316_s4 + $0x20] sm:$0x3]  ;;  %v255_v4 = vld [vmem:[%s8318_s6 + $0x8] sm:$0xff]  ;;  %s6353_s20 = smov 120   ;;  %s6354_s21 = smov 72  }
   0xa   :  { %v254_v2 = vld [vmem:[%s8318_s6] sm:$0xff]  ;;  %v256_v7 = vld [vmem:[%s8318_s6 + $0x10] sm:$0xff]  ;;  %v257_v8 = vld [vmem:[%s8318_s6 + $0x18] sm:$0xff]  ;;  %s6355_s22 = smov 112   ;;  %s6356_s0 = smov 104   ;;  %vm585_vm6 = vcmask 1041408  }
   0xb   :  { %v5690_v5 = vpack.c.bf16 %v255_v4, %v254_v2  ;;  %v5693_v9 = vpack.c.bf16 %v257_v8, %v256_v7  ;;  %s6357_s23 = smov 64   ;;  %s6358_s24 = smov 56   ;;  %vm6662_vm5 = vmpackc.low %vm383_vm4, %vm383_vm4  ;;  %vm499_vm7 = vcmask 277504   ;;  %vm512_vm8 = vcmask 271360  }
   0xc   :  { %5688 = vmatpush3.bf16.msra.mxu0 %v5687_v10  ;;  %s6359_s13 = smov 48   ;;  %s6360_s15 = smov 40   ;;  %vm1661_vm9 = vcmask 130048   ;;  %vm1667_vm10 = vcmask 195584  }
   0xd   :  { %5703 = vmatprep.subr.bf16.mxu0 %v6347_v3  ;;  %5691 = vmatpush3.bf16.msra.mxu1 %v5690_v5  ;;  %s6361_s16 = smov 8   ;;  %s6362_s25 = smov 16  }
   0xe   :  { %5692 = vmatprep.subr.bf16.mxu1 %v6347_v3  ;;  %s6363_s14 = smov 24  }
   0xf   :  { %5010 = vmatmul.mubr.msk.f32.vlgmr.msra.gmra.mrb[0].mxu0 %vm62_vm1, %v46_v11 }
  0x10   :  { %5012 = vmatprep.mubr.msk.f32.mxu0 %vm6348_vm0, %v6349_v6 }
  0x11   :  { %5694 = vmatpush3.bf16.msra.mxu1 %v5693_v9 }
  0x12   :  { %5695 = vmatprep.subr.bf16.mxu1 %v6347_v3 }
  0x13   :  { %5013 = vmatmul.mubr.msk.f32.gmra.mrb[2].mxu0 %vm62_vm1, %v47_v12  ;;  %v236_v12 = vlaneseq }
  0x14   :  { %5015 = vmatprep.mubr.msk.f32.mxu0 %vm6348_vm0, %v6349_v6 }
  0x17   :  { %5016 = vmatmul.mubr.msk.f32.gmra.mrb[4].mxu0 %vm62_vm1, %v48_v13 }
  0x18   :  { %5018 = vmatprep.mubr.msk.f32.mxu0 %vm6348_vm0, %v6349_v6 }
  0x1b   :  { %5019 = vmatmul.mubr.msk.f32.gmra.mrb[6].mxu0 %vm62_vm1, %v49_v14 }
  0x1c   :  { %5021 = vmatprep.mubr.msk.f32.mxu0 %vm6348_vm0, %v6349_v6 }
  0x1f   :  { %5022 = vmatmul.mubr.msk.f32.gmra.mrb[8].mxu0 %vm62_vm1, %v50_v15 }
  0x20   :  { %5082 = vmatprep.mubr.msk.f32.mxu0 %vm6348_vm0, %v6349_v6 }
  0xe2   :  { %v144_v17 = vpop.f32.mrb[0].mxu0 }
  0xe3   :  { %v6480_v18 = vadd.f32 %v144_v17, %v57_v16  ;;  %v5011_v19 = vpop.f32.mrb[1].mxu0  ;;  %v6552_v16 = vshrl.u32 %v236_v12, 7 }
  0xe5   :  { %v169_v21 = vsel %vm168_vm2, %v6480_v18, 0.0 }
  0xe6   :  { %170 = vadd.xlane.f32.xlu0 %v169_v21  ;;  %v149_v22 = vpop.f32.mrb[2].mxu0  ;;  %v238_v21 = vsub.s32 0, %v6552_v16 }
  0xe7   :  { %v6487_v23 = vadd.f32 %v149_v22, %v58_v20  ;;  %v5014_v24 = vpop.f32.mrb[3].mxu0 }
  0xe8   :  { %v39_v24 = vld [vmem:[%s8317_s5] sm:$0xff] }
  0xe9   :  { %v172_v26 = vsel %vm168_vm2, %v6487_v23, 0.0 }
  0xea   :  { %173 = vadd.xlane.f32.xlu0 %v172_v26  ;;  %v154_v27 = vpop.f32.mrb[4].mxu0  ;;  %v247_v26 = vsub.s32 1, %v6552_v16 }
  0xeb   :  { %v6494_v28 = vadd.f32 %v154_v27, %v59_v25  ;;  %v5017_v29 = vpop.f32.mrb[5].mxu0 }
  0xec   :  { %v239_v29 = vrot.slane %v39_v24, %v238_v21 }
  0xed   :  { %v175_v31 = vsel %vm168_vm2, %v6494_v28, 0.0 }
  0xee   :  { %176 = vadd.xlane.f32.xlu1 %v175_v31  ;;  %v159_v32 = vpop.f32.mrb[6].mxu0 }
  0xef   :  { %v6501_v33 = vadd.f32 %v159_v32, %v60_v30  ;;  %v5020_v34 = vpop.f32.mrb[7].mxu0 }
  0xf1   :  { %v178_v36 = vsel %vm168_vm2, %v6501_v33, 0.0 }
  0xf2   :  { %179 = vadd.xlane.f32.xlu1 %v178_v36  ;;  %v164_v37 = vpop.f32.mrb[8].mxu0 }
  0xf3   :  { %v6508_v38 = vadd.f32 %v164_v37, %v61_v35  ;;  %v5023_v39 = vpop.f32.mrb[9].mxu0  ;;  %v248_v35 = vrot.slane %v39_v24, %v247_v26 }
  0xf5   :  { %v182_v40 = vsel %vm181_vm3, %v6508_v38, 0.0 }
  0xf6   :  { %183 = vadd.xlane.f32.xlu0 %v182_v40 }
 0x173   :  { %v171_v41 = vpop.xlane.xlu0 %170 }
 0x174   :  { %v186_v42 = vmul.f32 0.03125, %v171_v41 }
 0x176   :  { %v191_v43 = vsub.f32 %v6480_v18, %v186_v42 }
 0x177   :  { %v174_v44 = vpop.xlane.xlu0 %173 }
 0x178   :  { %v187_v45 = vmul.f32 0.03125, %v174_v44  ;;  %v196_v46 = vmul.f32 %v191_v43, %v191_v43 }
 0x17a   :  { %v6514_v47 = vsub.f32 %v6487_v23, %v187_v45  ;;  %v201_v48 = vsel %vm168_vm2, %v196_v46, 0.0 }
 0x17b   :  { %v177_v49 = vpop.xlane.xlu1 %176  ;;  %202 = vadd.xlane.f32.xlu1 %v201_v48 }
 0x17c   :  { %v188_v50 = vmul.f32 0.03125, %v177_v49  ;;  %v197_v51 = vmul.f32 %v6514_v47, %v6514_v47 }
 0x17e   :  { %v6520_v52 = vsub.f32 %v6494_v28, %v188_v50  ;;  %v204_v53 = vsel %vm168_vm2, %v197_v51, 0.0 }
 0x17f   :  { %v180_v54 = vpop.xlane.xlu1 %179  ;;  %205 = vadd.xlane.f32.xlu0 %v204_v53 }
 0x180   :  { %v189_v55 = vmul.f32 0.03125, %v180_v54  ;;  %v198_v56 = vmul.f32 %v6520_v52, %v6520_v52 }
 0x182   :  { %v6526_v57 = vsub.f32 %v6501_v33, %v189_v55  ;;  %v207_v58 = vsel %vm168_vm2, %v198_v56, 0.0 }
 0x183   :  { %208 = vadd.xlane.f32.xlu1 %v207_v58  ;;  %v184_v59 = vpop.xlane.xlu0 %183 }
 0x184   :  { %v190_v60 = vmul.f32 0.03125, %v184_v59  ;;  %v199_v61 = vmul.f32 %v6526_v57, %v6526_v57 }
 0x186   :  { %v6532_v62 = vsub.f32 %v6508_v38, %v190_v60  ;;  %v210_v63 = vsel %vm168_vm2, %v199_v61, 0.0 }
 0x187   :  { %211 = vadd.xlane.f32.xlu0 %v210_v63 }
 0x188   :  { %v200_v0 = vmul.f32 %v6532_v62, %v6532_v62 }
 0x18a   :  { %v213_v1 = vsel %vm181_vm3, %v200_v0, 0.0 }
 0x18b   :  { %214 = vadd.xlane.f32.xlu1 %v213_v1 }
 0x208   :  { %v203_v10 = vpop.xlane.xlu1 %202 }
 0x209   :  { %v216_v11 = vmul.f32 0.03125, %v203_v10 }
 0x20b   :  { %v221_v13 = vadd.f32 1e-05, %v216_v11 }
 0x20c   :  { %v206_v14 = vpop.xlane.xlu0 %205 }
 0x20d   :  { %6075 = vrsqrt.f32 %v221_v13  ;;  %v217_v15 = vmul.f32 0.03125, %v206_v14 }
 0x20f   :  { %v222_v17 = vadd.f32 1e-05, %v217_v15 }
 0x210   :  { %v209_v19 = vpop.xlane.xlu1 %208 }
 0x211   :  { %6077 = vrsqrt.f32 %v222_v17  ;;  %v218_v20 = vmul.f32 0.03125, %v209_v19 }
 0x213   :  { %v223_v22 = vadd.f32 1e-05, %v218_v20 }
 0x214   :  { %v212_v25 = vpop.xlane.xlu0 %211 }
 0x215   :  { %6079 = vrsqrt.f32 %v223_v22  ;;  %v219_v27 = vmul.f32 0.03125, %v212_v25 }
 0x217   :  { %v6076_v30 = vpop.eup %6075  ;;  %v224_v31 = vadd.f32 1e-05, %v219_v27 }
 0x218   :  { %v215_v32 = vpop.xlane.xlu1 %214  ;;  %v231_v34 = vmul.f32 %v6076_v30, %v191_v43 }
 0x219   :  { %6081 = vrsqrt.f32 %v224_v31  ;;  %v220_v36 = vmul.f32 0.03125, %v215_v32 }
 0x21a   :  { %v240_v37 = vmul.f32 %v239_v29, %v231_v34 }
 0x21b   :  { %v6078_v39 = vpop.eup %6077  ;;  %v225_v40 = vadd.f32 1e-05, %v220_v36 }
 0x21c   :  { %v249_v41 = vadd.f32 %v248_v35, %v240_v37  ;;  %v232_v42 = vmul.f32 %v6078_v39, %v6514_v47 }
 0x21d   :  { %6083 = vrsqrt.f32 %v225_v40 }
 0x21e   :  { %5033 = vmatmul.mubr.msk.f32.vlgmr.msra.gmra.mrb[0].mxu1 %vm168_vm2, %v249_v41  ;;  %v241_v44 = vmul.f32 %v239_v29, %v232_v42 }
 0x21f   :  { %v6080_v45 = vpop.eup %6079  ;;  %5035 = vmatprep.mubr.msk.f32.mxu1 %vm6348_vm0, %v6349_v6 }
 0x220   :  { %v250_v43 = vadd.f32 %v248_v35, %v241_v44  ;;  %v233_v46 = vmul.f32 %v6080_v45, %v6520_v52 }
 0x222   :  { %5036 = vmatmul.mubr.msk.f32.gmra.mrb[2].mxu1 %vm168_vm2, %v250_v43  ;;  %v242_v48 = vmul.f32 %v239_v29, %v233_v46 }
 0x223   :  { %v6082_v49 = vpop.eup %6081  ;;  %5038 = vmatprep.mubr.msk.f32.mxu1 %vm6348_vm0, %v6349_v6 }
 0x224   :  { %v251_v50 = vadd.f32 %v248_v35, %v242_v48  ;;  %v234_v47 = vmul.f32 %v6082_v49, %v6526_v57 }
 0x226   :  { %5039 = vmatmul.mubr.msk.f32.gmra.mrb[4].mxu1 %vm168_vm2, %v251_v50  ;;  %v243_v51 = vmul.f32 %v239_v29, %v234_v47 }
 0x227   :  { %v6084_v53 = vpop.eup %6083  ;;  %5041 = vmatprep.mubr.msk.f32.mxu1 %vm6348_vm0, %v6349_v6 }
 0x228   :  { %v252_v54 = vadd.f32 %v248_v35, %v243_v51  ;;  %v235_v52 = vmul.f32 %v6084_v53, %v6532_v62 }
 0x22a   :  { %5042 = vmatmul.mubr.msk.f32.gmra.mrb[6].mxu1 %vm168_vm2, %v252_v54  ;;  %v244_v55 = vmul.f32 %v239_v29, %v235_v52 }
 0x22b   :  { %5044 = vmatprep.mubr.msk.f32.mxu1 %vm6348_vm0, %v6349_v6 }
 0x22c   :  { %v253_v56 = vadd.f32 %v248_v35, %v244_v55 }
 0x22e   :  { %5045 = vmatmul.mubr.msk.f32.gmra.mrb[8].mxu1 %vm168_vm2, %v253_v56 }
 0x22f   :  { %5057 = vmatprep.mubr.msk.f32.mxu1 %vm6348_vm0, %v6349_v6 }
 0x2f1   :  { %v339_v57 = vpop.f32.mrb[0].mxu1 }
 0x2f2   :  { %v5034_v58 = vpop.f32.mrb[1].mxu1  ;;  %v363_v9 = vmul.f32 0.35355338, %v339_v57 }
 0x2f5   :  { %v344_v59 = vpop.f32.mrb[2].mxu1 }
 0x2f6   :  { %v5037_v60 = vpop.f32.mrb[3].mxu1  ;;  %v6582_v61 = vpack.i.bf16 %v344_v59, %v339_v57  ;;  %v6598_v7 = vmul.f32 0.35355338, %v344_v59 }
 0x2f8   :  { %5916 = vrot.lane.b32.xlu0 %v6582_v61, %s6350_s17 }
 0x2f9   :  { %v349_v62 = vpop.f32.mrb[4].mxu1 }
 0x2fa   :  { %v5040_v63 = vpop.f32.mrb[5].mxu1  ;;  %v6604_v8 = vmul.f32 0.35355338, %v349_v62 }
 0x2fd   :  { %v354_v0 = vpop.f32.mrb[6].mxu1 }
 0x2fe   :  { %v5043_v1 = vpop.f32.mrb[7].mxu1  ;;  %v6586_v2 = vpack.i.bf16 %v354_v0, %v349_v62  ;;  %v6620_v11 = vmul.f32 0.35355338, %v354_v0 }
 0x300   :  { %5931 = vrot.lane.b32.xlu0 %v6586_v2, %s6351_s18  ;;  %5921 = vrot.lane.b32.xlu1 %v6586_v2, %s6350_s17 }
 0x301   :  { %v6592_v4 = vpop.f32.mrb[8].mxu1 }
 0x302   :  { %v5046_v5 = vpop.f32.mrb[9].mxu1  ;;  %v6611_v10 = vmul.f32 0.35355338, %v6592_v4 }
 0x304   :  { %5936 = vrot.lane.b32.xlu0 %v6582_v61, %s6352_s19  ;;  %381 = vrot.lane.b32.xlu1 %v6592_v4, %s6350_s17 }
 0x308   :  { %680 = vrot.lane.b32.xlu0 %v6598_v7, %s6353_s20  ;;  %5926 = vrot.lane.b32.xlu1 %v6582_v61, %s6351_s18 }
 0x30c   :  { %682 = vrot.lane.b32.xlu0 %v6604_v8, %s6353_s20  ;;  %696 = vrot.lane.b32.xlu1 %v6592_v4, %s6351_s18 }
 0x310   :  { %678 = vrot.lane.b32.xlu1 %v363_v9, %s6353_s20  ;;  %686 = vrot.lane.b32.xlu0 %v6611_v10, %s6353_s20 }
 0x314   :  { %5941 = vrot.lane.b32.xlu1 %v6586_v2, %s6352_s19  ;;  %5946 = vrot.lane.b32.xlu0 %v6582_v61, %s6354_s21 }
 0x318   :  { %684 = vrot.lane.b32.xlu1 %v6620_v11, %s6353_s20  ;;  %986 = vrot.lane.b32.xlu0 %v6598_v7, %s6355_s22 }
 0x31c   :  { %1002 = vrot.lane.b32.xlu1 %v6592_v4, %s6352_s19  ;;  %988 = vrot.lane.b32.xlu0 %v6604_v8, %s6355_s22 }
 0x320   :  { %984 = vrot.lane.b32.xlu1 %v363_v9, %s6355_s22  ;;  %992 = vrot.lane.b32.xlu0 %v6611_v10, %s6355_s22 }
 0x324   :  { %5951 = vrot.lane.b32.xlu1 %v6586_v2, %s6354_s21  ;;  %1290 = vrot.lane.b32.xlu0 %v363_v9, %s6356_s0 }
 0x328   :  { %990 = vrot.lane.b32.xlu1 %v6620_v11, %s6355_s22  ;;  %1294 = vrot.lane.b32.xlu0 %v6604_v8, %s6356_s0 }
 0x32c   :  { %1308 = vrot.lane.b32.xlu1 %v6592_v4, %s6354_s21  ;;  %1298 = vrot.lane.b32.xlu0 %v6611_v10, %s6356_s0 }
 0x330   :  { %1292 = vrot.lane.b32.xlu1 %v6598_v7, %s6356_s0  ;;  %5956 = vrot.lane.b32.xlu0 %v6582_v61, %s6357_s23 }
 0x334   :  { %1296 = vrot.lane.b32.xlu1 %v6620_v11, %s6356_s0  ;;  %564 = vrot.lane.b32.xlu0 %v6592_v4, %s6357_s23 }
 0x338   :  { %5961 = vrot.lane.b32.xlu1 %v6586_v2, %s6357_s23  ;;  %5971 = vrot.lane.b32.xlu0 %v6586_v2, %s6358_s24 }
 0x33c   :  { %5966 = vrot.lane.b32.xlu1 %v6582_v61, %s6358_s24  ;;  %871 = vrot.lane.b32.xlu0 %v6592_v4, %s6358_s24 }
 0x36a   :  { %v5917_v12 = vpop.permute.xlu0 %5916 }
 0x36b   :  { %v5919_v13 = vunpack.i.h.bf16 %v5917_v12  ;;  %v5918_v14 = vunpack.i.l.bf16 %v5917_v12 }
 0x36d   :  { %v5696_v17 = vpack.c.bf16 %v5919_v13, %v5918_v14 }
 0x36f   :  { %5698 = vmatpush3.bf16.xpose.msk.msra.mxu1 %vm6662_vm5, %v5696_v17 }
 0x370   :  { %5699 = vmatprep.subr.bf16.mxu1 %v6347_v3 }
 0x372   :  { %v5932_v19 = vpop.permute.xlu0 %5931  ;;  %v5922_v20 = vpop.permute.xlu1 %5921 }
 0x373   :  { %v5924_v22 = vunpack.i.h.bf16 %v5922_v20  ;;  %v5923_v24 = vunpack.i.l.bf16 %v5922_v20  ;;  %v5934_v41 = vunpack.i.h.bf16 %v5932_v19  ;;  %v5933_v42 = vunpack.i.l.bf16 %v5932_v19 }
 0x375   :  { %v5700_v25 = vpack.c.bf16 %v5924_v22, %v5923_v24  ;;  %v5714_v43 = vpack.c.bf16 %v5934_v41, %v5933_v42 }
 0x376   :  { %v5937_v27 = vpop.permute.xlu0 %5936  ;;  %v382_v29 = vpop.permute.xlu1 %381 }
 0x377   :  { %5702 = vmatpush3.bf16.xpose.msk.msra.mxu1 %vm6662_vm5, %v5700_v25  ;;  %v5939_v47 = vunpack.i.h.bf16 %v5937_v27  ;;  %v5938_v51 = vunpack.i.l.bf16 %v5937_v27 }
 0x378   :  { %5055 = vmatprep.subr.mxu1 %v6349_v6 }
 0x379   :  { %v5724_v52 = vpack.c.bf16 %v5939_v47, %v5938_v51 }
 0x37a   :  { %v681_v30 = vpop.permute.xlu0 %680  ;;  %v5927_v31 = vpop.permute.xlu1 %5926 }
 0x37b   :  { %v5929_v32 = vunpack.i.h.bf16 %v5927_v31  ;;  %v5928_v34 = vunpack.i.l.bf16 %v5927_v31 }
 0x37d   :  { %v5710_v37 = vpack.c.bf16 %v5929_v32, %v5928_v34  ;;  %v6789_v34 = vld [vmem:[%s8313_s1 + $0x8] sm:$0xff] }
 0x37e   :  { %v683_v35 = vpop.permute.xlu0 %682  ;;  %v697_v36 = vpop.permute.xlu1 %696 }
 0x37f   :  { %5056 = vmatpush3.xpose.msk.msra.mxu1 %vm383_vm4, %v382_v29  ;;  %v6781_v29 = vld [vmem:[%s8313_s1] sm:$0xff] }
 0x380   :  { %5709 = vmatprep.subr.bf16.mxu1 %v6347_v3 }
 0x382   :  { %5058 = vmatmul.mubr.msk.f32.vlgmr.msra.gmra.mrb[10].mxu1 %vm383_vm4, %v363_v9  ;;  %v679_v39 = vpop.permute.xlu1 %678  ;;  %v687_v40 = vpop.permute.xlu0 %686 }
 0x383   :  { %5712 = vmatpush3.bf16.xpose.msk.msra.mxu1 %vm6662_vm5, %v5710_v37  ;;  %5060 = vmatprep.mubr.msk.f32.mxu1 %vm6348_vm0, %v6349_v6 }
 0x384   :  { %5713 = vmatprep.subr.bf16.mxu1 %v6347_v3 }
 0x386   :  { %5061 = vmatmul.mubr.msk.f32.gmra.mrb[12].mxu1 %vm383_vm4, %v6598_v7  ;;  %v5942_v44 = vpop.permute.xlu1 %5941  ;;  %v5947_v45 = vpop.permute.xlu0 %5946 }
 0x387   :  { %5063 = vmatprep.mubr.msk.f32.mxu1 %vm6348_vm0, %v6349_v6  ;;  %v5944_v57 = vunpack.i.h.bf16 %v5942_v44  ;;  %v5943_v58 = vunpack.i.l.bf16 %v5942_v44  ;;  %v5949_v9 = vunpack.i.h.bf16 %v5947_v45 }
 0x389   :  { %v5728_v62 = vpack.c.bf16 %v5944_v57, %v5943_v58 }
 0x38a   :  { %5064 = vmatmul.mubr.msk.f32.gmra.mrb[14].mxu1 %vm383_vm4, %v6604_v8  ;;  %v685_v46 = vpop.permute.xlu1 %684  ;;  %v6686_v48 = vpop.permute.xlu0 %986 }
 0x38b   :  { %5716 = vmatpush3.bf16.xpose.msk.msra.mxu1 %vm6662_vm5, %v5714_v43  ;;  %5066 = vmatprep.mubr.msk.f32.mxu1 %vm6348_vm0, %v6349_v6  ;;  %v6809_v43 = vld [vmem:[%s8313_s1 + $0x18] sm:$0xff] }
 0x38c   :  { %5105 = vmatprep.subr.mxu1 %v6349_v6 }
 0x38e   :  { %5067 = vmatmul.mubr.msk.f32.gmra.mrb[16].mxu1 %vm383_vm4, %v6620_v11  ;;  %v1003_v49 = vpop.permute.xlu1 %1002  ;;  %v6695_v50 = vpop.permute.xlu0 %988 }
 0x38f   :  { %5069 = vmatprep.mubr.msk.f32.mxu1 %vm6348_vm0, %v6349_v6 }
 0x392   :  { %v985_v53 = vpop.permute.xlu1 %984  ;;  %v6699_v54 = vpop.permute.xlu0 %992  ;;  %5070 = vmatmul.mubr.msk.f32.gmra.mrb[18].mxu1 %vm383_vm4, %v6611_v10  ;;  %v5948_v10 = vunpack.i.l.bf16 %v5947_v45 }
 0x393   :  { %5106 = vmatpush3.xpose.msk.msra.mxu1 %vm383_vm4, %v697_v36  ;;  %5107 = vmatprep.mubr.msk.f32.mxu1 %vm6348_vm0, %v6349_v6 }
 0x394   :  { %5723 = vmatprep.subr.bf16.mxu1 %v6347_v3  ;;  %v5738_v13 = vpack.c.bf16 %v5949_v9, %v5948_v10  ;;  %v45_v9 = vld [vmem:[%s8313_s1 + $0x20] sm:$0x3] }
 0x396   :  { %v5952_v55 = vpop.permute.xlu1 %5951  ;;  %v6707_v56 = vpop.permute.xlu0 %1290  ;;  %5108 = vmatmul.mubr.msk.f32.vlgmr.msra.gmra.mrb[20].mxu1 %vm383_vm4, %v679_v39 }
 0x397   :  { %5726 = vmatpush3.bf16.xpose.msk.msra.mxu1 %vm6662_vm5, %v5724_v52  ;;  %5110 = vmatprep.mubr.msk.f32.mxu1 %vm6348_vm0, %v6349_v6  ;;  %v5954_v20 = vunpack.i.h.bf16 %v5952_v55  ;;  %v5953_v22 = vunpack.i.l.bf16 %v5952_v55 }
 0x398   :  { %5727 = vmatprep.subr.bf16.mxu1 %v6347_v3 }
 0x399   :  { %v5742_v25 = vpack.c.bf16 %v5954_v20, %v5953_v22 }
 0x39a   :  { %v991_v59 = vpop.permute.xlu1 %990  ;;  %v1295_v60 = vpop.permute.xlu0 %1294  ;;  %5111 = vmatmul.mubr.msk.f32.gmra.mrb[22].mxu1 %vm383_vm4, %v681_v30 }
 0x39b   :  { %5113 = vmatprep.mubr.msk.f32.mxu1 %vm6348_vm0, %v6349_v6 }
 0x39e   :  { %v1309_v63 = vpop.permute.xlu1 %1308  ;;  %v1299_v0 = vpop.permute.xlu0 %1298  ;;  %5114 = vmatmul.mubr.msk.f32.gmra.mrb[24].mxu1 %vm383_vm4, %v683_v35 }
 0x39f   :  { %5730 = vmatpush3.bf16.xpose.msk.msra.mxu1 %vm6662_vm5, %v5728_v62  ;;  %5116 = vmatprep.mubr.msk.f32.mxu1 %vm6348_vm0, %v6349_v6 }
 0x3a0   :  { %5155 = vmatprep.subr.mxu1 %v6349_v6 }
 0x3a2   :  { %v1293_v1 = vpop.permute.xlu1 %1292  ;;  %v5957_v5 = vpop.permute.xlu0 %5956  ;;  %5117 = vmatmul.mubr.msk.f32.gmra.mrb[26].mxu1 %vm383_vm4, %v685_v46 }
 0x3a3   :  { %v5959_v7 = vunpack.i.h.bf16 %v5957_v5  ;;  %v5958_v8 = vunpack.i.l.bf16 %v5957_v5  ;;  %5119 = vmatprep.mubr.msk.f32.mxu1 %vm6348_vm0, %v6349_v6 }
 0x3a5   :  { %v5704_v11 = vpack.c.bf16 %v5959_v7, %v5958_v8 }
 0x3a6   :  { %v1297_v12 = vpop.permute.xlu1 %1296  ;;  %5120 = vmatmul.mubr.msk.f32.gmra.mrb[28].mxu1 %vm383_vm4, %v687_v40  ;;  %v565_v27 = vpop.permute.xlu0 %564  ;;  %v6799_v40 = vld [vmem:[%s8313_s1 + $0x10] sm:$0xff] }
 0x3a7   :  { %5705 = vmatpush3.bf16.msra.mxu0 %v5704_v11  ;;  %5156 = vmatpush3.xpose.msk.msra.mxu1 %vm383_vm4, %v1003_v49 }
 0x3a8   :  { %5157 = vmatprep.mubr.msk.f32.mxu1 %vm6348_vm0, %v6349_v6  ;;  %5737 = vmatprep.subr.bf16.mxu1 %v6347_v3 }
 0x3a9   :  { %5706 = vmatprep.subr.bf16.mxu0 %v6347_v3 }
 0x3aa   :  { %v5962_v14 = vpop.permute.xlu1 %5961  ;;  %5158 = vmatmul.mubr.msk.f32.vlgmr.msra.gmra.mrb[30].mxu1 %vm383_vm4, %v985_v53 }
 0x3ab   :  { %v5964_v17 = vunpack.i.h.bf16 %v5962_v14  ;;  %v5963_v19 = vunpack.i.l.bf16 %v5962_v14  ;;  %5740 = vmatpush3.bf16.xpose.msk.msra.mxu1 %vm6662_vm5, %v5738_v13  ;;  %5160 = vmatprep.mubr.msk.f32.mxu1 %vm6348_vm0, %v6349_v6 }
 0x3ac   :  { %5741 = vmatprep.subr.bf16.mxu1 %v6347_v3 }
 0x3ad   :  { %v5707_v24 = vpack.c.bf16 %v5964_v17, %v5963_v19 }
 0x3ae   :  { %5161 = vmatmul.mubr.msk.f32.gmra.mrb[32].mxu1 %vm383_vm4, %v6686_v48 }
 0x3af   :  { %5708 = vmatpush3.bf16.msra.mxu0 %v5707_v24  ;;  %5163 = vmatprep.mubr.msk.f32.mxu1 %vm6348_vm0, %v6349_v6 }
 0x3b0   :  { %5080 = vmatprep.subr.mxu0 %v6349_v6 }
 0x3b2   :  { %5164 = vmatmul.mubr.msk.f32.gmra.mrb[34].mxu1 %vm383_vm4, %v6695_v50 }
 0x3b3   :  { %5081 = vmatpush3.msk.msra.mxu0 %vm585_vm6, %v565_v27  ;;  %5744 = vmatpush3.bf16.xpose.msk.msra.mxu1 %vm6662_vm5, %v5742_v25 }
 0x3b4   :  { %5166 = vmatprep.mubr.msk.f32.mxu1 %vm6348_vm0, %v6349_v6  ;;  %5205 = vmatprep.subr.mxu1 %v6349_v6 }
 0x3b5   :  { %5717 = vmatprep.subr.bf16.mxu0 %v6347_v3 }
 0x3b6   :  { %5167 = vmatmul.mubr.msk.f32.gmra.mrb[36].mxu1 %vm383_vm4, %v991_v59 }
 0x3b7   :  { %5169 = vmatprep.mubr.msk.f32.mxu1 %vm6348_vm0, %v6349_v6 }
 0x3ba   :  { %5170 = vmatmul.mubr.msk.f32.gmra.mrb[38].mxu1 %vm383_vm4, %v6699_v54 }
 0x3bb   :  { %5206 = vmatpush3.xpose.msk.msra.mxu1 %vm383_vm4, %v1309_v63  ;;  %5207 = vmatprep.mubr.msk.f32.mxu1 %vm6348_vm0, %v6349_v6 }
 0x3bc   :  { %5751 = vmatprep.subr.bf16.mxu1 %v6347_v3 }
 0x3be   :  { %5208 = vmatmul.mubr.msk.f32.vlgmr.msra.gmra.mrb[40].mxu1 %vm383_vm4, %v6707_v56 }
 0x3bf   :  { %5210 = vmatprep.mubr.msk.f32.mxu1 %vm6348_vm0, %v6349_v6 }
 0x3c2   :  { %5211 = vmatmul.mubr.msk.f32.gmra.mrb[42].mxu1 %vm383_vm4, %v1293_v1 }
 0x3c3   :  { %5213 = vmatprep.mubr.msk.f32.mxu1 %vm6348_vm0, %v6349_v6 }
 0x3c6   :  { %5214 = vmatmul.mubr.msk.f32.gmra.mrb[44].mxu1 %vm383_vm4, %v1295_v60 }
 0x3c7   :  { %5216 = vmatprep.mubr.msk.f32.mxu1 %vm6348_vm0, %v6349_v6 }
 0x3ca   :  { %5217 = vmatmul.mubr.msk.f32.gmra.mrb[46].mxu1 %vm383_vm4, %v1297_v12 }
 0x3cb   :  { %5219 = vmatprep.mubr.msk.f32.mxu1 %vm6348_vm0, %v6349_v6 }
 0x3ce   :  { %5220 = vmatmul.mubr.msk.f32.gmra.mrb[48].mxu1 %vm383_vm4, %v1299_v0 }
 0x3cf   :  { %5255 = vmatprep.mubr.msk.f32.mxu1 %vm6348_vm0, %v6349_v6 }
 0x455   :  { %v475_v30 = vpop.f32.mrb[10].mxu1 }
 0x456   :  { %v6784_v31 = vadd.f32 %v475_v30, %v6781_v29  ;;  %v5059_v32 = vpop.f32.mrb[11].mxu1 }
 0x458   :  { %v500_v35 = vsel %vm499_vm7, %v6784_v31, -inf }
 0x459   :  { %501 = vmax.xlane.f32.xlu1 %v500_v35  ;;  %v480_v36 = vpop.f32.mrb[12].mxu1 }
 0x45a   :  { %v6794_v37 = vadd.f32 %v480_v36, %v6789_v34  ;;  %v5062_v39 = vpop.f32.mrb[13].mxu1 }
 0x45c   :  { %v503_v41 = vsel %vm499_vm7, %v6794_v37, -inf }
 0x45d   :  { %504 = vmax.xlane.f32.xlu0 %v503_v41  ;;  %v485_v42 = vpop.f32.mrb[14].mxu1 }
 0x45e   :  { %v6804_v44 = vadd.f32 %v485_v42, %v6799_v40  ;;  %v5065_v45 = vpop.f32.mrb[15].mxu1 }
 0x460   :  { %v506_v46 = vsel %vm499_vm7, %v6804_v44, -inf }
 0x461   :  { %507 = vmax.xlane.f32.xlu0 %v506_v46  ;;  %v490_v48 = vpop.f32.mrb[16].mxu1 }
 0x462   :  { %v6814_v49 = vadd.f32 %v490_v48, %v6809_v43  ;;  %v5068_v50 = vpop.f32.mrb[17].mxu1 }
 0x464   :  { %v509_v47 = vsel %vm499_vm7, %v6814_v49, -inf }
 0x465   :  { %510 = vmax.xlane.f32.xlu0 %v509_v47  ;;  %v495_v51 = vpop.f32.mrb[18].mxu1 }
 0x466   :  { %v5071_v53 = vpop.f32.mrb[19].mxu1  ;;  %v6825_v11 = vadd.f32 %v495_v51, %v45_v9 }
 0x468   :  { %v513_v19 = vsel %vm512_vm8, %v6825_v11, -inf }
 0x469   :  { %v784_v54 = vpop.f32.mrb[20].mxu1 }
 0x46a   :  { %5976 = vrot.lane.b32.xlu1 %v6582_v61, %s6359_s13  ;;  %v5109_v52 = vpop.f32.mrb[21].mxu1  ;;  %v6838_v30 = vadd.f32 %v784_v54, %v6781_v29 }
 0x46c   :  { %v808_v46 = vsel %vm499_vm7, %v6838_v30, -inf }
 0x46d   :  { %v789_v55 = vpop.f32.mrb[22].mxu1 }
 0x46e   :  { %v5112_v56 = vpop.f32.mrb[23].mxu1  ;;  %v6828_v14 = vadd.f32 %v789_v55, %v6789_v34 }
 0x470   :  { %v811_v25 = vsel %vm499_vm7, %v6828_v14, -inf }
 0x471   :  { %v794_v57 = vpop.f32.mrb[24].mxu1 }
 0x472   :  { %v5115_v58 = vpop.f32.mrb[25].mxu1  ;;  %v6846_v41 = vadd.f32 %v794_v57, %v6799_v40 }
 0x474   :  { %v814_v54 = vsel %vm499_vm7, %v6846_v41, -inf }
 0x475   :  { %v799_v59 = vpop.f32.mrb[26].mxu1 }
 0x476   :  { %v5118_v60 = vpop.f32.mrb[27].mxu1  ;;  %v6833_v22 = vadd.f32 %v799_v59, %v6809_v43 }
 0x478   :  { %v817_v36 = vsel %vm499_vm7, %v6833_v22, -inf }
 0x479   :  { %v804_v62 = vpop.f32.mrb[28].mxu1 }
 0x47a   :  { %v5121_v63 = vpop.f32.mrb[29].mxu1  ;;  %v6855_v47 = vadd.f32 %v804_v62, %v45_v9 }
 0x47b   :  { %5981 = vrot.lane.b32.xlu0 %v6586_v2, %s6359_s13 }
 0x47c   :  { %v820_v59 = vsel %vm512_vm8, %v6855_v47, -inf }
 0x47d   :  { %v1090_v0 = vpop.f32.mrb[30].mxu1 }
 0x47e   :  { %v5159_v1 = vpop.f32.mrb[31].mxu1  ;;  %v6841_v32 = vadd.f32 %v1090_v0, %v6781_v29 }
 0x480   :  { %v1114_v48 = vsel %vm499_vm7, %v6841_v32, -inf }
 0x481   :  { %v1095_v5 = vpop.f32.mrb[32].mxu1 }
 0x482   :  { %v5162_v7 = vpop.f32.mrb[33].mxu1  ;;  %v6864_v56 = vadd.f32 %v1095_v5, %v6789_v34 }
 0x485   :  { %v1100_v8 = vpop.f32.mrb[34].mxu1 }
 0x486   :  { %v5165_v10 = vpop.f32.mrb[35].mxu1  ;;  %v6849_v42 = vadd.f32 %v1100_v8, %v6799_v40 }
 0x488   :  { %v1120_v52 = vsel %vm499_vm7, %v6849_v42, -inf }
 0x489   :  { %v1105_v12 = vpop.f32.mrb[36].mxu1 }
 0x48a   :  { %v5168_v13 = vpop.f32.mrb[37].mxu1  ;;  %v6874_v63 = vadd.f32 %v1105_v12, %v6809_v43 }
 0x48c   :  { %v1123_v7 = vsel %vm499_vm7, %v6874_v63, -inf }
 0x48d   :  { %v1110_v17 = vpop.f32.mrb[38].mxu1 }
 0x48e   :  { %514 = vmax.xlane.f32.xlu1 %v513_v19  ;;  %v5171_v20 = vpop.f32.mrb[39].mxu1  ;;  %v6857_v51 = vadd.f32 %v1110_v17, %v45_v9  ;;  %v6901_v17 = vpop.permute.xlu0 %5971 }
 0x48f   :  { %v6903_v19 = vpop.permute.xlu1 %5966 }
 0x490   :  { %v1126_v60 = vsel %vm512_vm8, %v6857_v51, -inf }
 0x491   :  { %v1396_v24 = vpop.f32.mrb[40].mxu1 }
 0x492   :  { %812 = vmax.xlane.f32.xlu1 %v811_v25  ;;  %v5209_v27 = vpop.f32.mrb[41].mxu1  ;;  %v6884_v5 = vadd.f32 %v1396_v24, %v6781_v29 }
 0x494   :  { %v1420_v10 = vsel %vm499_vm7, %v6884_v5, -inf }
 0x495   :  { %v1401_v35 = vpop.f32.mrb[42].mxu1 }
 0x496   :  { %818 = vmax.xlane.f32.xlu1 %v817_v36  ;;  %v5212_v39 = vpop.f32.mrb[43].mxu1  ;;  %v6867_v57 = vadd.f32 %v1401_v35, %v6789_v34  ;;  %v1117_v34 = vsel %vm499_vm7, %v6864_v56, -inf }
 0x498   :  { %v1423_v1 = vsel %vm499_vm7, %v6867_v57, -inf }
 0x499   :  { %v1406_v45 = vpop.f32.mrb[44].mxu1 }
 0x49a   :  { %809 = vmax.xlane.f32.xlu0 %v808_v46  ;;  %1115 = vmax.xlane.f32.xlu1 %v1114_v48  ;;  %v5215_v50 = vpop.f32.mrb[45].mxu1 }
 0x49d   :  { %v1411_v53 = vpop.f32.mrb[46].mxu1 }
 0x49e   :  { %815 = vmax.xlane.f32.xlu0 %v814_v54  ;;  %1121 = vmax.xlane.f32.xlu1 %v1120_v52  ;;  %v5218_v55 = vpop.f32.mrb[47].mxu1  ;;  %v6877_v0 = vadd.f32 %v1411_v53, %v6809_v43  ;;  %v6891_v43 = vadd.f32 %v1406_v45, %v6799_v40  ;;  %v6905_v40 = vpop.permute.xlu0 %871 }
 0x4a0   :  { %v1429_v8 = vsel %vm499_vm7, %v6877_v0, -inf  ;;  %v1426_v29 = vsel %vm499_vm7, %v6891_v43, -inf }
 0x4a1   :  { %v1416_v58 = vpop.f32.mrb[48].mxu1 }
 0x4a2   :  { %821 = vmax.xlane.f32.xlu0 %v820_v59  ;;  %1127 = vmax.xlane.f32.xlu1 %v1126_v60  ;;  %v5221_v62 = vpop.f32.mrb[49].mxu1  ;;  %v6895_v12 = vadd.f32 %v1416_v58, %v45_v9 }
 0x4a4   :  { %v1432_v13 = vsel %vm512_vm8, %v6895_v12, -inf }
 0x4a6   :  { %1118 = vmax.xlane.f32.xlu0 %v1117_v34  ;;  %1424 = vmax.xlane.f32.xlu1 %v1423_v1 }
 0x4aa   :  { %1124 = vmax.xlane.f32.xlu0 %v1123_v7  ;;  %1430 = vmax.xlane.f32.xlu1 %v1429_v8 }
 0x4ae   :  { %1421 = vmax.xlane.f32.xlu0 %v1420_v10 }
 0x4b2   :  { %1427 = vmax.xlane.f32.xlu0 %v1426_v29 }
 0x4b6   :  { %1433 = vmax.xlane.f32.xlu0 %v1432_v13 }
 0x4e6   :  { %v502_v20 = vpop.xlane.xlu1 %501 }
 0x4e7   :  { %v516_v24 = vsub.f32 %v6784_v31, %v502_v20 }
 0x4e9   :  { %v521_v25 = vmul.f32 1.442695, %v516_v24 }
 0x4ea   :  { %v505_v9 = vpop.xlane.xlu0 %504  ;;  %v6927_v58 = vpop.permute.xlu1 %5976 }
 0x4eb   :  { %6085 = vpow2.f32 %v521_v25  ;;  %v517_v27 = vsub.f32 %v6794_v37, %v505_v9 }
 0x4ed   :  { %v523_v35 = vmul.f32 1.442695, %v517_v27 }
 0x4ee   :  { %v508_v36 = vpop.xlane.xlu0 %507 }
 0x4ef   :  { %6087 = vpow2.f32 %v523_v35  ;;  %v518_v39 = vsub.f32 %v6804_v44, %v508_v36 }
 0x4f1   :  { %v525_v45 = vmul.f32 1.442695, %v518_v39 }
 0x4f2   :  { %v511_v46 = vpop.xlane.xlu0 %510 }
 0x4f3   :  { %6089 = vpow2.f32 %v525_v45  ;;  %v519_v48 = vsub.f32 %v6814_v49, %v511_v46 }
 0x4f5   :  { %v6911_v50 = vpop.eup %6085  ;;  %v527_v53 = vmul.f32 1.442695, %v519_v48 }
 0x4f6   :  { %v531_v31 = vsel %vm499_vm7, %v6911_v50, 0.0  ;;  %v6933_v7 = vpop.permute.xlu0 %5981 }
 0x4f7   :  { %6091 = vpow2.f32 %v527_v53  ;;  %532 = vadd.xlane.f32.xlu1 %v531_v31 }
 0x4f9   :  { %v6915_v54 = vpop.eup %6087 }
 0x4fa   :  { %v534_v37 = vsel %vm499_vm7, %v6915_v54, 0.0 }
 0x4fb   :  { %535 = vadd.xlane.f32.xlu0 %v534_v37 }
 0x4fd   :  { %v6919_v44 = vpop.eup %6089 }
 0x4fe   :  { %v537_v52 = vsel %vm499_vm7, %v6919_v44, 0.0 }
 0x4ff   :  { %538 = vadd.xlane.f32.xlu1 %v537_v52 }
 0x501   :  { %v6923_v49 = vpop.eup %6091 }
 0x502   :  { %v540_v55 = vsel %vm499_vm7, %v6923_v49, 0.0 }
 0x503   :  { %541 = vadd.xlane.f32.xlu0 %v540_v55 }
 0x519   :  { %1177 = vrot.lane.b32.xlu0 %v6592_v4, %s6359_s13 }
 0x51b   :  { %v515_v59 = vpop.xlane.xlu1 %514 }
 0x51c   :  { %v520_v60 = vsub.f32 %v6825_v11, %v515_v59 }
 0x51e   :  { %v529_v62 = vmul.f32 1.442695, %v520_v60 }
 0x51f   :  { %v813_v34 = vpop.xlane.xlu1 %812 }
 0x520   :  { %6093 = vpow2.f32 %v529_v62  ;;  %v824_v1 = vsub.f32 %v6828_v14, %v813_v34 }
 0x522   :  { %v830_v10 = vmul.f32 1.442695, %v824_v1 }
 0x523   :  { %v819_v8 = vpop.xlane.xlu1 %818 }
 0x524   :  { %6095 = vpow2.f32 %v830_v10  ;;  %v826_v11 = vsub.f32 %v6833_v22, %v819_v8 }
 0x526   :  { %v834_v39 = vmul.f32 1.442695, %v826_v11 }
 0x527   :  { %v810_v29 = vpop.xlane.xlu0 %809  ;;  %v1116_v13 = vpop.xlane.xlu1 %1115 }
 0x528   :  { %v823_v20 = vsub.f32 %v6838_v30, %v810_v29  ;;  %v1129_v24 = vsub.f32 %v6841_v32, %v1116_v13 }
 0x52a   :  { %v6937_v25 = vpop.eup %6093  ;;  %v828_v9 = vmul.f32 1.442695, %v823_v20  ;;  %v1134_v27 = vmul.f32 1.442695, %v1129_v24 }
 0x52b   :  { %v816_v35 = vpop.xlane.xlu0 %815  ;;  %v543_v14 = vsel %vm512_vm8, %v6937_v25, 0.0  ;;  %v1122_v22 = vpop.xlane.xlu1 %1121 }
 0x52c   :  { %6097 = vpow2.f32 %v828_v9  ;;  %v825_v36 = vsub.f32 %v6846_v41, %v816_v35  ;;  %544 = vadd.xlane.f32.xlu1 %v543_v14  ;;  %v1131_v41 = vsub.f32 %v6849_v42, %v1122_v22 }
 0x52d   :  { %6099 = vpow2.f32 %v1134_v27 }
 0x52e   :  { %v832_v30 = vmul.f32 1.442695, %v825_v36  ;;  %v6944_v53 = vpop.eup %6095 }
 0x52f   :  { %v822_v45 = vpop.xlane.xlu0 %821  ;;  %v1128_v42 = vpop.xlane.xlu1 %1127 }
 0x530   :  { %6101 = vpow2.f32 %v832_v30  ;;  %v827_v32 = vsub.f32 %v6855_v47, %v822_v45  ;;  %v841_v47 = vsel %vm499_vm7, %v6944_v53, 0.0  ;;  %v1133_v20 = vsub.f32 %v6857_v51, %v1128_v42 }
 0x531   :  { %6103 = vpow2.f32 %v834_v39 }
 0x532   :  { %v836_v46 = vmul.f32 1.442695, %v827_v32  ;;  %v1142_v27 = vmul.f32 1.442695, %v1133_v20 }
 0x533   :  { %v1119_v48 = vpop.xlane.xlu0 %1118 }
 0x534   :  { %v1130_v31 = vsub.f32 %v6864_v56, %v1119_v48  ;;  %6105 = vpow2.f32 %v836_v46  ;;  %v1138_v56 = vmul.f32 1.442695, %v1131_v41 }
 0x536   :  { %v6947_v37 = vpop.eup %6097  ;;  %v1136_v52 = vmul.f32 1.442695, %v1130_v31 }
 0x537   :  { %v1125_v55 = vpop.xlane.xlu0 %1124  ;;  %v838_v59 = vsel %vm499_vm7, %v6947_v37, 0.0  ;;  %v6954_v60 = vpop.eup %6099 }
 0x538   :  { %839 = vadd.xlane.f32.xlu1 %v838_v59  ;;  %842 = vadd.xlane.f32.xlu0 %v841_v47  ;;  %6107 = vpow2.f32 %v1136_v52  ;;  %v1132_v34 = vsub.f32 %v6874_v63, %v1125_v55  ;;  %v1144_v10 = vsel %vm499_vm7, %v6954_v60, 0.0  ;;  %v1425_v55 = vpop.xlane.xlu1 %1424 }
 0x539   :  { %6109 = vpow2.f32 %v1138_v56  ;;  %v1436_v59 = vsub.f32 %v6867_v57, %v1425_v55 }
 0x53a   :  { %v6956_v62 = vpop.eup %6101  ;;  %v1140_v24 = vmul.f32 1.442695, %v1132_v34 }
 0x53b   :  { %v1422_v1 = vpop.xlane.xlu0 %1421  ;;  %v844_v8 = vsel %vm499_vm7, %v6956_v62, 0.0  ;;  %v6963_v29 = vpop.eup %6103  ;;  %v1442_v47 = vmul.f32 1.442695, %v1436_v59 }
 0x53c   :  { %v1435_v13 = vsub.f32 %v6884_v5, %v1422_v1  ;;  %845 = vadd.xlane.f32.xlu1 %v844_v8  ;;  %1145 = vadd.xlane.f32.xlu0 %v1144_v10  ;;  %v847_v63 = vsel %vm499_vm7, %v6963_v29, 0.0  ;;  %v1431_v34 = vpop.xlane.xlu1 %1430 }
 0x53d   :  { %v1438_v42 = vsub.f32 %v6877_v0, %v1431_v34  ;;  %v5978_v34 = vunpack.i.l.bf16 %v6927_v58 }
 0x53e   :  { %v1440_v11 = vmul.f32 1.442695, %v1435_v13  ;;  %v6969_v9 = vpop.eup %6105 }
 0x53f   :  { %v850_v35 = vsel %vm512_vm8, %v6969_v9, 0.0  ;;  %v1428_v48 = vpop.xlane.xlu0 %1427  ;;  %v1446_v8 = vmul.f32 1.442695, %v1438_v42 }
 0x540   :  { %6111 = vpow2.f32 %v1440_v11  ;;  %848 = vadd.xlane.f32.xlu1 %v847_v63  ;;  %v1437_v56 = vsub.f32 %v6891_v43, %v1428_v48  ;;  %v5969_v11 = vunpack.i.h.bf16 %v6903_v19  ;;  %v5968_v63 = vunpack.i.l.bf16 %v6903_v19 }
 0x541   :  { %6113 = vpow2.f32 %v1140_v24 }
 0x542   :  { %v6973_v5 = vpop.eup %6107  ;;  %6115 = vpow2.f32 %v1142_v27  ;;  %v1444_v1 = vmul.f32 1.442695, %v1437_v56 }
 0x543   :  { %v1147_v51 = vsel %vm499_vm7, %v6973_v5, 0.0  ;;  %v6977_v14 = vpop.eup %6109  ;;  %v1434_v31 = vpop.xlane.xlu0 %1433 }
 0x544   :  { %851 = vadd.xlane.f32.xlu1 %v850_v35  ;;  %v1150_v39 = vsel %vm499_vm7, %v6977_v14, 0.0  ;;  %v1439_v41 = vsub.f32 %v6895_v12, %v1434_v31 }
 0x546   :  { %v1448_v52 = vmul.f32 1.442695, %v1439_v41 }
 0x548   :  { %1148 = vadd.xlane.f32.xlu1 %v1147_v51  ;;  %6117 = vpow2.f32 %v1448_v52 }
 0x549   :  { %6119 = vpow2.f32 %v1442_v47 }
 0x54a   :  { %v6979_v36 = vpop.eup %6111  ;;  %6121 = vpow2.f32 %v1444_v1 }
 0x54b   :  { %v1450_v30 = vsel %vm499_vm7, %v6979_v36, 0.0  ;;  %v6985_v45 = vpop.eup %6113  ;;  %6123 = vpow2.f32 %v1446_v8 }
 0x54c   :  { %1151 = vadd.xlane.f32.xlu1 %v1150_v39  ;;  %1451 = vadd.xlane.f32.xlu0 %v1450_v30  ;;  %v1153_v32 = vsel %vm499_vm7, %v6985_v45, 0.0  ;;  %v6989_v46 = vpop.eup %6115  ;;  %v5974_v30 = vunpack.i.h.bf16 %v6901_v17 }
 0x54d   :  { %v1156_v22 = vsel %vm512_vm8, %v6989_v46, 0.0 }
 0x550   :  { %1154 = vadd.xlane.f32.xlu1 %v1153_v32  ;;  %v5973_v32 = vunpack.i.l.bf16 %v6901_v17 }
 0x554   :  { %1157 = vadd.xlane.f32.xlu1 %v1156_v22  ;;  %v5718_v22 = vpack.c.bf16 %v5969_v11, %v5968_v63 }
 0x562   :  { %5986 = vrot.lane.b32.xlu0 %v6582_v61, %s6360_s15  ;;  %v7001_v61 = vpop.eup %6117 }
 0x563   :  { %v7005_v57 = vpop.eup %6119 }
 0x564   :  { %v1453_v43 = vsel %vm499_vm7, %v7005_v57, 0.0  ;;  %v7009_v13 = vpop.eup %6121 }
 0x565   :  { %5991 = vrot.lane.b32.xlu1 %v6586_v2, %s6360_s15  ;;  %v1462_v2 = vsel %vm512_vm8, %v7001_v61, 0.0  ;;  %v1456_v20 = vsel %vm499_vm7, %v7009_v13, 0.0  ;;  %v7013_v24 = vpop.eup %6123 }
 0x566   :  { %v1459_v39 = vsel %vm499_vm7, %v7013_v24, 0.0 }
 0x581   :  { %1463 = vadd.xlane.f32.xlu0 %v1462_v2 }
 0x584   :  { %v533_v12 = vpop.xlane.xlu1 %532 }
 0x585   :  { %6125 = vrcp.f32 %v533_v12  ;;  %v5984_v12 = vunpack.i.h.bf16 %v6933_v7 }
 0x588   :  { %v536_v10 = vpop.xlane.xlu0 %535 }
 0x589   :  { %6127 = vrcp.f32 %v536_v10  ;;  %1454 = vadd.xlane.f32.xlu1 %v1453_v43  ;;  %v5983_v10 = vunpack.i.l.bf16 %v6933_v7 }
 0x58c   :  { %v539_v0 = vpop.xlane.xlu1 %538 }
 0x58d   :  { %6129 = vrcp.f32 %v539_v0  ;;  %1457 = vadd.xlane.f32.xlu1 %v1456_v20  ;;  %v5735_v20 = vpack.c.bf16 %v5984_v12, %v5983_v10 }
 0x58f   :  { %v6126_v27 = vpop.eup %6125 }
 0x590   :  { %v551_v35 = vmul.f32 %v6126_v27, %v6911_v50  ;;  %v542_v51 = vpop.xlane.xlu0 %541  ;;  %v5721_v50 = vpack.c.bf16 %v5974_v30, %v5973_v32 }
 0x591   :  { %6131 = vrcp.f32 %v542_v51  ;;  %1460 = vadd.xlane.f32.xlu1 %v1459_v39 }
 0x592   :  { %5083 = vmatmul.mubr.msk.f32.vlgmr.msra.gmra.mrb[10].mxu0 %vm499_vm7, %v551_v35 }
 0x593   :  { %v6128_v48 = vpop.eup %6127  ;;  %5719 = vmatpush3.bf16.msra.mxu0 %v5718_v22  ;;  %5085 = vmatprep.mubr.msk.f32.mxu0 %vm6348_vm0, %v6349_v6 }
 0x594   :  { %5720 = vmatprep.subr.bf16.mxu0 %v6347_v3  ;;  %v552_v19 = vmul.f32 %v6128_v48, %v6915_v54  ;;  %v1178_v52 = vpop.permute.xlu0 %1177 }
 0x596   :  { %5086 = vmatmul.mubr.msk.f32.gmra.mrb[12].mxu0 %vm499_vm7, %v552_v19 }
 0x597   :  { %v6130_v31 = vpop.eup %6129  ;;  %5722 = vmatpush3.bf16.msra.mxu0 %v5721_v50  ;;  %5088 = vmatprep.mubr.msk.f32.mxu0 %vm6348_vm0, %v6349_v6 }
 0x598   :  { %5130 = vmatprep.subr.mxu0 %v6349_v6  ;;  %v553_v17 = vmul.f32 %v6130_v31, %v6919_v44 }
 0x59a   :  { %5089 = vmatmul.mubr.msk.f32.gmra.mrb[14].mxu0 %vm499_vm7, %v553_v17 }
 0x59b   :  { %v6132_v41 = vpop.eup %6131  ;;  %5131 = vmatpush3.msk.msra.mxu0 %vm585_vm6, %v6905_v40  ;;  %5091 = vmatprep.mubr.msk.f32.mxu0 %vm6348_vm0, %v6349_v6 }
 0x59c   :  { %v554_v54 = vmul.f32 %v6132_v41, %v6923_v49  ;;  %5731 = vmatprep.subr.bf16.mxu0 %v6347_v3 }
 0x59e   :  { %5092 = vmatmul.mubr.msk.f32.gmra.mrb[16].mxu0 %vm499_vm7, %v554_v54 }
 0x59f   :  { %5094 = vmatprep.mubr.msk.f32.mxu0 %vm6348_vm0, %v6349_v6 }
 0x5a2   :  { %1483 = vrot.lane.b32.xlu1 %v6592_v4, %s6360_s15  ;;  %v5979_v4 = vunpack.i.h.bf16 %v6927_v58 }
 0x5a4   :  { %v5732_v2 = vpack.c.bf16 %v5979_v4, %v5978_v34 }
 0x5b9   :  { %v545_v44 = vpop.xlane.xlu1 %544 }
 0x5ba   :  { %6133 = vrcp.f32 %v545_v44 }
 0x5c4   :  { %v6134_v55 = vpop.eup %6133 }
 0x5c5   :  { %v840_v40 = vpop.xlane.xlu1 %839  ;;  %v843_v59 = vpop.xlane.xlu0 %842  ;;  %v555_v47 = vmul.f32 %v6134_v55, %v6937_v25 }
 0x5c6   :  { %6135 = vrcp.f32 %v840_v40 }
 0x5c7   :  { %5095 = vmatmul.mubr.msk.f32.gmra.mrb[18].mxu0 %vm499_vm7, %v555_v47  ;;  %6137 = vrcp.f32 %v843_v59 }
 0x5c8   :  { %5132 = vmatprep.mubr.msk.f32.mxu0 %vm6348_vm0, %v6349_v6 }
 0x5c9   :  { %v846_v49 = vpop.xlane.xlu1 %845  ;;  %v1146_v43 = vpop.xlane.xlu0 %1145 }
 0x5ca   :  { %6139 = vrcp.f32 %v846_v49 }
 0x5cd   :  { %v849_v56 = vpop.xlane.xlu1 %848 }
 0x5ce   :  { %6141 = vrcp.f32 %v849_v56 }
 0x5d0   :  { %v6136_v42 = vpop.eup %6135 }
 0x5d1   :  { %v858_v1 = vmul.f32 %v6136_v42, %v6947_v37  ;;  %v852_v8 = vpop.xlane.xlu1 %851  ;;  %v6138_v25 = vpop.eup %6137 }
 0x5d2   :  { %6143 = vrcp.f32 %v852_v8  ;;  %v859_v37 = vmul.f32 %v6138_v25, %v6944_v53 }
 0x5d3   :  { %5133 = vmatmul.mubr.msk.f32.vlgmr.msra.gmra.mrb[20].mxu0 %vm499_vm7, %v858_v1  ;;  %6145 = vrcp.f32 %v1146_v43 }
 0x5d4   :  { %5733 = vmatpush3.bf16.msra.mxu0 %v5732_v2  ;;  %5135 = vmatprep.mubr.msk.f32.mxu0 %vm6348_vm0, %v6349_v6  ;;  %v6140_v0 = vpop.eup %6139 }
 0x5d5   :  { %v1149_v58 = vpop.xlane.xlu1 %1148  ;;  %5734 = vmatprep.subr.bf16.mxu0 %v6347_v3  ;;  %v860_v63 = vmul.f32 %v6140_v0, %v6956_v62 }
 0x5d6   :  { %6147 = vrcp.f32 %v1149_v58 }
 0x5d7   :  { %5136 = vmatmul.mubr.msk.f32.gmra.mrb[22].mxu0 %vm499_vm7, %v859_v37 }
 0x5d8   :  { %5736 = vmatpush3.bf16.msra.mxu0 %v5735_v20  ;;  %5138 = vmatprep.mubr.msk.f32.mxu0 %vm6348_vm0, %v6349_v6  ;;  %v6142_v27 = vpop.eup %6141 }
 0x5d9   :  { %v1152_v7 = vpop.xlane.xlu1 %1151  ;;  %v1452_v11 = vpop.xlane.xlu0 %1451  ;;  %5180 = vmatprep.subr.mxu0 %v6349_v6  ;;  %v861_v35 = vmul.f32 %v6142_v27, %v6963_v29 }
 0x5da   :  { %6149 = vrcp.f32 %v1152_v7 }
 0x5db   :  { %5139 = vmatmul.mubr.msk.f32.gmra.mrb[24].mxu0 %vm499_vm7, %v860_v63 }
 0x5dc   :  { %5181 = vmatpush3.msk.msra.mxu0 %vm585_vm6, %v1178_v52  ;;  %5141 = vmatprep.mubr.msk.f32.mxu0 %vm6348_vm0, %v6349_v6  ;;  %v6144_v51 = vpop.eup %6143 }
 0x5dd   :  { %v1155_v53 = vpop.xlane.xlu1 %1154  ;;  %5745 = vmatprep.subr.bf16.mxu0 %v6347_v3  ;;  %v5987_v39 = vpop.permute.xlu0 %5986  ;;  %v862_v30 = vmul.f32 %v6144_v51, %v6969_v9 }
 0x5de   :  { %v6146_v32 = vpop.eup %6145  ;;  %v5989_v22 = vunpack.i.h.bf16 %v5987_v39  ;;  %v5988_v48 = vunpack.i.l.bf16 %v5987_v39  ;;  %6151 = vrcp.f32 %v1155_v53 }
 0x5df   :  { %5142 = vmatmul.mubr.msk.f32.gmra.mrb[26].mxu0 %vm499_vm7, %v861_v35  ;;  %v1164_v29 = vmul.f32 %v6146_v32, %v6954_v60 }
 0x5e0   :  { %5144 = vmatprep.mubr.msk.f32.mxu0 %vm6348_vm0, %v6349_v6  ;;  %v6148_v50 = vpop.eup %6147  ;;  %v5746_v31 = vpack.c.bf16 %v5989_v22, %v5988_v48  ;;  %v1673_v48 = vld [vmem:[%s8319_s7] sm:$0xff] }
 0x5e1   :  { %v1158_v62 = vpop.xlane.xlu1 %1157  ;;  %v1165_v54 = vmul.f32 %v6148_v50, %v6973_v5 }
 0x5e2   :  { %6153 = vrcp.f32 %v1158_v62 }
 0x5e3   :  { %5145 = vmatmul.mubr.msk.f32.gmra.mrb[28].mxu0 %vm499_vm7, %v862_v30  ;;  %6155 = vrcp.f32 %v1452_v11 }
 0x5e4   :  { %5182 = vmatprep.mubr.msk.f32.mxu0 %vm6348_vm0, %v6349_v6  ;;  %v6150_v44 = vpop.eup %6149 }
 0x5e5   :  { %v5992_v19 = vpop.permute.xlu1 %5991  ;;  %v1166_v60 = vmul.f32 %v6150_v44, %v6977_v14 }
 0x5e6   :  { %v5994_v17 = vunpack.i.h.bf16 %v5992_v19  ;;  %v5993_v41 = vunpack.i.l.bf16 %v5992_v19  ;;  %v1675_v19 = vld [vmem:[%s8319_s7 + $0x10] sm:$0xff] }
 0x5e7   :  { %5183 = vmatmul.mubr.msk.f32.vlgmr.msra.gmra.mrb[30].mxu0 %vm499_vm7, %v1164_v29  ;;  %v1674_v29 = vld [vmem:[%s8319_s7 + $0x8] sm:$0xff] }
 0x5e8   :  { %v5749_v9 = vpack.c.bf16 %v5994_v17, %v5993_v41  ;;  %5747 = vmatpush3.bf16.msra.mxu0 %v5746_v31  ;;  %5185 = vmatprep.mubr.msk.f32.mxu0 %vm6348_vm0, %v6349_v6  ;;  %v6152_v52 = vpop.eup %6151  ;;  %v5752_v31 = vpack.c.bf16 %v1674_v29, %v1673_v48  ;;  %v1676_v17 = vld [vmem:[%s8319_s7 + $0x18] sm:$0xff]  ;;  %v1789_v29 = vsub.s32 2, %v6552_v16 }
 0x5e9   :  { %5748 = vmatprep.subr.bf16.mxu0 %v6347_v3  ;;  %v1167_v55 = vmul.f32 %v6152_v52, %v6985_v45  ;;  %v5755_v41 = vpack.c.bf16 %v1676_v17, %v1675_v19  ;;  %v7198_v19 = vld [vmem:[%s8317_s5] sm:$0xff] }
 0x5ea   :  { %5753 = vmatpush3.bf16.msra.mxu1 %v5752_v31 }
 0x5eb   :  { %5186 = vmatmul.mubr.msk.f32.gmra.mrb[32].mxu0 %vm499_vm7, %v1165_v54  ;;  %5754 = vmatprep.subr.bf16.mxu1 %v6347_v3 }
 0x5ec   :  { %5750 = vmatpush3.bf16.msra.mxu0 %v5749_v9  ;;  %5188 = vmatprep.mubr.msk.f32.mxu0 %vm6348_vm0, %v6349_v6  ;;  %v6154_v5 = vpop.eup %6153 }
 0x5ed   :  { %5230 = vmatprep.subr.mxu0 %v6349_v6  ;;  %v1168_v40 = vmul.f32 %v6154_v5, %v6989_v46  ;;  %v6156_v45 = vpop.eup %6155 }
 0x5ee   :  { %v1470_v49 = vmul.f32 %v6156_v45, %v6979_v36  ;;  %5756 = vmatpush3.bf16.msra.mxu1 %v5755_v41 }
 0x5ef   :  { %5189 = vmatmul.mubr.msk.f32.gmra.mrb[34].mxu0 %vm499_vm7, %v1166_v60  ;;  %5763 = vmatprep.subr.bf16.mxu1 %v6347_v3 }
 0x5f0   :  { %5191 = vmatprep.mubr.msk.f32.mxu0 %vm6348_vm0, %v6349_v6 }
 0x5f3   :  { %5192 = vmatmul.mubr.msk.f32.gmra.mrb[36].mxu0 %vm499_vm7, %v1167_v55 }
 0x5f4   :  { %5194 = vmatprep.mubr.msk.f32.mxu0 %vm6348_vm0, %v6349_v6 }
 0x5f7   :  { %5195 = vmatmul.mubr.msk.f32.gmra.mrb[38].mxu0 %vm499_vm7, %v1168_v40 }
 0x5f8   :  { %5232 = vmatprep.mubr.msk.f32.mxu0 %vm6348_vm0, %v6349_v6 }
 0x60e   :  { %v1464_v56 = vpop.xlane.xlu0 %1463 }
 0x616   :  { %v1455_v14 = vpop.xlane.xlu1 %1454 }
 0x617   :  { %6157 = vrcp.f32 %v1455_v14 }
 0x61a   :  { %v1458_v59 = vpop.xlane.xlu1 %1457 }
 0x61b   :  { %6159 = vrcp.f32 %v1458_v59 }
 0x61e   :  { %v1461_v47 = vpop.xlane.xlu1 %1460 }
 0x61f   :  { %6161 = vrcp.f32 %v1461_v47 }
 0x620   :  { %6163 = vrcp.f32 %v1464_v56 }
 0x621   :  { %v6158_v34 = vpop.eup %6157 }
 0x622   :  { %v1484_v4 = vpop.permute.xlu1 %1483  ;;  %v1471_v46 = vmul.f32 %v6158_v34, %v7005_v57 }
 0x623   :  { %5231 = vmatpush3.msk.msra.mxu0 %vm585_vm6, %v1484_v4 }
 0x624   :  { %5233 = vmatmul.mubr.msk.f32.vlgmr.msra.gmra.mrb[40].mxu0 %vm499_vm7, %v1470_v49  ;;  %5757 = vmatprep.subr.bf16.mxu0 %v6347_v3 }
 0x625   :  { %5235 = vmatprep.mubr.msk.f32.mxu0 %vm6348_vm0, %v6349_v6  ;;  %v6160_v42 = vpop.eup %6159 }
 0x626   :  { %v1472_v36 = vmul.f32 %v6160_v42, %v7009_v13 }
 0x628   :  { %5236 = vmatmul.mubr.msk.f32.gmra.mrb[42].mxu0 %vm499_vm7, %v1471_v46 }
 0x629   :  { %5238 = vmatprep.mubr.msk.f32.mxu0 %vm6348_vm0, %v6349_v6  ;;  %v6162_v1 = vpop.eup %6161 }
 0x62a   :  { %v1473_v8 = vmul.f32 %v6162_v1, %v7013_v24  ;;  %v6164_v25 = vpop.eup %6163 }
 0x62b   :  { %v1474_v57 = vmul.f32 %v6164_v25, %v7001_v61 }
 0x62c   :  { %5239 = vmatmul.mubr.msk.f32.gmra.mrb[44].mxu0 %vm499_vm7, %v1472_v36 }
 0x62d   :  { %5241 = vmatprep.mubr.msk.f32.mxu0 %vm6348_vm0, %v6349_v6 }
 0x630   :  { %5242 = vmatmul.mubr.msk.f32.gmra.mrb[46].mxu0 %vm499_vm7, %v1473_v8 }
 0x631   :  { %5244 = vmatprep.mubr.msk.f32.mxu0 %vm6348_vm0, %v6349_v6 }
 0x634   :  { %5245 = vmatmul.mubr.msk.f32.gmra.mrb[48].mxu0 %vm499_vm7, %v1474_v57 }
 0x635   :  { %5278 = vmatprep.mubr.msk.f32.mxu0 %vm6348_vm0, %v6349_v6 }
 0x665   :  { %v7120_v13 = vpop.f32.mrb[10].mxu0 }
 0x666   :  { %v5084_v2 = vpop.f32.mrb[11].mxu0 }
 0x669   :  { %v7122_v12 = vpop.f32.mrb[12].mxu0 }
 0x66a   :  { %v5087_v10 = vpop.f32.mrb[13].mxu0 }
 0x66d   :  { %v7124_v24 = vpop.f32.mrb[14].mxu0 }
 0x66e   :  { %v5090_v43 = vpop.f32.mrb[15].mxu0 }
 0x671   :  { %v7126_v58 = vpop.f32.mrb[16].mxu0 }
 0x672   :  { %v5093_v37 = vpop.f32.mrb[17].mxu0 }
 0x69a   :  { %v7128_v0 = vpop.f32.mrb[18].mxu0 }
 0x69b   :  { %v5096_v61 = vpop.f32.mrb[19].mxu0 }
 0x6a6   :  { %v960_v20 = vpop.f32.mrb[20].mxu0 }
 0x6a7   :  { %1601 = vrot.lane.b32.xlu1 %v960_v20, %s6361_s16  ;;  %v5134_v7 = vpop.f32.mrb[21].mxu0 }
 0x6aa   :  { %v965_v11 = vpop.f32.mrb[22].mxu0 }
 0x6ab   :  { %1603 = vrot.lane.b32.xlu0 %v965_v11, %s6361_s16  ;;  %v5137_v63 = vpop.f32.mrb[23].mxu0 }
 0x6ae   :  { %v970_v27 = vpop.f32.mrb[24].mxu0 }
 0x6af   :  { %1605 = vrot.lane.b32.xlu1 %v970_v27, %s6361_s16  ;;  %v5140_v53 = vpop.f32.mrb[25].mxu0 }
 0x6b2   :  { %v975_v35 = vpop.f32.mrb[26].mxu0 }
 0x6b3   :  { %1607 = vrot.lane.b32.xlu1 %v975_v35, %s6361_s16  ;;  %v5143_v51 = vpop.f32.mrb[27].mxu0 }
 0x6b6   :  { %v980_v39 = vpop.f32.mrb[28].mxu0 }
 0x6b7   :  { %v5146_v62 = vpop.f32.mrb[29].mxu0 }
 0x6ba   :  { %v1266_v30 = vpop.f32.mrb[30].mxu0 }
 0x6bb   :  { %1621 = vrot.lane.b32.xlu1 %v1266_v30, %s6362_s25  ;;  %v5184_v32 = vpop.f32.mrb[31].mxu0 }
 0x6be   :  { %v1271_v22 = vpop.f32.mrb[32].mxu0 }
 0x6bf   :  { %1623 = vrot.lane.b32.xlu1 %v1271_v22, %s6362_s25  ;;  %v5187_v50 = vpop.f32.mrb[33].mxu0 }
 0x6c2   :  { %v1276_v9 = vpop.f32.mrb[34].mxu0 }
 0x6c3   :  { %1625 = vrot.lane.b32.xlu1 %v1276_v9, %s6362_s25  ;;  %v5190_v54 = vpop.f32.mrb[35].mxu0 }
 0x6c6   :  { %v1281_v44 = vpop.f32.mrb[36].mxu0 }
 0x6c7   :  { %1627 = vrot.lane.b32.xlu0 %v1281_v44, %s6362_s25  ;;  %v5193_v60 = vpop.f32.mrb[37].mxu0 }
 0x6ca   :  { %v1286_v52 = vpop.f32.mrb[38].mxu0 }
 0x6cb   :  { %1609 = vrot.lane.b32.xlu0 %v980_v39, %s6361_s16  ;;  %v5196_v55 = vpop.f32.mrb[39].mxu0 }
 0x6f7   :  { %v1572_v5 = vpop.f32.mrb[40].mxu0 }
 0x6f8   :  { %1641 = vrot.lane.b32.xlu1 %v1572_v5, %s6363_s14  ;;  %v5234_v40 = vpop.f32.mrb[41].mxu0 }
 0x6fb   :  { %v1577_v14 = vpop.f32.mrb[42].mxu0 }
 0x6fc   :  { %1643 = vrot.lane.b32.xlu1 %v1577_v14, %s6363_s14  ;;  %v5237_v59 = vpop.f32.mrb[43].mxu0 }
 0x6ff   :  { %v1582_v47 = vpop.f32.mrb[44].mxu0 }
 0x700   :  { %1645 = vrot.lane.b32.xlu1 %v1582_v47, %s6363_s14  ;;  %v5240_v45 = vpop.f32.mrb[45].mxu0 }
 0x703   :  { %v1587_v49 = vpop.f32.mrb[46].mxu0 }
 0x704   :  { %1647 = vrot.lane.b32.xlu1 %v1587_v49, %s6363_s14  ;;  %v5243_v56 = vpop.f32.mrb[47].mxu0 }
 0x707   :  { %v1592_v4 = vpop.f32.mrb[48].mxu0 }
 0x708   :  { %1629 = vrot.lane.b32.xlu1 %v1286_v52, %s6362_s25  ;;  %1649 = vrot.lane.b32.xlu0 %v1592_v4, %s6363_s14  ;;  %v5246_v34 = vpop.f32.mrb[49].mxu0 }
 0x719   :  { %v1602_v46 = vpop.permute.xlu1 %1601 }
 0x71a   :  { %v1656_v57 = vsel %vm383_vm4, %v7120_v13, %v1602_v46 }
 0x71d   :  { %v1604_v2 = vpop.permute.xlu0 %1603 }
 0x71e   :  { %v1657_v61 = vsel %vm383_vm4, %v7122_v12, %v1604_v2 }
 0x721   :  { %v1606_v42 = vpop.permute.xlu1 %1605 }
 0x722   :  { %v1658_v63 = vsel %vm383_vm4, %v7124_v24, %v1606_v42 }
 0x725   :  { %v1608_v36 = vpop.permute.xlu1 %1607 }
 0x726   :  { %v1659_v35 = vsel %vm383_vm4, %v7126_v58, %v1608_v36 }
 0x72d   :  { %v1622_v1 = vpop.permute.xlu1 %1621 }
 0x72e   :  { %v1662_v10 = vsel %vm1661_vm9, %v1656_v57, %v1622_v1 }
 0x731   :  { %v1624_v8 = vpop.permute.xlu1 %1623 }
 0x732   :  { %v1663_v20 = vsel %vm1661_vm9, %v1657_v61, %v1624_v8 }
 0x735   :  { %v1626_v25 = vpop.permute.xlu1 %1625 }
 0x736   :  { %v1664_v27 = vsel %vm1661_vm9, %v1658_v63, %v1626_v25 }
 0x739   :  { %v1628_v13 = vpop.permute.xlu0 %1627 }
 0x73a   :  { %v1665_v51 = vsel %vm1661_vm9, %v1659_v35, %v1628_v13 }
 0x73d   :  { %v1610_v39 = vpop.permute.xlu0 %1609 }
 0x73e   :  { %v1660_v30 = vsel %vm383_vm4, %v7128_v0, %v1610_v39  ;;  %v1790_v0 = vrot.slane %v7198_v19, %v1789_v29 }
 0x76a   :  { %v1642_v43 = vpop.permute.xlu1 %1641 }
 0x76b   :  { %v1668_v37 = vsel %vm1667_vm10, %v1662_v10, %v1642_v43 }
 0x76c   :  { %5256 = vmatmul.mubr.msk.f32.vlgmr.msra.gmra.mrb[50].mxu1 %vm168_vm2, %v1668_v37 }
 0x76d   :  { %5258 = vmatprep.mubr.msk.f32.mxu1 %vm6348_vm0, %v6349_v6 }
 0x76e   :  { %v1644_v7 = vpop.permute.xlu1 %1643 }
 0x76f   :  { %v1669_v11 = vsel %vm1667_vm10, %v1663_v20, %v1644_v7 }
 0x770   :  { %5259 = vmatmul.mubr.msk.f32.gmra.mrb[52].mxu1 %vm168_vm2, %v1669_v11 }
 0x771   :  { %5261 = vmatprep.mubr.msk.f32.mxu1 %vm6348_vm0, %v6349_v6 }
 0x772   :  { %v1646_v12 = vpop.permute.xlu1 %1645 }
 0x773   :  { %v1670_v53 = vsel %vm1667_vm10, %v1664_v27, %v1646_v12 }
 0x774   :  { %5262 = vmatmul.mubr.msk.f32.gmra.mrb[54].mxu1 %vm168_vm2, %v1670_v53 }
 0x775   :  { %5264 = vmatprep.mubr.msk.f32.mxu1 %vm6348_vm0, %v6349_v6 }
 0x776   :  { %v1648_v24 = vpop.permute.xlu1 %1647 }
 0x777   :  { %v1671_v62 = vsel %vm1667_vm10, %v1665_v51, %v1648_v24 }
 0x778   :  { %5265 = vmatmul.mubr.msk.f32.gmra.mrb[56].mxu1 %vm168_vm2, %v1671_v62 }
 0x779   :  { %5267 = vmatprep.mubr.msk.f32.mxu1 %vm6348_vm0, %v6349_v6 }
 0x77a   :  { %v1630_v32 = vpop.permute.xlu1 %1629  ;;  %v1650_v22 = vpop.permute.xlu0 %1649 }
 0x77b   :  { %v1666_v58 = vsel %vm1661_vm9, %v1660_v30, %v1630_v32  ;;  %v1879_v30 = vld [vmem:[%s8320_s8] sm:$0xff]  ;;  %v1880_v32 = vld [vmem:[%s8320_s8 + $0x8] sm:$0xff] }
 0x77c   :  { %v1672_v48 = vsel %vm1667_vm10, %v1666_v58, %v1650_v22  ;;  %v5758_v22 = vpack.c.bf16 %v1880_v32, %v1879_v30  ;;  %v1881_v58 = vld [vmem:[%s8320_s8 + $0x10] sm:$0xff]  ;;  %v2132_v30 = vld [vmem:[%s8321_s9 + $0x20] sm:$0xff]  ;;  %v2133_v32 = vld [vmem:[%s8321_s9 + $0x28] sm:$0xff] }
 0x77d   :  { %5268 = vmatmul.mubr.msk.f32.gmra.mrb[58].mxu1 %vm168_vm2, %v1672_v48  ;;  %v1882_v48 = vld [vmem:[%s8320_s8 + $0x18] sm:$0xff] }
 0x77e   :  { %5325 = vmatprep.mubr.msk.f32.mxu1 %vm6348_vm0, %v6349_v6  ;;  %5759 = vmatpush3.bf16.msra.mxu0 %v5758_v22  ;;  %v5770_v22 = vpack.c.bf16 %v2133_v32, %v2132_v30 }
 0x77f   :  { %5760 = vmatprep.subr.bf16.mxu0 %v6347_v3 }
 0x83f   :  { %v1758_v50 = vpop.f32.mrb[50].mxu1 }
 0x840   :  { %v1782_v31 = vadd.f32 %v1758_v50, %v6480_v18  ;;  %v5257_v17 = vpop.f32.mrb[51].mxu1 }
 0x842   :  { %v7204_v41 = vadd.f32 %v1790_v0, %v1782_v31 }
 0x843   :  { %v1763_v9 = vpop.f32.mrb[52].mxu1 }
 0x844   :  { %v1783_v54 = vadd.f32 %v1763_v9, %v6487_v23  ;;  %v5260_v44 = vpop.f32.mrb[53].mxu1  ;;  %v1796_v60 = vsel %vm168_vm2, %v7204_v41, 0.0 }
 0x845   :  { %1797 = vadd.xlane.f32.xlu1 %v1796_v60 }
 0x846   :  { %v7209_v52 = vadd.f32 %v1790_v0, %v1783_v54 }
 0x847   :  { %v1768_v55 = vpop.f32.mrb[54].mxu1 }
 0x848   :  { %v1784_v5 = vadd.f32 %v1768_v55, %v6494_v28  ;;  %v5263_v40 = vpop.f32.mrb[55].mxu1  ;;  %v1799_v18 = vsel %vm168_vm2, %v7209_v52, 0.0 }
 0x849   :  { %1800 = vadd.xlane.f32.xlu0 %v1799_v18 }
 0x84a   :  { %v7214_v14 = vadd.f32 %v1790_v0, %v1784_v5  ;;  %v1863_v5 = vsub.s32 3, %v6552_v16 }
 0x84b   :  { %v1773_v59 = vpop.f32.mrb[56].mxu1 }
 0x84c   :  { %v1785_v23 = vadd.f32 %v1773_v59, %v6501_v33  ;;  %v5266_v47 = vpop.f32.mrb[57].mxu1  ;;  %v1802_v45 = vsel %vm168_vm2, %v7214_v14, 0.0  ;;  %v1872_v59 = vsub.s32 4, %v6552_v16 }
 0x84d   :  { %1803 = vadd.xlane.f32.xlu0 %v1802_v45  ;;  %v1864_v47 = vrot.slane %v7198_v19, %v1863_v5 }
 0x84e   :  { %v7219_v49 = vadd.f32 %v1790_v0, %v1785_v23 }
 0x850   :  { %v1778_v56 = vpop.f32.mrb[58].mxu1  ;;  %v1805_v28 = vsel %vm168_vm2, %v7219_v49, 0.0 }
 0x851   :  { %v1786_v4 = vadd.f32 %v1778_v56, %v6508_v38  ;;  %1806 = vadd.xlane.f32.xlu1 %v1805_v28  ;;  %v5269_v34 = vpop.f32.mrb[59].mxu1 }
 0x853   :  { %v7224_v46 = vadd.f32 %v1790_v0, %v1786_v4  ;;  %v5761_v0 = vpack.c.bf16 %v1882_v48, %v1881_v58  ;;  %v1873_v4 = vrot.slane %v7198_v19, %v1872_v59  ;;  %v2134_v58 = vld [vmem:[%s8321_s9 + $0x30] sm:$0xff]  ;;  %v2135_v48 = vld [vmem:[%s8321_s9 + $0x38] sm:$0xff] }
 0x855   :  { %v1808_v33 = vsel %vm181_vm3, %v7224_v46, 0.0  ;;  %5762 = vmatpush3.bf16.msra.mxu0 %v5761_v0  ;;  %v5773_v0 = vpack.c.bf16 %v2135_v48, %v2134_v58 }
 0x856   :  { %1809 = vadd.xlane.f32.xlu0 %v1808_v33  ;;  %5787 = vmatprep.subr.bf16.mxu0 %v6347_v3 }
 0x8d2   :  { %v1798_v42 = vpop.xlane.xlu1 %1797 }
 0x8d3   :  { %v1811_v36 = vmul.f32 0.03125, %v1798_v42 }
 0x8d5   :  { %v1816_v1 = vsub.f32 %v7204_v41, %v1811_v36 }
 0x8d6   :  { %v1801_v8 = vpop.xlane.xlu0 %1800 }
 0x8d7   :  { %v1812_v25 = vmul.f32 0.03125, %v1801_v8  ;;  %v1821_v57 = vmul.f32 %v1816_v1, %v1816_v1 }
 0x8d9   :  { %v1817_v2 = vsub.f32 %v7209_v52, %v1812_v25  ;;  %v1826_v10 = vsel %vm168_vm2, %v1821_v57, 0.0 }
 0x8da   :  { %v1804_v38 = vpop.xlane.xlu0 %1803  ;;  %1827 = vadd.xlane.f32.xlu1 %v1826_v10 }
 0x8db   :  { %v1813_v43 = vmul.f32 0.03125, %v1804_v38  ;;  %v1822_v37 = vmul.f32 %v1817_v2, %v1817_v2 }
 0x8dd   :  { %v7232_v61 = vsub.f32 %v7214_v14, %v1813_v43  ;;  %v1829_v20 = vsel %vm168_vm2, %v1822_v37, 0.0 }
 0x8de   :  { %v1807_v7 = vpop.xlane.xlu1 %1806  ;;  %1830 = vadd.xlane.f32.xlu0 %v1829_v20 }
 0x8df   :  { %v1814_v11 = vmul.f32 0.03125, %v1807_v7  ;;  %v1823_v13 = vmul.f32 %v7232_v61, %v7232_v61 }
 0x8e1   :  { %v7238_v63 = vsub.f32 %v7219_v49, %v1814_v11  ;;  %v1832_v27 = vsel %vm168_vm2, %v1823_v13, 0.0 }
 0x8e2   :  { %1833 = vadd.xlane.f32.xlu1 %v1832_v27 }
 0x8e3   :  { %v1810_v12 = vpop.xlane.xlu0 %1809  ;;  %v1824_v53 = vmul.f32 %v7238_v63, %v7238_v63 }
 0x8e4   :  { %v1815_v35 = vmul.f32 0.03125, %v1810_v12 }
 0x8e5   :  { %v1835_v51 = vsel %vm168_vm2, %v1824_v53, 0.0 }
 0x8e6   :  { %v1820_v39 = vsub.f32 %v7224_v46, %v1815_v35  ;;  %1836 = vadd.xlane.f32.xlu0 %v1835_v51  ;;  %v2129_v35 = vld [vmem:[%s8321_s9 + $0x8] sm:$0xff] }
 0x8e8   :  { %v1825_v24 = vmul.f32 %v1820_v39, %v1820_v39 }
 0x8ea   :  { %v1838_v62 = vsel %vm181_vm3, %v1825_v24, 0.0  ;;  %v2131_v24 = vld [vmem:[%s8321_s9 + $0x18] sm:$0xff] }
 0x8eb   :  { %1839 = vadd.xlane.f32.xlu1 %v1838_v62 }
 0x967   :  { %v1828_v50 = vpop.xlane.xlu1 %1827 }
 0x968   :  { %v1841_v31 = vmul.f32 0.03125, %v1828_v50  ;;  %v2136_v50 = vld [vmem:[%s8321_s9 + $0x40] sm:$0xff] }
 0x96a   :  { %v1846_v17 = vadd.f32 1e-05, %v1841_v31  ;;  %v2137_v31 = vld [vmem:[%s8321_s9 + $0x48] sm:$0xff] }
 0x96b   :  { %v1831_v9 = vpop.xlane.xlu0 %1830 }
 0x96c   :  { %6165 = vrsqrt.f32 %v1846_v17  ;;  %v1842_v54 = vmul.f32 0.03125, %v1831_v9  ;;  %v5776_v17 = vpack.c.bf16 %v2137_v31, %v2136_v50  ;;  %v2138_v9 = vld [vmem:[%s8321_s9 + $0x50] sm:$0xff] }
 0x96e   :  { %v1847_v44 = vadd.f32 1e-05, %v1842_v54  ;;  %v2139_v54 = vld [vmem:[%s8321_s9 + $0x58] sm:$0xff] }
 0x96f   :  { %v1834_v60 = vpop.xlane.xlu1 %1833 }
 0x970   :  { %6167 = vrsqrt.f32 %v1847_v44  ;;  %v1843_v55 = vmul.f32 0.03125, %v1834_v60  ;;  %v5779_v44 = vpack.c.bf16 %v2139_v54, %v2138_v9  ;;  %v2140_v60 = vld [vmem:[%s8321_s9 + $0x60] sm:$0xff] }
 0x972   :  { %v1848_v40 = vadd.f32 1e-05, %v1843_v55  ;;  %v2141_v55 = vld [vmem:[%s8321_s9 + $0x68] sm:$0xff] }
 0x973   :  { %v1837_v18 = vpop.xlane.xlu0 %1836 }
 0x974   :  { %6169 = vrsqrt.f32 %v1848_v40  ;;  %v1844_v23 = vmul.f32 0.03125, %v1837_v18  ;;  %v5782_v40 = vpack.c.bf16 %v2141_v55, %v2140_v60  ;;  %v2142_v18 = vld [vmem:[%s8321_s9 + $0x70] sm:$0xff] }
 0x976   :  { %v6166_v45 = vpop.eup %6165  ;;  %v1849_v56 = vadd.f32 1e-05, %v1844_v23  ;;  %v2143_v23 = vld [vmem:[%s8321_s9 + $0x78] sm:$0xff] }
 0x977   :  { %v1856_v28 = vmul.f32 %v6166_v45, %v1816_v1  ;;  %v4600_v45 = vld [vmem:[%s8320_s8 + $0x20] ss:$0 sm:$0xff] }
 0x978   :  { %6171 = vrsqrt.f32 %v1849_v56  ;;  %v1840_v34 = vpop.xlane.xlu1 %1839 }
 0x979   :  { %v1865_v33 = vmul.f32 %v1864_v47, %v1856_v28  ;;  %v1845_v42 = vmul.f32 0.03125, %v1840_v34 }
 0x97a   :  { %v6168_v36 = vpop.eup %6167 }
 0x97b   :  { %v1850_v8 = vadd.f32 1e-05, %v1845_v42  ;;  %v1874_v25 = vadd.f32 %v1873_v4, %v1865_v33  ;;  %v1857_v57 = vmul.f32 %v6168_v36, %v1817_v2 }
 0x97d   :  { %6173 = vrsqrt.f32 %v1850_v8  ;;  %5279 = vmatmul.mubr.msk.f32.vlgmr.msra.gmra.mrb[50].mxu0 %vm168_vm2, %v1874_v25  ;;  %v1866_v10 = vmul.f32 %v1864_v47, %v1857_v57 }
 0x97e   :  { %v6170_v38 = vpop.eup %6169  ;;  %5281 = vmatprep.mubr.msk.f32.mxu0 %vm6348_vm0, %v6349_v6 }
 0x97f   :  { %v1875_v1 = vadd.f32 %v1873_v4, %v1866_v10  ;;  %v1858_v43 = vmul.f32 %v6170_v38, %v7232_v61 }
 0x981   :  { %5282 = vmatmul.mubr.msk.f32.gmra.mrb[52].mxu0 %vm168_vm2, %v1875_v1  ;;  %v1867_v37 = vmul.f32 %v1864_v47, %v1858_v43 }
 0x982   :  { %v6172_v20 = vpop.eup %6171  ;;  %5284 = vmatprep.mubr.msk.f32.mxu0 %vm6348_vm0, %v6349_v6 }
 0x983   :  { %v1876_v7 = vadd.f32 %v1873_v4, %v1867_v37  ;;  %v1859_v2 = vmul.f32 %v6172_v20, %v7238_v63  ;;  %v2128_v63 = vld [vmem:[%s8321_s9] sm:$0xff] }
 0x984   :  { %v5764_v51 = vpack.c.bf16 %v2129_v35, %v2128_v63 }
 0x985   :  { %5285 = vmatmul.mubr.msk.f32.gmra.mrb[54].mxu0 %vm168_vm2, %v1876_v7  ;;  %v1868_v11 = vmul.f32 %v1864_v47, %v1859_v2 }
 0x986   :  { %5287 = vmatprep.mubr.msk.f32.mxu0 %vm6348_vm0, %v6349_v6  ;;  %5765 = vmatpush3.bf16.msra.mxu1 %v5764_v51 }
 0x987   :  { %v6174_v13 = vpop.eup %6173  ;;  %v1877_v27 = vadd.f32 %v1873_v4, %v1868_v11  ;;  %5766 = vmatprep.subr.bf16.mxu1 %v6347_v3 }
 0x988   :  { %v1860_v12 = vmul.f32 %v6174_v13, %v1820_v39  ;;  %v2130_v39 = vld [vmem:[%s8321_s9 + $0x10] sm:$0xff] }
 0x989   :  { %5288 = vmatmul.mubr.msk.f32.gmra.mrb[56].mxu0 %vm168_vm2, %v1877_v27  ;;  %v5767_v62 = vpack.c.bf16 %v2131_v24, %v2130_v39 }
 0x98a   :  { %5290 = vmatprep.mubr.msk.f32.mxu0 %vm6348_vm0, %v6349_v6  ;;  %v1869_v61 = vmul.f32 %v1864_v47, %v1860_v12  ;;  %v5785_v47 = vpack.c.bf16 %v2143_v23, %v2142_v18 }
 0x98b   :  { %5768 = vmatpush3.bf16.msra.mxu1 %v5767_v62 }
 0x98c   :  { %v1878_v53 = vadd.f32 %v1873_v4, %v1869_v61  ;;  %5769 = vmatprep.subr.bf16.mxu1 %v6347_v3 }
 0x98e   :  { %5291 = vmatmul.mubr.msk.f32.gmra.mrb[58].mxu0 %vm168_vm2, %v1878_v53 }
 0x98f   :  { %5348 = vmatprep.mubr.msk.f32.mxu0 %vm6348_vm0, %v6349_v6  ;;  %5771 = vmatpush3.bf16.msra.mxu1 %v5770_v22 }
 0x990   :  { %5772 = vmatprep.subr.bf16.mxu1 %v6347_v3 }
 0x993   :  { %5774 = vmatpush3.bf16.msra.mxu1 %v5773_v0 }
 0x994   :  { %5775 = vmatprep.subr.bf16.mxu1 %v6347_v3 }
 0x997   :  { %5777 = vmatpush3.bf16.msra.mxu1 %v5776_v17 }
 0x998   :  { %5778 = vmatprep.subr.bf16.mxu1 %v6347_v3 }
 0x99b   :  { %5780 = vmatpush3.bf16.msra.mxu1 %v5779_v44 }
 0x99c   :  { %5781 = vmatprep.subr.bf16.mxu1 %v6347_v3 }
 0x99f   :  { %5783 = vmatpush3.bf16.msra.mxu1 %v5782_v40 }
 0x9a0   :  { %5784 = vmatprep.subr.bf16.mxu1 %v6347_v3 }
 0x9a3   :  { %5786 = vmatpush3.bf16.msra.mxu1 %v5785_v47 }
 0x9a4   :  { %5801 = vmatprep.subr.bf16.mxu1 %v6347_v3 }
 0xa50   :  { %v1969_v56 = vpop.f32.mrb[50].mxu0 }
 0xa51   :  { %v7344_v28 = vadd.f32 %v4600_v45, %v1969_v56  ;;  %v5280_v4 = vpop.f32.mrb[51].mxu0 }
 0xa53   :  { %v7347_v34 = vmul.f32 0.70710677, %v7344_v28 }
 0xa54   :  { %v1974_v33 = vpop.f32.mrb[52].mxu0 }
 0xa55   :  { %v2003_v42 = vand.u32 2147483647, %v7347_v34  ;;  %v7350_v36 = vadd.f32 %v4600_v45, %v1974_v33  ;;  %v5283_v8 = vpop.f32.mrb[53].mxu0  ;;  %vm2103_vm11 = vcmp.ge.f32.partialorder %v7347_v34, 0.0 }
 0xa57   :  { %v2008_v25 = vmul.f32 0.3275911, %v2003_v42  ;;  %v7353_v57 = vmul.f32 0.70710677, %v7350_v36  ;;  %v2073_v63 = vsub.f32 0.0, %v2003_v42 }
 0xa58   :  { %v1979_v10 = vpop.f32.mrb[54].mxu0 }
 0xa59   :  { %v2013_v38 = vadd.f32 1.0, %v2008_v25  ;;  %v2004_v1 = vand.u32 2147483647, %v7353_v57  ;;  %v5286_v43 = vpop.f32.mrb[55].mxu0  ;;  %v7356_v37 = vadd.f32 %v4600_v45, %v1979_v10  ;;  %v2078_v58 = vmul.f32 %v2073_v63, %v2003_v42 }
 0xa5a   :  { %vm2104_vm12 = vcmp.ge.f32.partialorder %v7353_v57, 0.0 }
 0xa5b   :  { %6175 = vrcp.f32 %v2013_v38  ;;  %v2009_v20 = vmul.f32 0.3275911, %v2004_v1  ;;  %v7359_v7 = vmul.f32 0.70710677, %v7356_v37  ;;  %v2074_v48 = vsub.f32 0.0, %v2004_v1 }
 0xa5c   :  { %v1984_v2 = vpop.f32.mrb[56].mxu0  ;;  %v2083_v44 = vmul.f32 1.442695, %v2078_v58 }
 0xa5d   :  { %v2014_v11 = vadd.f32 1.0, %v2009_v20  ;;  %v7361_v13 = vadd.f32 %v4600_v45, %v1984_v2  ;;  %v5289_v27 = vpop.f32.mrb[57].mxu0  ;;  %v2005_v12 = vand.u32 2147483647, %v7359_v7  ;;  %v2079_v60 = vmul.f32 %v2074_v48, %v2004_v1 }
 0xa5e   :  { %vm2105_vm13 = vcmp.ge.f32.partialorder %v7359_v7, 0.0 }
 0xa5f   :  { %6177 = vrcp.f32 %v2014_v11  ;;  %v7365_v61 = vmul.f32 0.70710677, %v7361_v13  ;;  %v2010_v53 = vmul.f32 0.3275911, %v2005_v12  ;;  %v2075_v55 = vsub.f32 0.0, %v2005_v12 }
 0xa60   :  { %v2085_v56 = vmul.f32 1.442695, %v2079_v60 }
 0xa61   :  { %v2006_v35 = vand.u32 2147483647, %v7365_v61  ;;  %v1989_v51 = vpop.f32.mrb[58].mxu0  ;;  %v2015_v39 = vadd.f32 1.0, %v2010_v53  ;;  %v2080_v4 = vmul.f32 %v2075_v55, %v2005_v12  ;;  %vm2106_vm14 = vcmp.ge.f32.partialorder %v7365_v61, 0.0 }
 0xa62   :  { %v7368_v24 = vadd.f32 %v4600_v45, %v1989_v51  ;;  %v5292_v62 = vpop.f32.mrb[59].mxu0 }
 0xa63   :  { %v2011_v30 = vmul.f32 0.3275911, %v2006_v35  ;;  %6179 = vrcp.f32 %v2015_v39  ;;  %v2076_v33 = vsub.f32 0.0, %v2006_v35  ;;  %v2087_v1 = vmul.f32 1.442695, %v2080_v4 }
 0xa64   :  { %v7371_v32 = vmul.f32 0.70710677, %v7368_v24 }
 0xa65   :  { %v6176_v22 = vpop.eup %6175  ;;  %v2016_v0 = vadd.f32 1.0, %v2011_v30  ;;  %v2081_v2 = vmul.f32 %v2076_v33, %v2006_v35 }
 0xa66   :  { %v2028_v50 = vmul.f32 1.0614054, %v6176_v22  ;;  %v2007_v31 = vand.u32 2147483647, %v7371_v32  ;;  %vm2107_vm15 = vcmp.ge.f32.partialorder %v7371_v32, 0.0 }
 0xa67   :  { %6181 = vrcp.f32 %v2016_v0  ;;  %v2089_v58 = vmul.f32 1.442695, %v2081_v2 }
 0xa68   :  { %v2033_v17 = vadd.f32 -1.4531521, %v2028_v50  ;;  %v2012_v9 = vmul.f32 0.3275911, %v2007_v31  ;;  %v2077_v53 = vsub.f32 0.0, %v2007_v31 }
 0xa69   :  { %v6178_v54 = vpop.eup %6177 }
 0xa6a   :  { %v2038_v40 = vmul.f32 %v6176_v22, %v2033_v17  ;;  %v2017_v18 = vadd.f32 1.0, %v2012_v9  ;;  %v2029_v23 = vmul.f32 1.0614054, %v6178_v54  ;;  %v2082_v17 = vmul.f32 %v2077_v53, %v2007_v31 }
 0xa6c   :  { %v2043_v47 = vadd.f32 1.4214138, %v2038_v40  ;;  %6183 = vrcp.f32 %v2017_v18  ;;  %v2034_v45 = vadd.f32 -1.4531521, %v2029_v23  ;;  %v2091_v4 = vmul.f32 1.442695, %v2082_v17 }
 0xa6d   :  { %6185 = vpow2.f32 %v2083_v44  ;;  %v6180_v42 = vpop.eup %6179 }
 0xa6e   :  { %v2048_v8 = vmul.f32 %v6176_v22, %v2043_v47  ;;  %v2039_v25 = vmul.f32 %v6178_v54, %v2034_v45  ;;  %v2030_v10 = vmul.f32 1.0614054, %v6180_v42  ;;  %6187 = vpow2.f32 %v2085_v56 }
 0xa6f   :  { %6189 = vpow2.f32 %v2087_v1 }
 0xa70   :  { %v2053_v38 = vadd.f32 -0.28449672, %v2048_v8  ;;  %v2044_v43 = vadd.f32 1.4214138, %v2039_v25  ;;  %v2035_v11 = vadd.f32 -1.4531521, %v2030_v10  ;;  %6191 = vpow2.f32 %v2089_v58 }
 0xa71   :  { %v6182_v20 = vpop.eup %6181  ;;  %6193 = vpow2.f32 %v2091_v4 }
 0xa72   :  { %v2058_v27 = vmul.f32 %v6176_v22, %v2053_v38  ;;  %v2049_v63 = vmul.f32 %v6178_v54, %v2044_v43  ;;  %v2031_v51 = vmul.f32 1.0614054, %v6182_v20  ;;  %v2040_v39 = vmul.f32 %v6180_v42, %v2035_v11 }
 0xa74   :  { %v2063_v62 = vadd.f32 0.2548296, %v2058_v27  ;;  %v2054_v30 = vadd.f32 -0.28449672, %v2049_v63  ;;  %v2036_v12 = vadd.f32 -1.4531521, %v2031_v51 }
 0xa75   :  { %v2045_v48 = vadd.f32 1.4214138, %v2040_v39  ;;  %v1993_v51 = vmul.f32 0.5, %v7344_v28 }
 0xa76   :  { %v6184_v0 = vpop.eup %6183  ;;  %v2068_v50 = vmul.f32 %v6176_v22, %v2063_v62  ;;  %v2059_v9 = vmul.f32 %v6178_v54, %v2054_v30  ;;  %v2041_v44 = vmul.f32 %v6182_v20, %v2036_v12 }
 0xa77   :  { %v6186_v60 = vpop.eup %6185  ;;  %v2050_v55 = vmul.f32 %v6180_v42, %v2045_v48  ;;  %v2032_v35 = vmul.f32 1.0614054, %v6184_v0 }
 0xa78   :  { %v2093_v40 = vmul.f32 %v6186_v60, %v2068_v50  ;;  %v2064_v18 = vadd.f32 0.2548296, %v2059_v9  ;;  %v2046_v23 = vadd.f32 1.4214138, %v2041_v44  ;;  %v6188_v25 = vpop.eup %6187  ;;  %v1994_v44 = vmul.f32 0.5, %v7350_v36 }
 0xa79   :  { %v2055_v47 = vadd.f32 -0.28449672, %v2050_v55  ;;  %v2037_v45 = vadd.f32 -1.4531521, %v2032_v35  ;;  %v6190_v63 = vpop.eup %6189  ;;  %v1995_v36 = vmul.f32 0.5, %v7356_v37 }
 0xa7a   :  { %v2098_v56 = vsub.f32 1.0, %v2093_v40  ;;  %v2069_v33 = vmul.f32 %v6178_v54, %v2064_v18  ;;  %v2051_v8 = vmul.f32 %v6182_v20, %v2046_v23  ;;  %v6192_v9 = vpop.eup %6191 }
 0xa7b   :  { %v2060_v10 = vmul.f32 %v6180_v42, %v2055_v47  ;;  %v2042_v38 = vmul.f32 %v6184_v0, %v2037_v45  ;;  %v6194_v47 = vpop.eup %6193 }
 0xa7c   :  { %v2108_v22 = vsub.f32 0.0, %v2098_v56  ;;  %v2094_v31 = vmul.f32 %v6188_v25, %v2069_v33  ;;  %v2056_v43 = vadd.f32 -0.28449672, %v2051_v8  ;;  %v1996_v25 = vmul.f32 0.5, %v7361_v13 }
 0xa7d   :  { %v2065_v1 = vadd.f32 0.2548296, %v2060_v10  ;;  %v2047_v2 = vadd.f32 1.4214138, %v2042_v38  ;;  %v2241_v13 = vsub.s32 5, %v6552_v16 }
 0xa7e   :  { %v2113_v11 = vsel %vm2103_vm11, %v2098_v56, %v2108_v22  ;;  %v2099_v27 = vsub.f32 1.0, %v2094_v31  ;;  %v2061_v53 = vmul.f32 %v6182_v20, %v2056_v43  ;;  %v1997_v22 = vmul.f32 0.5, %v7368_v24 }
 0xa7f   :  { %v2118_v39 = vadd.f32 1.0, %v2113_v11  ;;  %v2070_v54 = vmul.f32 %v6180_v42, %v2065_v1  ;;  %v2052_v62 = vmul.f32 %v6184_v0, %v2047_v2  ;;  %v2242_v43 = vrot.slane %v7198_v19, %v2241_v13 }
 0xa80   :  { %v2109_v30 = vsub.f32 0.0, %v2099_v27  ;;  %v2066_v12 = vadd.f32 0.2548296, %v2061_v53 }
 0xa81   :  { %v2123_v58 = vmul.f32 %v2118_v39, %v1993_v51  ;;  %v2095_v48 = vmul.f32 %v6190_v63, %v2070_v54  ;;  %v2057_v50 = vadd.f32 -0.28449672, %v2052_v62 }
 0xa82   :  { %v2114_v34 = vsel %vm2104_vm12, %v2099_v27, %v2109_v30  ;;  %v2071_v17 = vmul.f32 %v6182_v20, %v2066_v12 }
 0xa83   :  { %5326 = vmatmul.mubr.f32.vlgmr.msra.gmra.mrb[60].mxu1 %v2123_v58  ;;  %v2119_v60 = vadd.f32 1.0, %v2114_v34  ;;  %v2100_v55 = vsub.f32 1.0, %v2095_v48  ;;  %v2062_v35 = vmul.f32 %v6184_v0, %v2057_v50 }
 0xa84   :  { %5328 = vmatprep.mubr.msk.f32.mxu1 %vm6348_vm0, %v6349_v6  ;;  %v2096_v28 = vmul.f32 %v6192_v9, %v2071_v17 }
 0xa85   :  { %v2124_v42 = vmul.f32 %v2119_v60, %v1994_v44  ;;  %v2110_v40 = vsub.f32 0.0, %v2100_v55  ;;  %v2067_v18 = vadd.f32 0.2548296, %v2062_v35 }
 0xa86   :  { %v2101_v57 = vsub.f32 1.0, %v2096_v28 }
 0xa87   :  { %5329 = vmatmul.mubr.f32.gmra.mrb[62].mxu1 %v2124_v42  ;;  %v2115_v23 = vsel %vm2105_vm13, %v2100_v55, %v2110_v40  ;;  %v2072_v20 = vmul.f32 %v6184_v0, %v2067_v18 }
 0xa88   :  { %5331 = vmatprep.mubr.msk.f32.mxu1 %vm6348_vm0, %v6349_v6  ;;  %v2120_v45 = vadd.f32 1.0, %v2115_v23  ;;  %v2111_v56 = vsub.f32 0.0, %v2101_v57 }
 0xa89   :  { %v2097_v4 = vmul.f32 %v6194_v47, %v2072_v20 }
 0xa8a   :  { %v2125_v33 = vmul.f32 %v2120_v45, %v1995_v36  ;;  %v2116_v8 = vsel %vm2106_vm14, %v2101_v57, %v2111_v56 }
 0xa8b   :  { %v2121_v7 = vadd.f32 1.0, %v2116_v8  ;;  %v2102_v10 = vsub.f32 1.0, %v2097_v4 }
 0xa8c   :  { %5332 = vmatmul.mubr.f32.gmra.mrb[64].mxu1 %v2125_v33 }
 0xa8d   :  { %5334 = vmatprep.mubr.msk.f32.mxu1 %vm6348_vm0, %v6349_v6  ;;  %v2126_v0 = vmul.f32 %v2121_v7, %v1996_v25  ;;  %v2112_v37 = vsub.f32 0.0, %v2102_v10 }
 0xa8f   :  { %v2117_v38 = vsel %vm2107_vm15, %v2102_v10, %v2112_v37 }
 0xa90   :  { %5335 = vmatmul.mubr.f32.gmra.mrb[66].mxu1 %v2126_v0  ;;  %v2122_v61 = vadd.f32 1.0, %v2117_v38 }
 0xa91   :  { %5337 = vmatprep.mubr.msk.f32.mxu1 %vm6348_vm0, %v6349_v6 }
 0xa92   :  { %v2127_v31 = vmul.f32 %v2122_v61, %v1997_v22  ;;  %v4606_v61 = vld [vmem:[%s8318_s6 + $0x20] sm:$0xff] }
 0xa94   :  { %5338 = vmatmul.mubr.f32.gmra.mrb[68].mxu1 %v2127_v31  ;;  %v4607_v31 = vld [vmem:[%s8318_s6 + $0x28] sm:$0xff] }
 0xa95   :  { %5398 = vmatprep.mubr.msk.f32.mxu1 %vm6348_vm0, %v6349_v6 }
 0xb56   :  { %v2210_v32 = vpop.f32.mrb[60].mxu1 }
 0xb57   :  { %v2234_v1 = vadd.f32 %v2210_v32, %v7204_v41  ;;  %v5327_v24 = vpop.f32.mrb[61].mxu1  ;;  %v4608_v32 = vld [vmem:[%s8318_s6 + $0x30] sm:$0xff] }
 0xb59   :  { %v7399_v2 = vadd.f32 %v2242_v43, %v2234_v1  ;;  %v4609_v1 = vld [vmem:[%s8318_s6 + $0x38] sm:$0xff] }
 0xb5a   :  { %v2215_v11 = vpop.f32.mrb[62].mxu1  ;;  %v5791_v24 = vpack.c.bf16 %v4609_v1, %v4608_v32 }
 0xb5b   :  { %v2235_v27 = vadd.f32 %v2215_v11, %v7209_v52  ;;  %v5330_v53 = vpop.f32.mrb[63].mxu1  ;;  %v2248_v63 = vsel %vm168_vm2, %v7399_v2, 0.0 }
 0xb5c   :  { %2249 = vadd.xlane.f32.xlu0 %v2248_v63 }
 0xb5d   :  { %v7404_v51 = vadd.f32 %v2242_v43, %v2235_v27 }
 0xb5f   :  { %v2220_v39 = vpop.f32.mrb[64].mxu1  ;;  %v2251_v54 = vsel %vm168_vm2, %v7404_v51, 0.0 }
 0xb60   :  { %v2236_v62 = vadd.f32 %v2220_v39, %v7214_v14  ;;  %v5333_v41 = vpop.f32.mrb[65].mxu1  ;;  %2252 = vadd.xlane.f32.xlu1 %v2251_v54 }
 0xb61   :  { %v2315_v41 = vsub.s32 6, %v6552_v16 }
 0xb62   :  { %v7409_v30 = vadd.f32 %v2242_v43, %v2236_v62 }
 0xb63   :  { %v2225_v12 = vpop.f32.mrb[66].mxu1 }
 0xb64   :  { %v2237_v52 = vadd.f32 %v2225_v12, %v7219_v49  ;;  %v5336_v58 = vpop.f32.mrb[67].mxu1  ;;  %v2254_v48 = vsel %vm168_vm2, %v7409_v30, 0.0 }
 0xb65   :  { %2255 = vadd.xlane.f32.xlu0 %v2254_v48  ;;  %v2324_v58 = vsub.s32 7, %v6552_v16 }
 0xb66   :  { %v7414_v50 = vadd.f32 %v2242_v43, %v2237_v52 }
 0xb67   :  { %v2230_v34 = vpop.f32.mrb[68].mxu1 }
 0xb68   :  { %v2238_v17 = vadd.f32 %v2230_v34, %v7224_v46  ;;  %v2257_v14 = vsel %vm168_vm2, %v7414_v50, 0.0  ;;  %v5339_v9 = vpop.f32.mrb[69].mxu1  ;;  %v2316_v34 = vrot.slane %v7198_v19, %v2315_v41 }
 0xb69   :  { %2258 = vadd.xlane.f32.xlu1 %v2257_v14 }
 0xb6a   :  { %v7419_v44 = vadd.f32 %v2242_v43, %v2238_v17  ;;  %v5788_v43 = vpack.c.bf16 %v4607_v31, %v4606_v61 }
 0xb6c   :  { %v2260_v49 = vsel %vm181_vm3, %v7419_v44, 0.0  ;;  %5789 = vmatpush3.bf16.msra.mxu0 %v5788_v43 }
 0xb6d   :  { %2261 = vadd.xlane.f32.xlu0 %v2260_v49  ;;  %5790 = vmatprep.subr.bf16.mxu0 %v6347_v3 }
 0xb70   :  { %5792 = vmatpush3.bf16.msra.mxu0 %v5791_v24 }
 0xb71   :  { %5793 = vmatprep.subr.bf16.mxu0 %v6347_v3 }
 0xbe9   :  { %v2250_v60 = vpop.xlane.xlu0 %2249 }
 0xbea   :  { %v2263_v55 = vmul.f32 0.03125, %v2250_v60  ;;  %v2325_v60 = vrot.slane %v7198_v19, %v2324_v58 }
 0xbec   :  { %v2268_v35 = vsub.f32 %v7399_v2, %v2263_v55 }
 0xbed   :  { %v2253_v28 = vpop.xlane.xlu1 %2252 }
 0xbee   :  { %v2264_v42 = vmul.f32 0.03125, %v2253_v28  ;;  %v2273_v40 = vmul.f32 %v2268_v35, %v2268_v35 }
 0xbf0   :  { %v2269_v46 = vsub.f32 %v7404_v51, %v2264_v42  ;;  %v2278_v18 = vsel %vm168_vm2, %v2273_v40, 0.0 }
 0xbf1   :  { %2279 = vadd.xlane.f32.xlu1 %v2278_v18 }
 0xbf2   :  { %v2256_v57 = vpop.xlane.xlu0 %2255  ;;  %v2274_v23 = vmul.f32 %v2269_v46, %v2269_v46 }
 0xbf3   :  { %v2265_v20 = vmul.f32 0.03125, %v2256_v57 }
 0xbf4   :  { %v2281_v47 = vsel %vm168_vm2, %v2274_v23, 0.0 }
 0xbf5   :  { %v2270_v36 = vsub.f32 %v7409_v30, %v2265_v20  ;;  %2282 = vadd.xlane.f32.xlu0 %v2281_v47 }
 0xbf6   :  { %v2259_v45 = vpop.xlane.xlu1 %2258 }
 0xbf7   :  { %v2266_v56 = vmul.f32 0.03125, %v2259_v45  ;;  %v2275_v4 = vmul.f32 %v2270_v36, %v2270_v36 }
 0xbf9   :  { %v7429_v33 = vsub.f32 %v7414_v50, %v2266_v56  ;;  %v2284_v8 = vsel %vm168_vm2, %v2275_v4, 0.0 }
 0xbfa   :  { %2285 = vadd.xlane.f32.xlu1 %v2284_v8  ;;  %v2262_v25 = vpop.xlane.xlu0 %2261 }
 0xbfb   :  { %v2267_v7 = vmul.f32 0.03125, %v2262_v25  ;;  %v2276_v10 = vmul.f32 %v7429_v33, %v7429_v33 }
 0xbfd   :  { %v7435_v0 = vsub.f32 %v7419_v44, %v2267_v7  ;;  %v2287_v37 = vsel %vm168_vm2, %v2276_v10, 0.0 }
 0xbfe   :  { %2288 = vadd.xlane.f32.xlu0 %v2287_v37 }
 0xbff   :  { %v2277_v38 = vmul.f32 %v7435_v0, %v7435_v0 }
 0xc01   :  { %v2290_v22 = vsel %vm181_vm3, %v2277_v38, 0.0 }
 0xc02   :  { %2291 = vadd.xlane.f32.xlu1 %v2290_v22 }
 0xc7e   :  { %v2280_v11 = vpop.xlane.xlu1 %2279 }
 0xc7f   :  { %v2293_v27 = vmul.f32 0.03125, %v2280_v11 }
 0xc81   :  { %v2298_v53 = vadd.f32 1e-05, %v2293_v27 }
 0xc82   :  { %v2283_v63 = vpop.xlane.xlu0 %2282 }
 0xc83   :  { %6195 = vrsqrt.f32 %v2298_v53  ;;  %v2294_v39 = vmul.f32 0.03125, %v2283_v63 }
 0xc85   :  { %v2299_v54 = vadd.f32 1e-05, %v2294_v39 }
 0xc87   :  { %6197 = vrsqrt.f32 %v2299_v54  ;;  %v2286_v62 = vpop.xlane.xlu1 %2285 }
 0xc88   :  { %v2295_v12 = vmul.f32 0.03125, %v2286_v62 }
 0xc8a   :  { %v2300_v52 = vadd.f32 1e-05, %v2295_v12 }
 0xc8b   :  { %v2289_v48 = vpop.xlane.xlu0 %2288 }
 0xc8c   :  { %6199 = vrsqrt.f32 %v2300_v52  ;;  %v2296_v17 = vmul.f32 0.03125, %v2289_v48 }
 0xc8d   :  { %v6196_v14 = vpop.eup %6195 }
 0xc8e   :  { %v2308_v9 = vmul.f32 %v6196_v14, %v2268_v35  ;;  %v2301_v49 = vadd.f32 1e-05, %v2296_v17 }
 0xc8f   :  { %v2292_v55 = vpop.xlane.xlu1 %2291 }
 0xc90   :  { %v2317_v28 = vmul.f32 %v2316_v34, %v2308_v9  ;;  %6201 = vrsqrt.f32 %v2301_v49  ;;  %v2297_v42 = vmul.f32 0.03125, %v2292_v55 }
 0xc91   :  { %v6198_v40 = vpop.eup %6197 }
 0xc92   :  { %v2302_v18 = vadd.f32 1e-05, %v2297_v42  ;;  %v2326_v57 = vadd.f32 %v2325_v60, %v2317_v28  ;;  %v2309_v23 = vmul.f32 %v6198_v40, %v2269_v46 }
 0xc94   :  { %6203 = vrsqrt.f32 %v2302_v18  ;;  %5349 = vmatmul.mubr.msk.f32.vlgmr.msra.gmra.mrb[60].mxu0 %vm168_vm2, %v2326_v57  ;;  %v2318_v20 = vmul.f32 %v2316_v34, %v2309_v23 }
 0xc95   :  { %5351 = vmatprep.mubr.msk.f32.mxu0 %vm6348_vm0, %v6349_v6 }
 0xc96   :  { %v6200_v47 = vpop.eup %6199  ;;  %v2327_v35 = vadd.f32 %v2325_v60, %v2318_v20 }
 0xc97   :  { %v2310_v45 = vmul.f32 %v6200_v47, %v2270_v36 }
 0xc98   :  { %5352 = vmatmul.mubr.msk.f32.gmra.mrb[62].mxu0 %vm168_vm2, %v2327_v35 }
 0xc99   :  { %5354 = vmatprep.mubr.msk.f32.mxu0 %vm6348_vm0, %v6349_v6  ;;  %v2319_v19 = vmul.f32 %v2316_v34, %v2310_v45 }
 0xc9a   :  { %v6202_v56 = vpop.eup %6201 }
 0xc9b   :  { %v2328_v4 = vadd.f32 %v2325_v60, %v2319_v19  ;;  %v2311_v46 = vmul.f32 %v6202_v56, %v7429_v33 }
 0xc9d   :  { %5355 = vmatmul.mubr.msk.f32.gmra.mrb[64].mxu0 %vm168_vm2, %v2328_v4  ;;  %v2320_v8 = vmul.f32 %v2316_v34, %v2311_v46 }
 0xc9e   :  { %v6204_v25 = vpop.eup %6203  ;;  %5357 = vmatprep.mubr.msk.f32.mxu0 %vm6348_vm0, %v6349_v6 }
 0xc9f   :  { %v2329_v7 = vadd.f32 %v2325_v60, %v2320_v8  ;;  %v2312_v36 = vmul.f32 %v6204_v25, %v7435_v0 }
 0xca1   :  { %5358 = vmatmul.mubr.msk.f32.gmra.mrb[66].mxu0 %vm168_vm2, %v2329_v7  ;;  %v2321_v10 = vmul.f32 %v2316_v34, %v2312_v36 }
 0xca2   :  { %5360 = vmatprep.mubr.msk.f32.mxu0 %vm6348_vm0, %v6349_v6 }
 0xca3   :  { %v2330_v37 = vadd.f32 %v2325_v60, %v2321_v10 }
 0xca5   :  { %5361 = vmatmul.mubr.msk.f32.gmra.mrb[68].mxu0 %vm168_vm2, %v2330_v37 }
 0xca6   :  { %5373 = vmatprep.mubr.msk.f32.mxu0 %vm6348_vm0, %v6349_v6 }
 0xd67   :  { %v2417_v33 = vpop.f32.mrb[60].mxu0 }
 0xd68   :  { %v5350_v38 = vpop.f32.mrb[61].mxu0  ;;  %v2441_v53 = vmul.f32 0.35355338, %v2417_v33 }
 0xd6b   :  { %v2422_v22 = vpop.f32.mrb[62].mxu0 }
 0xd6c   :  { %v5353_v61 = vpop.f32.mrb[63].mxu0  ;;  %v7476_v31 = vpack.i.bf16 %v2422_v22, %v2417_v33  ;;  %v2442_v39 = vmul.f32 0.35355338, %v2422_v22 }
 0xd6e   :  { %5996 = vrot.lane.b32.xlu0 %v7476_v31, %s6350_s17 }
 0xd70   :  { %v2427_v0 = vpop.f32.mrb[64].mxu0 }
 0xd71   :  { %v5356_v43 = vpop.f32.mrb[65].mxu0  ;;  %v2443_v54 = vmul.f32 0.35355338, %v2427_v0 }
 0xd72   :  { %6006 = vrot.lane.b32.xlu0 %v7476_v31, %s6351_s18 }
 0xd74   :  { %v2432_v32 = vpop.f32.mrb[66].mxu0 }
 0xd75   :  { %v5359_v1 = vpop.f32.mrb[67].mxu0  ;;  %v7482_v24 = vpack.i.bf16 %v2432_v32, %v2427_v0  ;;  %v7499_v63 = vmul.f32 0.35355338, %v2432_v32 }
 0xd77   :  { %6001 = vrot.lane.b32.xlu1 %v7482_v24, %s6350_s17 }
 0xd78   :  { %v7486_v11 = vpop.f32.mrb[68].mxu0 }
 0xd79   :  { %2770 = vrot.lane.b32.xlu0 %v7486_v11, %s6351_s18  ;;  %v5362_v27 = vpop.f32.mrb[69].mxu0  ;;  %v7509_v62 = vmul.f32 0.35355338, %v7486_v11 }
 0xd7b   :  { %2459 = vrot.lane.b32.xlu1 %v7486_v11, %s6350_s17 }
 0xd7d   :  { %2752 = vrot.lane.b32.xlu0 %v2441_v53, %s6353_s20 }
 0xd7f   :  { %6011 = vrot.lane.b32.xlu1 %v7482_v24, %s6351_s18 }
 0xd81   :  { %6021 = vrot.lane.b32.xlu0 %v7482_v24, %s6352_s19 }
 0xd83   :  { %6016 = vrot.lane.b32.xlu1 %v7476_v31, %s6352_s19 }
 0xd85   :  { %2758 = vrot.lane.b32.xlu0 %v7499_v63, %s6353_s20 }
 0xd87   :  { %2754 = vrot.lane.b32.xlu1 %v2442_v39, %s6353_s20 }
 0xd89   :  { %3076 = vrot.lane.b32.xlu0 %v7486_v11, %s6352_s19 }
 0xd8b   :  { %2756 = vrot.lane.b32.xlu1 %v2443_v54, %s6353_s20 }
 0xd8d   :  { %3058 = vrot.lane.b32.xlu0 %v2441_v53, %s6355_s22 }
 0xd8f   :  { %2760 = vrot.lane.b32.xlu1 %v7509_v62, %s6353_s20 }
 0xd91   :  { %6031 = vrot.lane.b32.xlu0 %v7482_v24, %s6354_s21 }
 0xd93   :  { %6026 = vrot.lane.b32.xlu1 %v7476_v31, %s6354_s21 }
 0xd95   :  { %3064 = vrot.lane.b32.xlu0 %v7499_v63, %s6355_s22 }
 0xd97   :  { %3060 = vrot.lane.b32.xlu1 %v2442_v39, %s6355_s22 }
 0xd99   :  { %3382 = vrot.lane.b32.xlu0 %v7486_v11, %s6354_s21 }
 0xd9b   :  { %3062 = vrot.lane.b32.xlu1 %v2443_v54, %s6355_s22 }
 0xd9d   :  { %3366 = vrot.lane.b32.xlu0 %v2442_v39, %s6356_s0 }
 0xd9f   :  { %3066 = vrot.lane.b32.xlu1 %v7509_v62, %s6355_s22 }
 0xda1   :  { %3370 = vrot.lane.b32.xlu0 %v7499_v63, %s6356_s0 }
 0xda3   :  { %3364 = vrot.lane.b32.xlu1 %v2441_v53, %s6356_s0 }
 0xda5   :  { %6036 = vrot.lane.b32.xlu0 %v7476_v31, %s6357_s23 }
 0xda7   :  { %3368 = vrot.lane.b32.xlu1 %v2443_v54, %s6356_s0 }
 0xda9   :  { %2639 = vrot.lane.b32.xlu0 %v7486_v11, %s6357_s23 }
 0xdab   :  { %3372 = vrot.lane.b32.xlu1 %v7509_v62, %s6356_s0 }
 0xdad   :  { %6051 = vrot.lane.b32.xlu0 %v7482_v24, %s6358_s24 }
 0xdaf   :  { %6041 = vrot.lane.b32.xlu1 %v7482_v24, %s6357_s23 }
 0xdb1   :  { %2945 = vrot.lane.b32.xlu0 %v7486_v11, %s6358_s24 }
 0xdb3   :  { %6046 = vrot.lane.b32.xlu1 %v7476_v31, %s6358_s24 }
 0xde0   :  { %v5997_v41 = vpop.permute.xlu0 %5996 }
 0xde1   :  { %v5999_v12 = vunpack.i.h.bf16 %v5997_v41  ;;  %v5998_v52 = vunpack.i.l.bf16 %v5997_v41 }
 0xde3   :  { %v5794_v58 = vpack.c.bf16 %v5999_v12, %v5998_v52 }
 0xde4   :  { %v6007_v48 = vpop.permute.xlu0 %6006 }
 0xde5   :  { %5796 = vmatpush3.bf16.xpose.msk.msra.mxu0 %vm6662_vm5, %v5794_v58  ;;  %v6009_v40 = vunpack.i.h.bf16 %v6007_v48  ;;  %v6008_v18 = vunpack.i.l.bf16 %v6007_v48 }
 0xde6   :  { %5797 = vmatprep.subr.bf16.mxu0 %v6347_v3 }
 0xde7   :  { %v5808_v20 = vpack.c.bf16 %v6009_v40, %v6008_v18  ;;  %v7655_v40 = vld [vmem:[%s8313_s1] sm:$0xff] }
 0xde9   :  { %v6002_v34 = vpop.permute.xlu1 %6001 }
 0xdea   :  { %v6004_v17 = vunpack.i.h.bf16 %v6002_v34  ;;  %v6003_v14 = vunpack.i.l.bf16 %v6002_v34 }
 0xdeb   :  { %v2771_v9 = vpop.permute.xlu0 %2770 }
 0xdec   :  { %v5798_v49 = vpack.c.bf16 %v6004_v17, %v6003_v14 }
 0xded   :  { %v2460_v60 = vpop.permute.xlu1 %2459 }
 0xdee   :  { %5800 = vmatpush3.bf16.xpose.msk.msra.mxu0 %vm6662_vm5, %v5798_v49 }
 0xdef   :  { %v2753_v55 = vpop.permute.xlu0 %2752  ;;  %5371 = vmatprep.subr.mxu0 %v6349_v6 }
 0xdf1   :  { %v6012_v28 = vpop.permute.xlu1 %6011 }
 0xdf2   :  { %v6014_v45 = vunpack.i.h.bf16 %v6012_v28  ;;  %v6013_v19 = vunpack.i.l.bf16 %v6012_v28 }
 0xdf3   :  { %v6022_v42 = vpop.permute.xlu0 %6021 }
 0xdf4   :  { %v5812_v46 = vpack.c.bf16 %v6014_v45, %v6013_v19  ;;  %v6024_v43 = vunpack.i.h.bf16 %v6022_v42  ;;  %v6023_v32 = vunpack.i.l.bf16 %v6022_v42 }
 0xdf5   :  { %v6017_v57 = vpop.permute.xlu1 %6016 }
 0xdf6   :  { %5372 = vmatpush3.xpose.msk.msra.mxu0 %vm383_vm4, %v2460_v60  ;;  %v6019_v10 = vunpack.i.h.bf16 %v6017_v57  ;;  %v6018_v37 = vunpack.i.l.bf16 %v6017_v57 }
 0xdf7   :  { %v2759_v23 = vpop.permute.xlu0 %2758  ;;  %5807 = vmatprep.subr.bf16.mxu0 %v6347_v3 }
 0xdf8   :  { %v5822_v22 = vpack.c.bf16 %v6019_v10, %v6018_v37 }
 0xdf9   :  { %v2755_v47 = vpop.permute.xlu1 %2754  ;;  %5374 = vmatmul.mubr.msk.f32.vlgmr.msra.gmra.mrb[70].mxu0 %vm383_vm4, %v2441_v53  ;;  %v5826_v53 = vpack.c.bf16 %v6024_v43, %v6023_v32 }
 0xdfa   :  { %5810 = vmatpush3.bf16.xpose.msk.msra.mxu0 %vm6662_vm5, %v5808_v20  ;;  %5376 = vmatprep.mubr.msk.f32.mxu0 %vm6348_vm0, %v6349_v6 }
 0xdfb   :  { %v3077_v35 = vpop.permute.xlu0 %3076  ;;  %5811 = vmatprep.subr.bf16.mxu0 %v6347_v3 }
 0xdfd   :  { %v2757_v56 = vpop.permute.xlu1 %2756  ;;  %5377 = vmatmul.mubr.msk.f32.gmra.mrb[72].mxu0 %vm383_vm4, %v2442_v39 }
 0xdfe   :  { %5379 = vmatprep.mubr.msk.f32.mxu0 %vm6348_vm0, %v6349_v6 }
 0xdff   :  { %v3059_v4 = vpop.permute.xlu0 %3058 }
 0xe01   :  { %v2761_v8 = vpop.permute.xlu1 %2760  ;;  %5380 = vmatmul.mubr.msk.f32.gmra.mrb[74].mxu0 %vm383_vm4, %v2443_v54 }
 0xe02   :  { %5814 = vmatpush3.bf16.xpose.msk.msra.mxu0 %vm6662_vm5, %v5812_v46  ;;  %5382 = vmatprep.mubr.msk.f32.mxu0 %vm6348_vm0, %v6349_v6 }
 0xe03   :  { %v7566_v25 = vpop.permute.xlu0 %6031  ;;  %5421 = vmatprep.subr.mxu0 %v6349_v6 }
 0xe04   :  { %v6034_v49 = vunpack.i.h.bf16 %v7566_v25  ;;  %v6033_v60 = vunpack.i.l.bf16 %v7566_v25 }
 0xe05   :  { %v6027_v7 = vpop.permute.xlu1 %6026  ;;  %5383 = vmatmul.mubr.msk.f32.gmra.mrb[76].mxu0 %vm383_vm4, %v7499_v63 }
 0xe06   :  { %5385 = vmatprep.mubr.msk.f32.mxu0 %vm6348_vm0, %v6349_v6  ;;  %v6029_v52 = vunpack.i.h.bf16 %v6027_v7  ;;  %v6028_v58 = vunpack.i.l.bf16 %v6027_v7  ;;  %v5840_v28 = vpack.c.bf16 %v6034_v49, %v6033_v60 }
 0xe07   :  { %v7573_v36 = vpop.permute.xlu0 %3064 }
 0xe08   :  { %v5836_v34 = vpack.c.bf16 %v6029_v52, %v6028_v58 }
 0xe09   :  { %v3061_v33 = vpop.permute.xlu1 %3060  ;;  %5386 = vmatmul.mubr.msk.f32.gmra.mrb[78].mxu0 %vm383_vm4, %v7509_v62 }
 0xe0a   :  { %5422 = vmatpush3.xpose.msk.msra.mxu0 %vm383_vm4, %v2771_v9  ;;  %5423 = vmatprep.mubr.msk.f32.mxu0 %vm6348_vm0, %v6349_v6 }
 0xe0b   :  { %v7580_v38 = vpop.permute.xlu0 %3382  ;;  %5821 = vmatprep.subr.bf16.mxu0 %v6347_v3 }
 0xe0d   :  { %v3063_v61 = vpop.permute.xlu1 %3062  ;;  %5424 = vmatmul.mubr.msk.f32.vlgmr.msra.gmra.mrb[80].mxu0 %vm383_vm4, %v2753_v55 }
 0xe0e   :  { %5824 = vmatpush3.bf16.xpose.msk.msra.mxu0 %vm6662_vm5, %v5822_v22  ;;  %5426 = vmatprep.mubr.msk.f32.mxu0 %vm6348_vm0, %v6349_v6  ;;  %v7695_v22 = vld [vmem:[%s8313_s1 + $0x20] sm:$0x3] }
 0xe0f   :  { %v3367_v0 = vpop.permute.xlu0 %3366  ;;  %5825 = vmatprep.subr.bf16.mxu0 %v6347_v3 }
 0xe11   :  { %v3067_v1 = vpop.permute.xlu1 %3066  ;;  %5427 = vmatmul.mubr.msk.f32.gmra.mrb[82].mxu0 %vm383_vm4, %v2755_v47  ;;  %v7665_v47 = vld [vmem:[%s8313_s1 + $0x8] sm:$0xff] }
 0xe12   :  { %5429 = vmatprep.mubr.msk.f32.mxu0 %vm6348_vm0, %v6349_v6 }
 0xe13   :  { %v3371_v27 = vpop.permute.xlu0 %3370 }
 0xe15   :  { %v3365_v63 = vpop.permute.xlu1 %3364  ;;  %5430 = vmatmul.mubr.msk.f32.gmra.mrb[84].mxu0 %vm383_vm4, %v2757_v56 }
 0xe16   :  { %5828 = vmatpush3.bf16.xpose.msk.msra.mxu0 %vm6662_vm5, %v5826_v53  ;;  %5432 = vmatprep.mubr.msk.f32.mxu0 %vm6348_vm0, %v6349_v6 }
 0xe17   :  { %v6037_v39 = vpop.permute.xlu0 %6036  ;;  %5471 = vmatprep.subr.mxu0 %v6349_v6 }
 0xe18   :  { %v6039_v54 = vunpack.i.h.bf16 %v6037_v39  ;;  %v6038_v62 = vunpack.i.l.bf16 %v6037_v39 }
 0xe19   :  { %v3369_v41 = vpop.permute.xlu1 %3368  ;;  %5433 = vmatmul.mubr.msk.f32.gmra.mrb[86].mxu0 %vm383_vm4, %v2759_v23 }
 0xe1a   :  { %v5802_v12 = vpack.c.bf16 %v6039_v54, %v6038_v62  ;;  %5435 = vmatprep.mubr.msk.f32.mxu0 %vm6348_vm0, %v6349_v6 }
 0xe1b   :  { %v2640_v42 = vpop.permute.xlu0 %2639 }
 0xe1c   :  { %5803 = vmatpush3.bf16.msra.mxu1 %v5802_v12 }
 0xe1d   :  { %v3373_v48 = vpop.permute.xlu1 %3372  ;;  %5436 = vmatmul.mubr.msk.f32.gmra.mrb[88].mxu0 %vm383_vm4, %v2761_v8  ;;  %5804 = vmatprep.subr.bf16.mxu1 %v6347_v3 }
 0xe1e   :  { %5472 = vmatpush3.xpose.msk.msra.mxu0 %vm383_vm4, %v3077_v35  ;;  %5473 = vmatprep.mubr.msk.f32.mxu0 %vm6348_vm0, %v6349_v6 }
 0xe1f   :  { %5835 = vmatprep.subr.bf16.mxu0 %v6347_v3 }
 0xe21   :  { %v6042_v17 = vpop.permute.xlu1 %6041  ;;  %5474 = vmatmul.mubr.msk.f32.vlgmr.msra.gmra.mrb[90].mxu0 %vm383_vm4, %v3059_v4  ;;  %v7675_v4 = vld [vmem:[%s8313_s1 + $0x10] sm:$0xff] }
 0xe22   :  { %v6044_v14 = vunpack.i.h.bf16 %v6042_v17  ;;  %v6043_v9 = vunpack.i.l.bf16 %v6042_v17  ;;  %5838 = vmatpush3.bf16.xpose.msk.msra.mxu0 %vm6662_vm5, %v5836_v34  ;;  %5476 = vmatprep.mubr.msk.f32.mxu0 %vm6348_vm0, %v6349_v6 }
 0xe23   :  { %5839 = vmatprep.subr.bf16.mxu0 %v6347_v3 }
 0xe24   :  { %v5805_v55 = vpack.c.bf16 %v6044_v14, %v6043_v9 }
 0xe25   :  { %5477 = vmatmul.mubr.msk.f32.gmra.mrb[92].mxu0 %vm383_vm4, %v3061_v33 }
 0xe26   :  { %5806 = vmatpush3.bf16.msra.mxu1 %v5805_v55  ;;  %5479 = vmatprep.mubr.msk.f32.mxu0 %vm6348_vm0, %v6349_v6 }
 0xe27   :  { %5396 = vmatprep.subr.mxu1 %v6349_v6 }
 0xe29   :  { %5480 = vmatmul.mubr.msk.f32.gmra.mrb[94].mxu0 %vm383_vm4, %v3063_v61 }
 0xe2a   :  { %5397 = vmatpush3.msk.msra.mxu1 %vm585_vm6, %v2640_v42  ;;  %5842 = vmatpush3.bf16.xpose.msk.msra.mxu0 %vm6662_vm5, %v5840_v28 }
 0xe2b   :  { %5482 = vmatprep.mubr.msk.f32.mxu0 %vm6348_vm0, %v6349_v6  ;;  %5521 = vmatprep.subr.mxu0 %v6349_v6 }
 0xe2c   :  { %5815 = vmatprep.subr.bf16.mxu1 %v6347_v3 }
 0xe2d   :  { %5483 = vmatmul.mubr.msk.f32.gmra.mrb[96].mxu0 %vm383_vm4, %v7573_v36  ;;  %v7685_v36 = vld [vmem:[%s8313_s1 + $0x18] sm:$0xff] }
 0xe2e   :  { %5485 = vmatprep.mubr.msk.f32.mxu0 %vm6348_vm0, %v6349_v6 }
 0xe31   :  { %5486 = vmatmul.mubr.msk.f32.gmra.mrb[98].mxu0 %vm383_vm4, %v3067_v1 }
 0xe32   :  { %5522 = vmatpush3.xpose.msk.msra.mxu0 %vm383_vm4, %v7580_v38  ;;  %5523 = vmatprep.mubr.msk.f32.mxu0 %vm6348_vm0, %v6349_v6 }
 0xe33   :  { %5849 = vmatprep.subr.bf16.mxu0 %v6347_v3 }
 0xe35   :  { %5524 = vmatmul.mubr.msk.f32.vlgmr.msra.gmra.mrb[100].mxu0 %vm383_vm4, %v3365_v63 }
 0xe36   :  { %5526 = vmatprep.mubr.msk.f32.mxu0 %vm6348_vm0, %v6349_v6 }
 0xe39   :  { %5527 = vmatmul.mubr.msk.f32.gmra.mrb[102].mxu0 %vm383_vm4, %v3367_v0 }
 0xe3a   :  { %5529 = vmatprep.mubr.msk.f32.mxu0 %vm6348_vm0, %v6349_v6 }
 0xe3d   :  { %5530 = vmatmul.mubr.msk.f32.gmra.mrb[104].mxu0 %vm383_vm4, %v3369_v41 }
 0xe3e   :  { %5532 = vmatprep.mubr.msk.f32.mxu0 %vm6348_vm0, %v6349_v6 }
 0xe41   :  { %5533 = vmatmul.mubr.msk.f32.gmra.mrb[106].mxu0 %vm383_vm4, %v3371_v27 }
 0xe42   :  { %5535 = vmatprep.mubr.msk.f32.mxu0 %vm6348_vm0, %v6349_v6 }
 0xe45   :  { %5536 = vmatmul.mubr.msk.f32.gmra.mrb[108].mxu0 %vm383_vm4, %v3373_v48 }
 0xe46   :  { %5571 = vmatprep.mubr.msk.f32.mxu0 %vm6348_vm0, %v6349_v6 }
 0xecc   :  { %v2552_v15 = vpop.f32.mrb[70].mxu0 }
 0xecd   :  { %v7658_v18 = vadd.f32 %v7655_v40, %v2552_v15  ;;  %v5375_v57 = vpop.f32.mrb[71].mxu0 }
 0xecf   :  { %v2576_v23 = vsel %vm499_vm7, %v7658_v18, -inf }
 0xed0   :  { %2577 = vmax.xlane.f32.xlu0 %v2576_v23  ;;  %v2557_v20 = vpop.f32.mrb[72].mxu0 }
 0xed1   :  { %v7668_v35 = vadd.f32 %v7665_v47, %v2557_v20  ;;  %v5378_v45 = vpop.f32.mrb[73].mxu0 }
 0xed3   :  { %v2579_v19 = vsel %vm499_vm7, %v7668_v35, -inf }
 0xed4   :  { %2580 = vmax.xlane.f32.xlu1 %v2579_v19  ;;  %v2562_v56 = vpop.f32.mrb[74].mxu0 }
 0xed5   :  { %v7678_v46 = vadd.f32 %v7675_v4, %v2562_v56  ;;  %v5381_v8 = vpop.f32.mrb[75].mxu0 }
 0xed7   :  { %v2582_v25 = vsel %vm499_vm7, %v7678_v46, -inf }
 0xed8   :  { %2583 = vmax.xlane.f32.xlu0 %v2582_v25  ;;  %v2567_v7 = vpop.f32.mrb[76].mxu0 }
 0xed9   :  { %v7688_v10 = vadd.f32 %v7685_v36, %v2567_v7  ;;  %v5384_v37 = vpop.f32.mrb[77].mxu0 }
 0xedb   :  { %v2585_v33 = vsel %vm499_vm7, %v7688_v10, -inf }
 0xedc   :  { %2586 = vmax.xlane.f32.xlu0 %v2585_v33  ;;  %v2572_v38 = vpop.f32.mrb[78].mxu0 }
 0xedd   :  { %v7698_v61 = vadd.f32 %v7695_v22, %v2572_v38  ;;  %v5387_v0 = vpop.f32.mrb[79].mxu0 }
 0xedf   :  { %v2588_v43 = vsel %vm512_vm8, %v7698_v61, -inf }
 0xee0   :  { %2589 = vmax.xlane.f32.xlu1 %v2588_v43  ;;  %v2858_v32 = vpop.f32.mrb[80].mxu0 }
 0xee1   :  { %v7703_v1 = vadd.f32 %v7655_v40, %v2858_v32  ;;  %v5425_v27 = vpop.f32.mrb[81].mxu0 }
 0xee3   :  { %v2882_v53 = vsel %vm499_vm7, %v7703_v1, -inf }
 0xee4   :  { %2883 = vmax.xlane.f32.xlu0 %v2882_v53  ;;  %v2863_v63 = vpop.f32.mrb[82].mxu0 }
 0xee5   :  { %v7708_v39 = vadd.f32 %v7665_v47, %v2863_v63  ;;  %v5428_v54 = vpop.f32.mrb[83].mxu0 }
 0xee7   :  { %v2885_v62 = vsel %vm499_vm7, %v7708_v39, -inf }
 0xee8   :  { %2886 = vmax.xlane.f32.xlu1 %v2885_v62  ;;  %v2868_v41 = vpop.f32.mrb[84].mxu0 }
 0xee9   :  { %v7713_v12 = vadd.f32 %v7675_v4, %v2868_v41  ;;  %v5431_v52 = vpop.f32.mrb[85].mxu0 }
 0xeeb   :  { %v2888_v58 = vsel %vm499_vm7, %v7713_v12, -inf }
 0xeec   :  { %2889 = vmax.xlane.f32.xlu0 %v2888_v58  ;;  %v2873_v48 = vpop.f32.mrb[86].mxu0 }
 0xeed   :  { %v7718_v34 = vadd.f32 %v7685_v36, %v2873_v48  ;;  %v5434_v17 = vpop.f32.mrb[87].mxu0 }
 0xeef   :  { %v2891_v14 = vsel %vm499_vm7, %v7718_v34, -inf }
 0xef0   :  { %2892 = vmax.xlane.f32.xlu1 %v2891_v14  ;;  %v2878_v9 = vpop.f32.mrb[88].mxu0 }
 0xef1   :  { %v7723_v49 = vadd.f32 %v7695_v22, %v2878_v9  ;;  %v5437_v60 = vpop.f32.mrb[89].mxu0 }
 0xef3   :  { %v2894_v55 = vsel %vm512_vm8, %v7723_v49, -inf }
 0xef4   :  { %2895 = vmax.xlane.f32.xlu0 %v2894_v55  ;;  %v3164_v28 = vpop.f32.mrb[90].mxu0 }
 0xef5   :  { %v7728_v42 = vadd.f32 %v7655_v40, %v3164_v28  ;;  %v5475_v15 = vpop.f32.mrb[91].mxu0 }
 0xef7   :  { %v3188_v57 = vsel %vm499_vm7, %v7728_v42, -inf }
 0xef8   :  { %3189 = vmax.xlane.f32.xlu1 %v3188_v57  ;;  %v3169_v23 = vpop.f32.mrb[92].mxu0 }
 0xef9   :  { %v7733_v20 = vadd.f32 %v7665_v47, %v3169_v23  ;;  %v5478_v45 = vpop.f32.mrb[93].mxu0 }
 0xefb   :  { %v3191_v19 = vsel %vm499_vm7, %v7733_v20, -inf }
 0xefc   :  { %3192 = vmax.xlane.f32.xlu0 %v3191_v19  ;;  %v3174_v56 = vpop.f32.mrb[94].mxu0  ;;  %v7785_v19 = vpop.permute.xlu1 %6046 }
 0xefd   :  { %v7738_v8 = vadd.f32 %v7675_v4, %v3174_v56  ;;  %v5481_v25 = vpop.f32.mrb[95].mxu0 }
 0xeff   :  { %v3194_v7 = vsel %vm499_vm7, %v7738_v8, -inf }
 0xf00   :  { %3195 = vmax.xlane.f32.xlu1 %v3194_v7  ;;  %v3179_v37 = vpop.f32.mrb[96].mxu0 }
 0xf01   :  { %v5484_v33 = vpop.f32.mrb[97].mxu0  ;;  %v7747_v48 = vadd.f32 %v7685_v36, %v3179_v37 }
 0xf03   :  { %v3197_v9 = vsel %vm499_vm7, %v7747_v48, -inf }
 0xf04   :  { %v3184_v38 = vpop.f32.mrb[98].mxu0 }
 0xf05   :  { %v5487_v0 = vpop.f32.mrb[99].mxu0  ;;  %v7750_v17 = vadd.f32 %v7695_v22, %v3184_v38 }
 0xf07   :  { %v3200_v28 = vsel %vm512_vm8, %v7750_v17, -inf }
 0xf08   :  { %v3470_v43 = vpop.f32.mrb[100].mxu0 }
 0xf09   :  { %v5525_v32 = vpop.f32.mrb[101].mxu0  ;;  %v7753_v14 = vadd.f32 %v7655_v40, %v3470_v43 }
 0xf0b   :  { %v3494_v15 = vsel %vm499_vm7, %v7753_v14, -inf }
 0xf0c   :  { %v3475_v27 = vpop.f32.mrb[102].mxu0 }
 0xf0d   :  { %v5528_v53 = vpop.f32.mrb[103].mxu0  ;;  %v7758_v60 = vadd.f32 %v7665_v47, %v3475_v27 }
 0xf0f   :  { %v3497_v47 = vsel %vm499_vm7, %v7758_v60, -inf }
 0xf10   :  { %v3480_v63 = vpop.f32.mrb[104].mxu0 }
 0xf11   :  { %6061 = vrot.lane.b32.xlu1 %v7482_v24, %s6359_s13  ;;  %v5531_v54 = vpop.f32.mrb[105].mxu0  ;;  %v7761_v55 = vadd.f32 %v7675_v4, %v3480_v63 }
 0xf12   :  { %6056 = vrot.lane.b32.xlu0 %v7476_v31, %s6359_s13 }
 0xf13   :  { %v3500_v4 = vsel %vm499_vm7, %v7761_v55, -inf }
 0xf14   :  { %v3485_v62 = vpop.f32.mrb[106].mxu0 }
 0xf15   :  { %v5534_v41 = vpop.f32.mrb[107].mxu0  ;;  %v7768_v40 = vadd.f32 %v7685_v36, %v3485_v62  ;;  %v7781_v36 = vpop.permute.xlu0 %6051 }
 0xf17   :  { %v3503_v23 = vsel %vm499_vm7, %v7768_v40, -inf }
 0xf18   :  { %v3490_v52 = vpop.f32.mrb[108].mxu0 }
 0xf19   :  { %v5537_v58 = vpop.f32.mrb[109].mxu0  ;;  %v7771_v57 = vadd.f32 %v7695_v22, %v3490_v52  ;;  %v7783_v22 = vpop.permute.xlu0 %2945 }
 0xf1b   :  { %v3506_v45 = vsel %vm512_vm8, %v7771_v57, -inf }
 0xf31   :  { %3198 = vmax.xlane.f32.xlu0 %v3197_v9 }
 0xf35   :  { %3201 = vmax.xlane.f32.xlu1 %v3200_v28  ;;  %3495 = vmax.xlane.f32.xlu0 %v3494_v15 }
 0xf39   :  { %3498 = vmax.xlane.f32.xlu1 %v3497_v47  ;;  %3501 = vmax.xlane.f32.xlu0 %v3500_v4 }
 0xf3d   :  { %3504 = vmax.xlane.f32.xlu1 %v3503_v23  ;;  %3507 = vmax.xlane.f32.xlu0 %v3506_v45 }
 0xf5d   :  { %v2578_v56 = vpop.xlane.xlu0 %2577 }
 0xf5e   :  { %v2591_v25 = vsub.f32 %v7658_v18, %v2578_v56 }
 0xf60   :  { %v2596_v7 = vmul.f32 1.442695, %v2591_v25 }
 0xf61   :  { %v2581_v37 = vpop.xlane.xlu1 %2580 }
 0xf62   :  { %6205 = vpow2.f32 %v2596_v7  ;;  %v2592_v33 = vsub.f32 %v7668_v35, %v2581_v37 }
 0xf64   :  { %v2598_v38 = vmul.f32 1.442695, %v2592_v33 }
 0xf65   :  { %v2584_v0 = vpop.xlane.xlu0 %2583 }
 0xf66   :  { %6207 = vpow2.f32 %v2598_v38  ;;  %v2593_v43 = vsub.f32 %v7678_v46, %v2584_v0 }
 0xf68   :  { %v2600_v32 = vmul.f32 1.442695, %v2593_v43 }
 0xf69   :  { %v2587_v27 = vpop.xlane.xlu0 %2586 }
 0xf6a   :  { %6209 = vpow2.f32 %v2600_v32  ;;  %v2594_v53 = vsub.f32 %v7688_v10, %v2587_v27 }
 0xf6c   :  { %v7791_v63 = vpop.eup %6205  ;;  %v2602_v54 = vmul.f32 1.442695, %v2594_v53 }
 0xf6d   :  { %v2590_v62 = vpop.xlane.xlu1 %2589  ;;  %v2606_v18 = vsel %vm499_vm7, %v7791_v63, 0.0 }
 0xf6e   :  { %6211 = vpow2.f32 %v2602_v54  ;;  %v2595_v35 = vsub.f32 %v7698_v61, %v2590_v62  ;;  %2607 = vadd.xlane.f32.xlu1 %v2606_v18 }
 0xf70   :  { %v7796_v41 = vpop.eup %6207  ;;  %v2604_v52 = vmul.f32 1.442695, %v2595_v35 }
 0xf71   :  { %v2884_v46 = vpop.xlane.xlu0 %2883  ;;  %v2609_v58 = vsel %vm499_vm7, %v7796_v41, 0.0 }
 0xf72   :  { %6213 = vpow2.f32 %v2604_v52  ;;  %v2897_v10 = vsub.f32 %v7703_v1, %v2884_v46  ;;  %2610 = vadd.xlane.f32.xlu0 %v2609_v58 }
 0xf74   :  { %v7801_v9 = vpop.eup %6209  ;;  %v2902_v28 = vmul.f32 1.442695, %v2897_v10 }
 0xf75   :  { %v2887_v15 = vpop.xlane.xlu1 %2886  ;;  %v2612_v47 = vsel %vm499_vm7, %v7801_v9, 0.0 }
 0xf76   :  { %6215 = vpow2.f32 %v2902_v28  ;;  %v2898_v61 = vsub.f32 %v7708_v39, %v2887_v15  ;;  %2613 = vadd.xlane.f32.xlu1 %v2612_v47 }
 0xf78   :  { %v7806_v4 = vpop.eup %6211  ;;  %v2904_v23 = vmul.f32 1.442695, %v2898_v61 }
 0xf79   :  { %v2890_v45 = vpop.xlane.xlu0 %2889  ;;  %v2615_v56 = vsel %vm499_vm7, %v7806_v4, 0.0 }
 0xf7a   :  { %6217 = vpow2.f32 %v2904_v23  ;;  %v2899_v1 = vsub.f32 %v7713_v12, %v2890_v45  ;;  %2616 = vadd.xlane.f32.xlu0 %v2615_v56 }
 0xf7c   :  { %v7811_v25 = vpop.eup %6213  ;;  %v2906_v7 = vmul.f32 1.442695, %v2899_v1 }
 0xf7d   :  { %v2893_v37 = vpop.xlane.xlu1 %2892  ;;  %v2618_v33 = vsel %vm512_vm8, %v7811_v25, 0.0 }
 0xf7e   :  { %6219 = vpow2.f32 %v2906_v7  ;;  %v2900_v39 = vsub.f32 %v7718_v34, %v2893_v37  ;;  %2619 = vadd.xlane.f32.xlu1 %v2618_v33 }
 0xf80   :  { %v7816_v38 = vpop.eup %6215  ;;  %v2908_v0 = vmul.f32 1.442695, %v2900_v39 }
 0xf81   :  { %v2896_v43 = vpop.xlane.xlu0 %2895  ;;  %v2912_v32 = vsel %vm499_vm7, %v7816_v38, 0.0 }
 0xf82   :  { %6221 = vpow2.f32 %v2908_v0  ;;  %v2901_v12 = vsub.f32 %v7723_v49, %v2896_v43  ;;  %2913 = vadd.xlane.f32.xlu1 %v2912_v32 }
 0xf84   :  { %v7821_v27 = vpop.eup %6217  ;;  %v2910_v53 = vmul.f32 1.442695, %v2901_v12 }
 0xf85   :  { %v3190_v54 = vpop.xlane.xlu1 %3189  ;;  %v2915_v62 = vsel %vm499_vm7, %v7821_v27, 0.0 }
 0xf86   :  { %6223 = vpow2.f32 %v2910_v53  ;;  %v3203_v34 = vsub.f32 %v7728_v42, %v3190_v54  ;;  %2916 = vadd.xlane.f32.xlu0 %v2915_v62 }
 0xf88   :  { %v7826_v18 = vpop.eup %6219  ;;  %v3208_v35 = vmul.f32 1.442695, %v3203_v34 }
 0xf89   :  { %v3193_v52 = vpop.xlane.xlu0 %3192  ;;  %v2918_v46 = vsel %vm499_vm7, %v7826_v18, 0.0 }
 0xf8a   :  { %6225 = vpow2.f32 %v3208_v35  ;;  %v3204_v49 = vsub.f32 %v7733_v20, %v3193_v52  ;;  %2919 = vadd.xlane.f32.xlu1 %v2918_v46 }
 0xf8c   :  { %v7831_v58 = vpop.eup %6221  ;;  %v3210_v10 = vmul.f32 1.442695, %v3204_v49 }
 0xf8d   :  { %v3196_v28 = vpop.xlane.xlu1 %3195  ;;  %v2921_v15 = vsel %vm499_vm7, %v7831_v58, 0.0  ;;  %v7854_v37 = vpop.permute.xlu0 %6056 }
 0xf8e   :  { %6227 = vpow2.f32 %v3210_v10  ;;  %v3205_v42 = vsub.f32 %v7738_v8, %v3196_v28  ;;  %2922 = vadd.xlane.f32.xlu1 %v2921_v15 }
 0xf90   :  { %v7836_v47 = vpop.eup %6223  ;;  %v3212_v61 = vmul.f32 1.442695, %v3205_v42 }
 0xf91   :  { %v2924_v23 = vsel %vm512_vm8, %v7836_v47, 0.0  ;;  %v7856_v33 = vpop.permute.xlu1 %6061 }
 0xf92   :  { %6229 = vpow2.f32 %v3212_v61  ;;  %2925 = vadd.xlane.f32.xlu1 %v2924_v23 }
 0xf94   :  { %v7840_v20 = vpop.eup %6225 }
 0xf95   :  { %v3218_v45 = vsel %vm499_vm7, %v7840_v20, 0.0 }
 0xf96   :  { %3219 = vadd.xlane.f32.xlu0 %v3218_v45 }
 0xf98   :  { %v7844_v56 = vpop.eup %6227 }
 0xf99   :  { %v3221_v8 = vsel %vm499_vm7, %v7844_v56, 0.0 }
 0xf9a   :  { %3222 = vadd.xlane.f32.xlu1 %v3221_v8 }
 0xf9c   :  { %v7848_v1 = vpop.eup %6229 }
 0xf9d   :  { %v3224_v7 = vsel %vm499_vm7, %v7848_v1, 0.0 }
 0xf9e   :  { %3225 = vadd.xlane.f32.xlu1 %v3224_v7 }
 0xfac   :  { %3251 = vrot.lane.b32.xlu0 %v7486_v11, %s6359_s13 }
 0xfbe   :  { %v3199_v39 = vpop.xlane.xlu0 %3198 }
 0xfbf   :  { %v3206_v0 = vsub.f32 %v7747_v48, %v3199_v39 }
 0xfc1   :  { %v3214_v43 = vmul.f32 1.442695, %v3206_v0 }
 0xfc2   :  { %v3202_v32 = vpop.xlane.xlu1 %3201  ;;  %v3496_v12 = vpop.xlane.xlu0 %3495 }
 0xfc3   :  { %6231 = vpow2.f32 %v3214_v43  ;;  %v3207_v53 = vsub.f32 %v7750_v17, %v3202_v32  ;;  %v3509_v54 = vsub.f32 %v7753_v14, %v3496_v12 }
 0xfc5   :  { %v3216_v62 = vmul.f32 1.442695, %v3207_v53  ;;  %v3514_v34 = vmul.f32 1.442695, %v3509_v54 }
 0xfc6   :  { %v3499_v35 = vpop.xlane.xlu1 %3498  ;;  %v3502_v52 = vpop.xlane.xlu0 %3501 }
 0xfc7   :  { %6233 = vpow2.f32 %v3216_v62  ;;  %v3510_v46 = vsub.f32 %v7758_v60, %v3499_v35  ;;  %v3511_v49 = vsub.f32 %v7761_v55, %v3502_v52 }
 0xfc8   :  { %6235 = vpow2.f32 %v3514_v34  ;;  %v6049_v34 = vunpack.i.h.bf16 %v7785_v19 }
 0xfc9   :  { %v3516_v10 = vmul.f32 1.442695, %v3510_v46  ;;  %v3518_v48 = vmul.f32 1.442695, %v3511_v49 }
 0xfca   :  { %v3505_v28 = vpop.xlane.xlu1 %3504  ;;  %v3508_v43 = vpop.xlane.xlu0 %3507 }
 0xfcb   :  { %6237 = vpow2.f32 %v3516_v10  ;;  %v3512_v15 = vsub.f32 %v7768_v40, %v3505_v28  ;;  %v3513_v32 = vsub.f32 %v7771_v57, %v3508_v43  ;;  %v6053_v57 = vunpack.i.l.bf16 %v7781_v36 }
 0xfcc   :  { %6239 = vpow2.f32 %v3518_v48 }
 0xfcd   :  { %v7864_v42 = vpop.eup %6231  ;;  %v3520_v17 = vmul.f32 1.442695, %v3512_v15  ;;  %v3522_v53 = vmul.f32 1.442695, %v3513_v32 }
 0xfce   :  { %v3227_v14 = vsel %vm499_vm7, %v7864_v42, 0.0 }
 0xfcf   :  { %6241 = vpow2.f32 %v3520_v17  ;;  %3228 = vadd.xlane.f32.xlu1 %v3227_v14 }
 0xfd1   :  { %v7868_v61 = vpop.eup %6233 }
 0xfd2   :  { %v7870_v60 = vpop.eup %6235  ;;  %v3230_v55 = vsel %vm512_vm8, %v7868_v61, 0.0 }
 0xfd3   :  { %3231 = vadd.xlane.f32.xlu1 %v3230_v55  ;;  %v3524_v40 = vsel %vm499_vm7, %v7870_v60, 0.0 }
 0xfd4   :  { %3525 = vadd.xlane.f32.xlu0 %v3524_v40 }
 0xfd5   :  { %v7876_v23 = vpop.eup %6237 }
 0xfd6   :  { %v3527_v45 = vsel %vm499_vm7, %v7876_v23, 0.0  ;;  %v7880_v8 = vpop.eup %6239 }
 0xfd7   :  { %3528 = vadd.xlane.f32.xlu1 %v3527_v45  ;;  %v3530_v39 = vsel %vm499_vm7, %v7880_v8, 0.0 }
 0xfd9   :  { %v7882_v7 = vpop.eup %6241 }
 0xfda   :  { %v3533_v0 = vsel %vm499_vm7, %v7882_v7, 0.0 }
 0xfdb   :  { %3531 = vadd.xlane.f32.xlu1 %v3530_v39  ;;  %3534 = vadd.xlane.f32.xlu0 %v3533_v0  ;;  %v6058_v39 = vunpack.i.l.bf16 %v7854_v37 }
 0xfec   :  { %6066 = vrot.lane.b32.xlu1 %v7476_v31, %s6360_s15  ;;  %v6048_v31 = vunpack.i.l.bf16 %v7785_v19 }
 0xfee   :  { %v5816_v46 = vpack.c.bf16 %v6049_v34, %v6048_v31 }
 0xff1   :  { %6071 = vrot.lane.b32.xlu0 %v7482_v24, %s6360_s15 }
 0xff5   :  { %3557 = vrot.lane.b32.xlu0 %v7486_v11, %s6360_s15  ;;  %v6054_v11 = vunpack.i.h.bf16 %v7781_v36 }
 0xff7   :  { %v5819_v48 = vpack.c.bf16 %v6054_v11, %v6053_v57 }
 0xffb   :  { %v2608_v12 = vpop.xlane.xlu1 %2607 }
 0xffc   :  { %6243 = vrcp.f32 %v2608_v12  ;;  %v6064_v12 = vunpack.i.h.bf16 %v7856_v33 }
 0xfff   :  { %v2611_v54 = vpop.xlane.xlu0 %2610 }
0x1000   :  { %6245 = vrcp.f32 %v2611_v54 }
0x1001   :  { %6247 = vpow2.f32 %v3522_v53  ;;  %v6063_v53 = vunpack.i.l.bf16 %v7856_v33 }
0x1003   :  { %v2614_v62 = vpop.xlane.xlu1 %2613 }
0x1004   :  { %6249 = vrcp.f32 %v2614_v62 }
0x1006   :  { %v6244_v35 = vpop.eup %6243 }
0x1007   :  { %v2626_v24 = vmul.f32 %v6244_v35, %v7791_v63  ;;  %v2617_v52 = vpop.xlane.xlu0 %2616 }
0x1008   :  { %6251 = vrcp.f32 %v2617_v52 }
0x1009   :  { %5399 = vmatmul.mubr.msk.f32.vlgmr.msra.gmra.mrb[70].mxu1 %vm499_vm7, %v2626_v24 }
0x100a   :  { %v6246_v49 = vpop.eup %6245  ;;  %5817 = vmatpush3.bf16.msra.mxu1 %v5816_v46  ;;  %5401 = vmatprep.mubr.msk.f32.mxu1 %vm6348_vm0, %v6349_v6 }
0x100b   :  { %v2620_v10 = vpop.xlane.xlu1 %2619  ;;  %5818 = vmatprep.subr.bf16.mxu1 %v6347_v3  ;;  %v2627_v19 = vmul.f32 %v6246_v49, %v7796_v41  ;;  %v7905_v63 = vpop.eup %6247 }
0x100c   :  { %6253 = vrcp.f32 %v2620_v10  ;;  %v3536_v15 = vsel %vm512_vm8, %v7905_v63, 0.0 }
0x100d   :  { %5402 = vmatmul.mubr.msk.f32.gmra.mrb[72].mxu1 %vm499_vm7, %v2627_v19 }
0x100e   :  { %v6250_v36 = vpop.eup %6249  ;;  %5820 = vmatpush3.bf16.msra.mxu1 %v5819_v48  ;;  %5404 = vmatprep.mubr.msk.f32.mxu1 %vm6348_vm0, %v6349_v6 }
0x100f   :  { %v2914_v28 = vpop.xlane.xlu1 %2913  ;;  %5446 = vmatprep.subr.mxu1 %v6349_v6  ;;  %v2628_v17 = vmul.f32 %v6250_v36, %v7801_v9 }
0x1010   :  { %6255 = vrcp.f32 %v2914_v28  ;;  %3537 = vadd.xlane.f32.xlu1 %v3536_v15 }
0x1011   :  { %5405 = vmatmul.mubr.msk.f32.gmra.mrb[74].mxu1 %vm499_vm7, %v2628_v17 }
0x1012   :  { %v6252_v41 = vpop.eup %6251  ;;  %5447 = vmatpush3.msk.msra.mxu1 %vm585_vm6, %v7783_v22  ;;  %5407 = vmatprep.mubr.msk.f32.mxu1 %vm6348_vm0, %v6349_v6  ;;  %v6059_v22 = vunpack.i.h.bf16 %v7854_v37 }
0x1013   :  { %v2917_v14 = vpop.xlane.xlu0 %2916  ;;  %v2629_v55 = vmul.f32 %v6252_v41, %v7806_v4  ;;  %5829 = vmatprep.subr.bf16.mxu1 %v6347_v3 }
0x1014   :  { %6257 = vrcp.f32 %v2917_v14  ;;  %v5830_v32 = vpack.c.bf16 %v6059_v22, %v6058_v39 }
0x1015   :  { %5408 = vmatmul.mubr.msk.f32.gmra.mrb[76].mxu1 %vm499_vm7, %v2629_v55 }
0x1016   :  { %v6254_v9 = vpop.eup %6253  ;;  %5410 = vmatprep.mubr.msk.f32.mxu1 %vm6348_vm0, %v6349_v6 }
0x1017   :  { %v2920_v40 = vpop.xlane.xlu1 %2919  ;;  %v2630_v45 = vmul.f32 %v6254_v9, %v7811_v25 }
0x1018   :  { %6259 = vrcp.f32 %v2920_v40 }
0x1019   :  { %5411 = vmatmul.mubr.msk.f32.gmra.mrb[78].mxu1 %vm499_vm7, %v2630_v45 }
0x101a   :  { %v6256_v4 = vpop.eup %6255  ;;  %5448 = vmatprep.mubr.msk.f32.mxu1 %vm6348_vm0, %v6349_v6 }
0x101b   :  { %v2932_v0 = vmul.f32 %v6256_v4, %v7816_v38  ;;  %v2923_v43 = vpop.xlane.xlu1 %2922  ;;  %v5833_v38 = vpack.c.bf16 %v6064_v12, %v6063_v53 }
0x101c   :  { %6261 = vrcp.f32 %v2923_v43 }
0x101d   :  { %5449 = vmatmul.mubr.msk.f32.vlgmr.msra.gmra.mrb[80].mxu1 %vm499_vm7, %v2932_v0 }
0x101e   :  { %v6258_v25 = vpop.eup %6257  ;;  %5831 = vmatpush3.bf16.msra.mxu1 %v5830_v32  ;;  %5451 = vmatprep.mubr.msk.f32.mxu1 %vm6348_vm0, %v6349_v6 }
0x101f   :  { %v2926_v37 = vpop.xlane.xlu1 %2925  ;;  %5832 = vmatprep.subr.bf16.mxu1 %v6347_v3  ;;  %v2933_v54 = vmul.f32 %v6258_v25, %v7821_v27 }
0x1020   :  { %6263 = vrcp.f32 %v2926_v37 }
0x1021   :  { %5452 = vmatmul.mubr.msk.f32.gmra.mrb[82].mxu1 %vm499_vm7, %v2933_v54 }
0x1022   :  { %v6260_v62 = vpop.eup %6259  ;;  %5834 = vmatpush3.bf16.msra.mxu1 %v5833_v38  ;;  %5454 = vmatprep.mubr.msk.f32.mxu1 %vm6348_vm0, %v6349_v6 }
0x1023   :  { %v3220_v33 = vpop.xlane.xlu0 %3219  ;;  %v2934_v34 = vmul.f32 %v6260_v62, %v7826_v18  ;;  %5496 = vmatprep.subr.mxu1 %v6349_v6 }
0x1024   :  { %6265 = vrcp.f32 %v3220_v33 }
0x1025   :  { %5455 = vmatmul.mubr.msk.f32.gmra.mrb[84].mxu1 %vm499_vm7, %v2934_v34 }
0x1026   :  { %v6262_v31 = vpop.eup %6261  ;;  %5457 = vmatprep.mubr.msk.f32.mxu1 %vm6348_vm0, %v6349_v6 }
0x1027   :  { %v3223_v27 = vpop.xlane.xlu1 %3222  ;;  %v3252_v35 = vpop.permute.xlu0 %3251  ;;  %v2935_v24 = vmul.f32 %v6262_v31, %v7831_v58 }
0x1028   :  { %6267 = vrcp.f32 %v3223_v27  ;;  %5497 = vmatpush3.msk.msra.mxu1 %vm585_vm6, %v3252_v35 }
0x1029   :  { %5458 = vmatmul.mubr.msk.f32.gmra.mrb[86].mxu1 %vm499_vm7, %v2935_v24  ;;  %5843 = vmatprep.subr.bf16.mxu1 %v6347_v3 }
0x102a   :  { %v6264_v18 = vpop.eup %6263  ;;  %5460 = vmatprep.mubr.msk.f32.mxu1 %vm6348_vm0, %v6349_v6 }
0x102b   :  { %v3226_v52 = vpop.xlane.xlu1 %3225  ;;  %v2936_v11 = vmul.f32 %v6264_v18, %v7836_v47 }
0x102c   :  { %6269 = vrcp.f32 %v3226_v52 }
0x102d   :  { %5461 = vmatmul.mubr.msk.f32.gmra.mrb[88].mxu1 %vm499_vm7, %v2936_v11 }
0x102e   :  { %v6266_v57 = vpop.eup %6265  ;;  %5498 = vmatprep.mubr.msk.f32.mxu1 %vm6348_vm0, %v6349_v6 }
0x102f   :  { %v3238_v58 = vmul.f32 %v6266_v57, %v7840_v20 }
0x1031   :  { %5499 = vmatmul.mubr.msk.f32.vlgmr.msra.gmra.mrb[90].mxu1 %vm499_vm7, %v3238_v58 }
0x1032   :  { %v6268_v46 = vpop.eup %6267  ;;  %5501 = vmatprep.mubr.msk.f32.mxu1 %vm6348_vm0, %v6349_v6 }
0x1033   :  { %v3239_v49 = vmul.f32 %v6268_v46, %v7844_v56 }
0x1035   :  { %5502 = vmatmul.mubr.msk.f32.gmra.mrb[92].mxu1 %vm499_vm7, %v3239_v49 }
0x1036   :  { %v6270_v47 = vpop.eup %6269  ;;  %5504 = vmatprep.mubr.msk.f32.mxu1 %vm6348_vm0, %v6349_v6 }
0x1037   :  { %v3240_v10 = vmul.f32 %v6270_v47, %v7848_v1  ;;  %v4679_v47 = vld [vmem:[%s8319_s7 + $0x20] sm:$0xff] }
0x1039   :  { %5505 = vmatmul.mubr.msk.f32.gmra.mrb[94].mxu1 %vm499_vm7, %v3240_v10  ;;  %v4680_v10 = vld [vmem:[%s8319_s7 + $0x28] sm:$0xff] }
0x103a   :  { %5507 = vmatprep.mubr.msk.f32.mxu1 %vm6348_vm0, %v6349_v6 }
0x105c   :  { %v3229_v20 = vpop.xlane.xlu1 %3228 }
0x105d   :  { %6271 = vrcp.f32 %v3229_v20  ;;  %v4681_v20 = vld [vmem:[%s8319_s7 + $0x30] sm:$0xff] }
0x1060   :  { %v3232_v19 = vpop.xlane.xlu1 %3231 }
0x1061   :  { %6273 = vrcp.f32 %v3232_v19  ;;  %v3526_v48 = vpop.xlane.xlu0 %3525 }
0x1062   :  { %6275 = vrcp.f32 %v3526_v48  ;;  %v5850_v48 = vpack.c.bf16 %v4680_v10, %v4679_v47 }
0x1064   :  { %v3529_v36 = vpop.xlane.xlu1 %3528  ;;  %5851 = vmatpush3.bf16.msra.mxu0 %v5850_v48 }
0x1065   :  { %6277 = vrcp.f32 %v3529_v36  ;;  %v4682_v36 = vld [vmem:[%s8319_s7 + $0x38] sm:$0xff]  ;;  %5852 = vmatprep.subr.bf16.mxu0 %v6347_v3 }
0x1067   :  { %v6272_v56 = vpop.eup %6271 }
0x1068   :  { %v3532_v28 = vpop.xlane.xlu1 %3531  ;;  %v3535_v15 = vpop.xlane.xlu0 %3534  ;;  %v3241_v17 = vmul.f32 %v6272_v56, %v7864_v42 }
0x1069   :  { %6279 = vrcp.f32 %v3532_v28  ;;  %v5853_v28 = vpack.c.bf16 %v4682_v36, %v4681_v20 }
0x106a   :  { %5508 = vmatmul.mubr.msk.f32.gmra.mrb[96].mxu1 %vm499_vm7, %v3241_v17  ;;  %6281 = vrcp.f32 %v3535_v15 }
0x106b   :  { %v6274_v41 = vpop.eup %6273  ;;  %5510 = vmatprep.mubr.msk.f32.mxu1 %vm6348_vm0, %v6349_v6  ;;  %5854 = vmatpush3.bf16.msra.mxu0 %v5853_v28 }
0x106c   :  { %v6067_v1 = vpop.permute.xlu1 %6066  ;;  %v6072_v14 = vpop.permute.xlu0 %6071  ;;  %v3242_v55 = vmul.f32 %v6274_v41, %v7868_v61  ;;  %5861 = vmatprep.subr.bf16.mxu0 %v6347_v3 }
0x106d   :  { %v6069_v9 = vunpack.i.h.bf16 %v6067_v1  ;;  %v6068_v40 = vunpack.i.l.bf16 %v6067_v1  ;;  %v6074_v22 = vunpack.i.h.bf16 %v6072_v14  ;;  %v6073_v39 = vunpack.i.l.bf16 %v6072_v14  ;;  %v6276_v4 = vpop.eup %6275 }
0x106e   :  { %5511 = vmatmul.mubr.msk.f32.gmra.mrb[98].mxu1 %vm499_vm7, %v3242_v55  ;;  %v3544_v61 = vmul.f32 %v6276_v4, %v7870_v60 }
0x106f   :  { %v5844_v45 = vpack.c.bf16 %v6069_v9, %v6068_v40  ;;  %5548 = vmatprep.mubr.msk.f32.mxu1 %vm6348_vm0, %v6349_v6  ;;  %v5847_v42 = vpack.c.bf16 %v6074_v22, %v6073_v39  ;;  %v6278_v43 = vpop.eup %6277 }
0x1070   :  { %v3558_v0 = vpop.permute.xlu0 %3557  ;;  %v3545_v32 = vmul.f32 %v6278_v43, %v7876_v23 }
0x1071   :  { %5845 = vmatpush3.bf16.msra.mxu1 %v5844_v45 }
0x1072   :  { %5846 = vmatprep.subr.bf16.mxu1 %v6347_v3 }
0x1073   :  { %v6280_v12 = vpop.eup %6279 }
0x1074   :  { %v3546_v60 = vmul.f32 %v6280_v12, %v7880_v8  ;;  %v6282_v53 = vpop.eup %6281 }
0x1075   :  { %5848 = vmatpush3.bf16.msra.mxu1 %v5847_v42  ;;  %v3547_v25 = vmul.f32 %v6282_v53, %v7882_v7 }
0x1076   :  { %5546 = vmatprep.subr.mxu1 %v6349_v6 }
0x1079   :  { %5547 = vmatpush3.msk.msra.mxu1 %vm585_vm6, %v3558_v0 }
0x107a   :  { %5549 = vmatmul.mubr.msk.f32.vlgmr.msra.gmra.mrb[100].mxu1 %vm499_vm7, %v3544_v61  ;;  %5855 = vmatprep.subr.bf16.mxu1 %v6347_v3 }
0x107b   :  { %5551 = vmatprep.mubr.msk.f32.mxu1 %vm6348_vm0, %v6349_v6 }
0x107e   :  { %5552 = vmatmul.mubr.msk.f32.gmra.mrb[102].mxu1 %vm499_vm7, %v3545_v32 }
0x107f   :  { %5554 = vmatprep.mubr.msk.f32.mxu1 %vm6348_vm0, %v6349_v6 }
0x1082   :  { %5555 = vmatmul.mubr.msk.f32.gmra.mrb[104].mxu1 %vm499_vm7, %v3546_v60 }
0x1083   :  { %5557 = vmatprep.mubr.msk.f32.mxu1 %vm6348_vm0, %v6349_v6 }
0x1086   :  { %5558 = vmatmul.mubr.msk.f32.gmra.mrb[106].mxu1 %vm499_vm7, %v3547_v25 }
0x1087   :  { %5560 = vmatprep.mubr.msk.f32.mxu1 %vm6348_vm0, %v6349_v6 }
0x109d   :  { %v3538_v23 = vpop.xlane.xlu1 %3537 }
0x109e   :  { %6283 = vrcp.f32 %v3538_v23 }
0x10a8   :  { %v6284_v37 = vpop.eup %6283 }
0x10a9   :  { %v3548_v54 = vmul.f32 %v6284_v37, %v7905_v63 }
0x10ab   :  { %5561 = vmatmul.mubr.msk.f32.gmra.mrb[108].mxu1 %vm499_vm7, %v3548_v54 }
0x10ac   :  { %5594 = vmatprep.mubr.msk.f32.mxu1 %vm6348_vm0, %v6349_v6 }
0x10dc   :  { %v8000_v8 = vpop.f32.mrb[70].mxu1 }
0x10dd   :  { %v5400_v38 = vpop.f32.mrb[71].mxu1 }
0x10e0   :  { %v8002_v62 = vpop.f32.mrb[72].mxu1 }
0x10e1   :  { %v5403_v7 = vpop.f32.mrb[73].mxu1 }
0x10e4   :  { %v8004_v33 = vpop.f32.mrb[74].mxu1 }
0x10e5   :  { %v5406_v34 = vpop.f32.mrb[75].mxu1 }
0x10e8   :  { %v8006_v31 = vpop.f32.mrb[76].mxu1 }
0x10e9   :  { %v5409_v27 = vpop.f32.mrb[77].mxu1 }
0x10ec   :  { %v8008_v35 = vpop.f32.mrb[78].mxu1 }
0x10ed   :  { %v5412_v63 = vpop.f32.mrb[79].mxu1 }
0x10f0   :  { %v3034_v24 = vpop.f32.mrb[80].mxu1 }
0x10f1   :  { %3675 = vrot.lane.b32.xlu1 %v3034_v24, %s6361_s16  ;;  %v5450_v18 = vpop.f32.mrb[81].mxu1 }
0x10f4   :  { %v3039_v52 = vpop.f32.mrb[82].mxu1 }
0x10f5   :  { %3677 = vrot.lane.b32.xlu0 %v3039_v52, %s6361_s16  ;;  %v5453_v11 = vpop.f32.mrb[83].mxu1 }
0x10f8   :  { %v3044_v57 = vpop.f32.mrb[84].mxu1 }
0x10f9   :  { %v5456_v58 = vpop.f32.mrb[85].mxu1 }
0x10fc   :  { %v3049_v46 = vpop.f32.mrb[86].mxu1 }
0x10fd   :  { %v5459_v49 = vpop.f32.mrb[87].mxu1 }
0x1100   :  { %v3054_v19 = vpop.f32.mrb[88].mxu1 }
0x1101   :  { %v5462_v56 = vpop.f32.mrb[89].mxu1 }
0x1104   :  { %v3340_v15 = vpop.f32.mrb[90].mxu1 }
0x1105   :  { %3695 = vrot.lane.b32.xlu0 %v3340_v15, %s6362_s25  ;;  %v5500_v17 = vpop.f32.mrb[91].mxu1 }
0x1106   :  { %v8077_v17 = vld [vmem:[%s8317_s5 + $0x8] sm:$0x3f] }
0x1108   :  { %v3345_v41 = vpop.f32.mrb[92].mxu1 }
0x1109   :  { %3697 = vrot.lane.b32.xlu0 %v3345_v41, %s6362_s25  ;;  %v5503_v1 = vpop.f32.mrb[93].mxu1 }
0x110c   :  { %v3350_v14 = vpop.f32.mrb[94].mxu1 }
0x110d   :  { %3699 = vrot.lane.b32.xlu1 %v3350_v14, %s6362_s25  ;;  %v5506_v55 = vpop.f32.mrb[95].mxu1 }
0x113d   :  { %v3355_v9 = vpop.f32.mrb[96].mxu1 }
0x113e   :  { %v5509_v40 = vpop.f32.mrb[97].mxu1 }
0x1141   :  { %v3360_v45 = vpop.f32.mrb[98].mxu1 }
0x1142   :  { %v5512_v22 = vpop.f32.mrb[99].mxu1 }
0x114d   :  { %v3646_v39 = vpop.f32.mrb[100].mxu1 }
0x114e   :  { %3715 = vrot.lane.b32.xlu0 %v3646_v39, %s6363_s14  ;;  %v5550_v42 = vpop.f32.mrb[101].mxu1 }
0x1151   :  { %v3651_v4 = vpop.f32.mrb[102].mxu1 }
0x1152   :  { %3679 = vrot.lane.b32.xlu0 %v3044_v57, %s6361_s16  ;;  %3717 = vrot.lane.b32.xlu1 %v3651_v4, %s6363_s14  ;;  %v5553_v61 = vpop.f32.mrb[103].mxu1 }
0x1155   :  { %v3656_v0 = vpop.f32.mrb[104].mxu1 }
0x1156   :  { %3681 = vrot.lane.b32.xlu1 %v3049_v46, %s6361_s16  ;;  %3719 = vrot.lane.b32.xlu0 %v3656_v0, %s6363_s14  ;;  %v5556_v43 = vpop.f32.mrb[105].mxu1 }
0x1159   :  { %v3661_v32 = vpop.f32.mrb[106].mxu1 }
0x115a   :  { %3701 = vrot.lane.b32.xlu0 %v3355_v9, %s6362_s25  ;;  %3721 = vrot.lane.b32.xlu1 %v3661_v32, %s6363_s14  ;;  %v5559_v12 = vpop.f32.mrb[107].mxu1 }
0x115e   :  { %3683 = vrot.lane.b32.xlu0 %v3054_v19, %s6361_s16  ;;  %3703 = vrot.lane.b32.xlu1 %v3360_v45, %s6362_s25  ;;  %s6364_s16 = smov [#allocation2]  }
0x115f   :  { %s4513_s5 = sshll.u32 %s6364_s16, 4  ;;  %s4514_s5 = int_to_ptr.vmem [resolvable:$true] %s4513_s5 }
0x1160   :  { %s6323_s25 = scalar_lea.vmem %s4514_s5, 32  ;;  %p6328_p1 = scmp.lt.s32.totalorder %s4514_s5, %s4514_s5 }
0x1161   :  { %p6324_p0 = scmp.ne.s32.totalorder %s4514_s5, %s6323_s25  ;;  %p6329_p2 = scmp.lt.s32.totalorder %s6323_s25, %s6323_s25 }
0x1163   :  { %v3676_v37 = vpop.permute.xlu1 %3675  ;;  %p6330_p3 = por %p6329_p2, %p6328_p1 }
0x1164   :  { %v3730_v38 = vsel %vm383_vm4, %v8000_v8, %v3676_v37 }
0x1165   :  { %p6331_p4 = pnand %p6330_p3, %p6324_p0 }
0x1167   :  { %v3678_v25 = vpop.permute.xlu0 %3677 }
0x1168   :  { %v3731_v24 = vsel %vm383_vm4, %v8002_v62, %v3678_v25 }
0x1177   :  { %v3696_v23 = vpop.permute.xlu0 %3695 }
0x1178   :  { %v3735_v7 = vsel %vm1661_vm9, %v3730_v38, %v3696_v23 }
0x117b   :  { %v3698_v54 = vpop.permute.xlu0 %3697 }
0x117c   :  { %v3736_v18 = vsel %vm1661_vm9, %v3731_v24, %v3698_v54 }
0x117e   :  { %v3666_v60 = vpop.f32.mrb[108].mxu1 }
0x117f   :  { %3723 = vrot.lane.b32.xlu0 %v3666_v60, %s6363_s14  ;;  %v5562_v53 = vpop.f32.mrb[109].mxu1  ;;  %v3700_v34 = vpop.permute.xlu1 %3699 }
0x11c0   :  { %v3716_v27 = vpop.permute.xlu0 %3715 }
0x11c1   :  { %v3740_v63 = vsel %vm1667_vm10, %v3735_v7, %v3716_v27 }
0x11c2   :  { %5572 = vmatmul.mubr.msk.f32.vlgmr.msra.gmra.mrb[110].mxu0 %vm168_vm2, %v3740_v63 }
0x11c3   :  { %5574 = vmatprep.mubr.msk.f32.mxu0 %vm6348_vm0, %v6349_v6 }
0x11c4   :  { %v3680_v52 = vpop.permute.xlu0 %3679  ;;  %v3718_v11 = vpop.permute.xlu1 %3717 }
0x11c5   :  { %v3732_v8 = vsel %vm383_vm4, %v8004_v33, %v3680_v52  ;;  %v3741_v57 = vsel %vm1667_vm10, %v3736_v18, %v3718_v11 }
0x11c6   :  { %5575 = vmatmul.mubr.msk.f32.gmra.mrb[112].mxu0 %vm168_vm2, %v3741_v57  ;;  %v3737_v62 = vsel %vm1661_vm9, %v3732_v8, %v3700_v34 }
0x11c7   :  { %5577 = vmatprep.mubr.msk.f32.mxu0 %vm6348_vm0, %v6349_v6 }
0x11c8   :  { %v3682_v58 = vpop.permute.xlu1 %3681  ;;  %v3720_v46 = vpop.permute.xlu0 %3719 }
0x11c9   :  { %v3742_v49 = vsel %vm1667_vm10, %v3737_v62, %v3720_v46  ;;  %v3733_v33 = vsel %vm383_vm4, %v8006_v31, %v3682_v58 }
0x11ca   :  { %5578 = vmatmul.mubr.msk.f32.gmra.mrb[114].mxu0 %vm168_vm2, %v3742_v49 }
0x11cb   :  { %5580 = vmatprep.mubr.msk.f32.mxu0 %vm6348_vm0, %v6349_v6 }
0x11cc   :  { %v3702_v47 = vpop.permute.xlu0 %3701  ;;  %v3722_v10 = vpop.permute.xlu1 %3721 }
0x11cd   :  { %v3738_v20 = vsel %vm1661_vm9, %v3733_v33, %v3702_v47 }
0x11ce   :  { %v3743_v19 = vsel %vm1667_vm10, %v3738_v20, %v3722_v10  ;;  %v4688_v10 = vld [vmem:[%s8320_s8 + $0x28] sm:$0xff]  ;;  %v4689_v20 = vld [vmem:[%s8320_s8 + $0x30] sm:$0xff] }
0x11cf   :  { %5581 = vmatmul.mubr.msk.f32.gmra.mrb[116].mxu0 %vm168_vm2, %v3743_v19  ;;  %v5856_v19 = vpack.c.bf16 %v4689_v20, %v4688_v10  ;;  %v4702_v10 = vld [vmem:[%s8321_s9 + $0x98] sm:$0xff] }
0x11d0   :  { %5583 = vmatprep.mubr.msk.f32.mxu0 %vm6348_vm0, %v6349_v6  ;;  %v3684_v48 = vpop.permute.xlu0 %3683  ;;  %v3704_v56 = vpop.permute.xlu1 %3703 }
0x11d1   :  { %v3734_v36 = vsel %vm383_vm4, %v8008_v35, %v3684_v48  ;;  %v3863_v35 = vrot.slane %v8077_v17, %v238_v21  ;;  %5857 = vmatpush3.bf16.msra.mxu1 %v5856_v19  ;;  %v4690_v48 = vld [vmem:[%s8320_s8 + $0x38] sm:$0xff]  ;;  %v4703_v19 = vld [vmem:[%s8321_s9 + $0xa0] sm:$0xff] }
0x11d2   :  { %v3739_v28 = vsel %vm1661_vm9, %v3734_v36, %v3704_v56  ;;  %5858 = vmatprep.subr.bf16.mxu1 %v6347_v3  ;;  %v4691_v36 = vld [vmem:[%s8320_s8 + $0x40] sm:$0xff] }
0x11d3   :  { %v5859_v56 = vpack.c.bf16 %v4691_v36, %v4690_v48  ;;  %v4704_v48 = vld [vmem:[%s8321_s9 + $0xa8] sm:$0xff] }
0x11d4   :  { %v5868_v36 = vpack.c.bf16 %v4704_v48, %v4703_v19 }
0x11d5   :  { %5860 = vmatpush3.bf16.msra.mxu1 %v5859_v56  ;;  %v4705_v56 = vld [vmem:[%s8321_s9 + $0xb0] sm:$0xff] }
0x11d6   :  { %5885 = vmatprep.subr.bf16.mxu1 %v6347_v3 }
0x11f1   :  { %v3724_v15 = vpop.permute.xlu0 %3723 }
0x11f2   :  { %v3744_v31 = vsel %vm1667_vm10, %v3739_v28, %v3724_v15 }
0x11f3   :  { %5584 = vmatmul.mubr.msk.f32.gmra.mrb[118].mxu0 %vm168_vm2, %v3744_v31 }
0x11f4   :  { %5641 = vmatprep.mubr.msk.f32.mxu0 %vm6348_vm0, %v6349_v6 }
0x1295   :  { %v3831_v41 = vpop.f32.mrb[110].mxu0 }
0x1296   :  { %v3855_v1 = vadd.f32 %v3831_v41, %v7399_v2  ;;  %v5573_v14 = vpop.f32.mrb[111].mxu0 }
0x1298   :  { %v8083_v55 = vadd.f32 %v3863_v35, %v3855_v1 }
0x1299   :  { %v3836_v9 = vpop.f32.mrb[112].mxu0 }
0x129a   :  { %v3856_v40 = vadd.f32 %v3836_v9, %v7404_v51  ;;  %v5576_v45 = vpop.f32.mrb[113].mxu0  ;;  %v3869_v22 = vsel %vm168_vm2, %v8083_v55, 0.0 }
0x129b   :  { %3870 = vadd.xlane.f32.xlu1 %v3869_v22 }
0x129c   :  { %v8088_v39 = vadd.f32 %v3863_v35, %v3856_v40 }
0x129d   :  { %v3841_v42 = vpop.f32.mrb[114].mxu0 }
0x129e   :  { %v3857_v4 = vadd.f32 %v3841_v42, %v7409_v30  ;;  %v5579_v21 = vpop.f32.mrb[115].mxu0  ;;  %v3872_v2 = vsel %vm168_vm2, %v8088_v39, 0.0 }
0x129f   :  { %3873 = vadd.xlane.f32.xlu0 %v3872_v2 }
0x12a0   :  { %v8093_v61 = vadd.f32 %v3863_v35, %v3857_v4 }
0x12a2   :  { %v3846_v0 = vpop.f32.mrb[116].mxu0  ;;  %v3875_v51 = vsel %vm168_vm2, %v8093_v61, 0.0 }
0x12a3   :  { %v3858_v43 = vadd.f32 %v3846_v0, %v7414_v50  ;;  %v5582_v32 = vpop.f32.mrb[117].mxu0  ;;  %3876 = vadd.xlane.f32.xlu0 %v3875_v51  ;;  %v3937_v0 = vrot.slane %v8077_v17, %v247_v26 }
0x12a4   :  { %v3946_v32 = vrot.slane %v8077_v17, %v1789_v29 }
0x12a5   :  { %v8098_v12 = vadd.f32 %v3863_v35, %v3858_v43 }
0x12a7   :  { %v3878_v30 = vsel %vm168_vm2, %v8098_v12, 0.0 }
0x12a8   :  { %3879 = vadd.xlane.f32.xlu1 %v3878_v30 }
0x12c6   :  { %v3851_v60 = vpop.f32.mrb[118].mxu0 }
0x12c7   :  { %v3859_v53 = vadd.f32 %v3851_v60, %v7419_v44  ;;  %v5585_v25 = vpop.f32.mrb[119].mxu0 }
0x12c9   :  { %v8103_v23 = vadd.f32 %v3863_v35, %v3859_v53 }
0x12cb   :  { %v3881_v37 = vsel %vm181_vm3, %v8103_v23, 0.0 }
0x12cc   :  { %3882 = vadd.xlane.f32.xlu0 %v3881_v37 }
0x1328   :  { %v3871_v54 = vpop.xlane.xlu1 %3870 }
0x1329   :  { %v3884_v50 = vmul.f32 0.03125, %v3871_v54 }
0x132b   :  { %v3889_v38 = vsub.f32 %v8083_v55, %v3884_v50 }
0x132c   :  { %v3874_v7 = vpop.xlane.xlu0 %3873 }
0x132d   :  { %v3885_v34 = vmul.f32 0.03125, %v3874_v7  ;;  %v3894_v27 = vmul.f32 %v3889_v38, %v3889_v38 }
0x132f   :  { %v3890_v63 = vsub.f32 %v8088_v39, %v3885_v34  ;;  %v3899_v24 = vsel %vm168_vm2, %v3894_v27, 0.0 }
0x1330   :  { %3900 = vadd.xlane.f32.xlu1 %v3899_v24  ;;  %v3877_v44 = vpop.xlane.xlu0 %3876 }
0x1331   :  { %v3886_v18 = vmul.f32 0.03125, %v3877_v44  ;;  %v3895_v52 = vmul.f32 %v3890_v63, %v3890_v63 }
0x1333   :  { %v3891_v11 = vsub.f32 %v8093_v61, %v3886_v18  ;;  %v3902_v8 = vsel %vm168_vm2, %v3895_v52, 0.0 }
0x1334   :  { %3903 = vadd.xlane.f32.xlu0 %v3902_v8 }
0x1335   :  { %v3880_v57 = vpop.xlane.xlu1 %3879  ;;  %v3896_v58 = vmul.f32 %v3891_v11, %v3891_v11 }
0x1336   :  { %v3887_v62 = vmul.f32 0.03125, %v3880_v57 }
0x1337   :  { %v3905_v46 = vsel %vm168_vm2, %v3896_v58, 0.0 }
0x1338   :  { %v3892_v49 = vsub.f32 %v8098_v12, %v3887_v62  ;;  %3906 = vadd.xlane.f32.xlu1 %v3905_v46  ;;  %v4699_v46 = vld [vmem:[%s8321_s9 + $0x80] sm:$0xff] }
0x133a   :  { %v3897_v33 = vmul.f32 %v3892_v49, %v3892_v49 }
0x133c   :  { %v3908_v47 = vsel %vm168_vm2, %v3897_v33, 0.0 }
0x133d   :  { %3909 = vadd.xlane.f32.xlu0 %v3908_v47  ;;  %v4701_v47 = vld [vmem:[%s8321_s9 + $0x90] sm:$0xff] }
0x133e   :  { %v5865_v20 = vpack.c.bf16 %v4702_v10, %v4701_v47 }
0x1359   :  { %v3883_v28 = vpop.xlane.xlu0 %3882 }
0x135a   :  { %v3888_v15 = vmul.f32 0.03125, %v3883_v28  ;;  %v4706_v28 = vld [vmem:[%s8321_s9 + $0xb8] sm:$0xff] }
0x135c   :  { %v3893_v31 = vsub.f32 %v8103_v23, %v3888_v15  ;;  %v5871_v15 = vpack.c.bf16 %v4706_v28, %v4705_v56 }
0x135e   :  { %v3898_v35 = vmul.f32 %v3893_v31, %v3893_v31 }
0x1360   :  { %v3911_v41 = vsel %vm181_vm3, %v3898_v35, 0.0  ;;  %v4708_v35 = vld [vmem:[%s8321_s9 + $0xc8] sm:$0xff] }
0x1361   :  { %3912 = vadd.xlane.f32.xlu1 %v3911_v41 }
0x13bd   :  { %v3901_v1 = vpop.xlane.xlu1 %3900 }
0x13be   :  { %v3914_v14 = vmul.f32 0.03125, %v3901_v1  ;;  %v4709_v1 = vld [vmem:[%s8321_s9 + $0xd0] sm:$0xff] }
0x13c0   :  { %v3919_v9 = vadd.f32 1e-05, %v3914_v14  ;;  %v4710_v14 = vld [vmem:[%s8321_s9 + $0xd8] sm:$0xff] }
0x13c1   :  { %v3904_v40 = vpop.xlane.xlu0 %3903 }
0x13c2   :  { %6285 = vrsqrt.f32 %v3919_v9  ;;  %v3915_v45 = vmul.f32 0.03125, %v3904_v40  ;;  %v5877_v9 = vpack.c.bf16 %v4710_v14, %v4709_v1  ;;  %v4711_v40 = vld [vmem:[%s8321_s9 + $0xe0] sm:$0xff] }
0x13c4   :  { %v3920_v22 = vadd.f32 1e-05, %v3915_v45  ;;  %v4712_v45 = vld [vmem:[%s8321_s9 + $0xe8] sm:$0xff] }
0x13c5   :  { %v3907_v42 = vpop.xlane.xlu1 %3906 }
0x13c6   :  { %6287 = vrsqrt.f32 %v3920_v22  ;;  %v3916_v4 = vmul.f32 0.03125, %v3907_v42  ;;  %v5880_v22 = vpack.c.bf16 %v4712_v45, %v4711_v40  ;;  %v4713_v42 = vld [vmem:[%s8321_s9 + $0xf0] sm:$0xff] }
0x13c8   :  { %v3921_v21 = vadd.f32 1e-05, %v3916_v4  ;;  %v4714_v4 = vld [vmem:[%s8321_s9 + $0xf8] sm:$0xff] }
0x13ca   :  { %6289 = vrsqrt.f32 %v3921_v21  ;;  %v3910_v2 = vpop.xlane.xlu0 %3909  ;;  %v5883_v21 = vpack.c.bf16 %v4714_v4, %v4713_v42 }
0x13cb   :  { %v3917_v51 = vmul.f32 0.03125, %v3910_v2  ;;  %v8210_v2 = vld [vmem:[%s8320_s8 + $0x48] ss:$0 sm:$0xff] }
0x13cc   :  { %v6286_v43 = vpop.eup %6285 }
0x13cd   :  { %v3929_v30 = vmul.f32 %v6286_v43, %v3889_v38  ;;  %v3922_v60 = vadd.f32 1e-05, %v3917_v51 }
0x13cf   :  { %v3938_v53 = vmul.f32 %v3937_v0, %v3929_v30  ;;  %6291 = vrsqrt.f32 %v3922_v60 }
0x13d0   :  { %v6288_v25 = vpop.eup %6287 }
0x13d1   :  { %v3947_v37 = vadd.f32 %v3946_v32, %v3938_v53  ;;  %v3930_v54 = vmul.f32 %v6288_v25, %v3890_v63 }
0x13d3   :  { %5595 = vmatmul.mubr.msk.f32.vlgmr.msra.gmra.mrb[110].mxu1 %vm168_vm2, %v3947_v37  ;;  %v3939_v50 = vmul.f32 %v3937_v0, %v3930_v54 }
0x13d4   :  { %v6290_v7 = vpop.eup %6289  ;;  %5597 = vmatprep.mubr.msk.f32.mxu1 %vm6348_vm0, %v6349_v6 }
0x13d5   :  { %v3948_v26 = vadd.f32 %v3946_v32, %v3939_v50  ;;  %v3931_v34 = vmul.f32 %v6290_v7, %v3891_v11 }
0x13d7   :  { %5598 = vmatmul.mubr.msk.f32.gmra.mrb[112].mxu1 %vm168_vm2, %v3948_v26  ;;  %v3940_v27 = vmul.f32 %v3937_v0, %v3931_v34 }
0x13d8   :  { %5600 = vmatprep.mubr.msk.f32.mxu1 %vm6348_vm0, %v6349_v6 }
0x13d9   :  { %v6292_v29 = vpop.eup %6291  ;;  %v3949_v38 = vadd.f32 %v3946_v32, %v3940_v27 }
0x13da   :  { %v3932_v24 = vmul.f32 %v6292_v29, %v3892_v49  ;;  %v4700_v49 = vld [vmem:[%s8321_s9 + $0x88] sm:$0xff] }
0x13db   :  { %5601 = vmatmul.mubr.msk.f32.gmra.mrb[114].mxu1 %vm168_vm2, %v3949_v38  ;;  %v5862_v33 = vpack.c.bf16 %v4700_v49, %v4699_v46 }
0x13dc   :  { %5603 = vmatprep.mubr.msk.f32.mxu1 %vm6348_vm0, %v6349_v6  ;;  %v3941_v63 = vmul.f32 %v3937_v0, %v3932_v24 }
0x13dd   :  { %5863 = vmatpush3.bf16.msra.mxu0 %v5862_v33 }
0x13de   :  { %v3950_v44 = vadd.f32 %v3946_v32, %v3941_v63  ;;  %5864 = vmatprep.subr.bf16.mxu0 %v6347_v3 }
0x13e0   :  { %5604 = vmatmul.mubr.msk.f32.gmra.mrb[116].mxu1 %vm168_vm2, %v3950_v44 }
0x13e1   :  { %5606 = vmatprep.mubr.msk.f32.mxu1 %vm6348_vm0, %v6349_v6  ;;  %5866 = vmatpush3.bf16.msra.mxu0 %v5865_v20 }
0x13e2   :  { %5867 = vmatprep.subr.bf16.mxu0 %v6347_v3 }
0x13e5   :  { %5869 = vmatpush3.bf16.msra.mxu0 %v5868_v36 }
0x13e6   :  { %5870 = vmatprep.subr.bf16.mxu0 %v6347_v3 }
0x13e9   :  { %5872 = vmatpush3.bf16.msra.mxu0 %v5871_v15 }
0x13ea   :  { %5873 = vmatprep.subr.bf16.mxu0 %v6347_v3 }
0x13ee   :  { %v3913_v18 = vpop.xlane.xlu1 %3912 }
0x13ef   :  { %v3918_v52 = vmul.f32 0.03125, %v3913_v18 }
0x13f1   :  { %v3923_v11 = vadd.f32 1e-05, %v3918_v52 }
0x13f3   :  { %6293 = vrsqrt.f32 %v3923_v11 }
0x13fd   :  { %v6294_v8 = vpop.eup %6293 }
0x13fe   :  { %v3933_v57 = vmul.f32 %v6294_v8, %v3893_v31  ;;  %v4707_v31 = vld [vmem:[%s8321_s9 + $0xc0] sm:$0xff] }
0x13ff   :  { %v5874_v41 = vpack.c.bf16 %v4708_v35, %v4707_v31 }
0x1400   :  { %v3942_v58 = vmul.f32 %v3937_v0, %v3933_v57 }
0x1401   :  { %5875 = vmatpush3.bf16.msra.mxu0 %v5874_v41 }
0x1402   :  { %v3951_v62 = vadd.f32 %v3946_v32, %v3942_v58  ;;  %5876 = vmatprep.subr.bf16.mxu0 %v6347_v3 }
0x1404   :  { %5607 = vmatmul.mubr.msk.f32.gmra.mrb[118].mxu1 %vm168_vm2, %v3951_v62 }
0x1405   :  { %5666 = vmatprep.mubr.msk.f32.mxu1 %vm6348_vm0, %v6349_v6  ;;  %5878 = vmatpush3.bf16.msra.mxu0 %v5877_v9 }
0x1406   :  { %5879 = vmatprep.subr.bf16.mxu0 %v6347_v3 }
0x1409   :  { %5881 = vmatpush3.bf16.msra.mxu0 %v5880_v22 }
0x140a   :  { %5882 = vmatprep.subr.bf16.mxu0 %v6347_v3 }
0x140d   :  { %5884 = vmatpush3.bf16.msra.mxu0 %v5883_v21 }
0x14a6   :  { %v4043_v0 = vpop.f32.mrb[110].mxu1 }
0x14a7   :  { %v8213_v51 = vadd.f32 %v8210_v2, %v4043_v0  ;;  %v5596_v43 = vpop.f32.mrb[111].mxu1 }
0x14a9   :  { %v8216_v32 = vmul.f32 0.70710677, %v8213_v51 }
0x14aa   :  { %v4048_v30 = vpop.f32.mrb[112].mxu1 }
0x14ab   :  { %v4077_v60 = vand.u32 2147483647, %v8216_v32  ;;  %v8220_v53 = vadd.f32 %v8210_v2, %v4048_v30  ;;  %v5599_v25 = vpop.f32.mrb[113].mxu1  ;;  %vm4177_vm1 = vcmp.ge.f32.partialorder %v8216_v32, 0.0 }
0x14ad   :  { %v4082_v37 = vmul.f32 0.3275911, %v4077_v60  ;;  %v8223_v54 = vmul.f32 0.70710677, %v8220_v53  ;;  %v4147_v57 = vsub.f32 0.0, %v4077_v60 }
0x14ae   :  { %v4053_v50 = vpop.f32.mrb[114].mxu1 }
0x14af   :  { %v4087_v7 = vadd.f32 1.0, %v4082_v37  ;;  %v4078_v26 = vand.u32 2147483647, %v8223_v54  ;;  %v5602_v34 = vpop.f32.mrb[115].mxu1  ;;  %v8227_v27 = vadd.f32 %v8210_v2, %v4053_v50  ;;  %v4152_v33 = vmul.f32 %v4147_v57, %v4077_v60 }
0x14b0   :  { %vm4178_vm4 = vcmp.ge.f32.partialorder %v8223_v54, 0.0 }
0x14b1   :  { %6295 = vrcp.f32 %v4087_v7  ;;  %v4083_v29 = vmul.f32 0.3275911, %v4078_v26  ;;  %v8230_v38 = vmul.f32 0.70710677, %v8227_v27  ;;  %v4148_v47 = vsub.f32 0.0, %v4078_v26 }
0x14b2   :  { %v4157_v36 = vmul.f32 1.442695, %v4152_v33 }
0x14b3   :  { %v4088_v24 = vadd.f32 1.0, %v4083_v29  ;;  %v4058_v63 = vpop.f32.mrb[116].mxu1  ;;  %v4079_v44 = vand.u32 2147483647, %v8230_v38  ;;  %v4153_v56 = vmul.f32 %v4148_v47, %v4078_v26  ;;  %vm4179_vm5 = vcmp.ge.f32.partialorder %v8230_v38, 0.0 }
0x14b4   :  { %v8234_v18 = vadd.f32 %v8210_v2, %v4058_v63  ;;  %v5605_v52 = vpop.f32.mrb[117].mxu1 }
0x14b5   :  { %6297 = vrcp.f32 %v4088_v24  ;;  %v4084_v11 = vmul.f32 0.3275911, %v4079_v44  ;;  %v4149_v15 = vsub.f32 0.0, %v4079_v44  ;;  %v4159_v1 = vmul.f32 1.442695, %v4153_v56 }
0x14b6   :  { %v8237_v8 = vmul.f32 0.70710677, %v8234_v18 }
0x14b7   :  { %v4089_v58 = vadd.f32 1.0, %v4084_v11  ;;  %v4154_v40 = vmul.f32 %v4149_v15, %v4079_v44 }
0x14b8   :  { %v4080_v62 = vand.u32 2147483647, %v8237_v8  ;;  %vm4180_vm8 = vcmp.ge.f32.partialorder %v8237_v8, 0.0 }
0x14b9   :  { %6299 = vrcp.f32 %v4089_v58  ;;  %v4161_v60 = vmul.f32 1.442695, %v4154_v40 }
0x14ba   :  { %v4085_v46 = vmul.f32 0.3275911, %v4080_v62  ;;  %v4150_v45 = vsub.f32 0.0, %v4080_v62 }
0x14bb   :  { %v6296_v49 = vpop.eup %6295 }
0x14bc   :  { %v4102_v10 = vmul.f32 1.0614054, %v6296_v49  ;;  %v4090_v20 = vadd.f32 1.0, %v4085_v46  ;;  %v4155_v25 = vmul.f32 %v4150_v45, %v4080_v62 }
0x14be   :  { %v4107_v19 = vadd.f32 -1.4531521, %v4102_v10  ;;  %6301 = vrcp.f32 %v4090_v20  ;;  %v4163_v44 = vmul.f32 1.442695, %v4155_v25  ;;  %v4068_v25 = vmul.f32 0.5, %v8220_v53 }
0x14bf   :  { %v6298_v48 = vpop.eup %6297  ;;  %6303 = vpow2.f32 %v4157_v36  ;;  %v4069_v53 = vmul.f32 0.5, %v8227_v27 }
0x14c0   :  { %v4112_v28 = vmul.f32 %v6296_v49, %v4107_v19  ;;  %v4103_v31 = vmul.f32 1.0614054, %v6298_v48  ;;  %6305 = vpow2.f32 %v4159_v1  ;;  %v4067_v1 = vmul.f32 0.5, %v8213_v51 }
0x14c1   :  { %6307 = vpow2.f32 %v4161_v60 }
0x14c2   :  { %v4117_v35 = vadd.f32 1.4214138, %v4112_v28  ;;  %v4108_v41 = vadd.f32 -1.4531521, %v4103_v31  ;;  %6309 = vpow2.f32 %v4163_v44 }
0x14c3   :  { %v6300_v14 = vpop.eup %6299 }
0x14c4   :  { %v4122_v9 = vmul.f32 %v6296_v49, %v4117_v35  ;;  %v4113_v22 = vmul.f32 %v6298_v48, %v4108_v41  ;;  %v4104_v42 = vmul.f32 1.0614054, %v6300_v14 }
0x14c6   :  { %v4127_v4 = vadd.f32 -0.28449672, %v4122_v9  ;;  %v4118_v21 = vadd.f32 1.4214138, %v4113_v22  ;;  %v4109_v0 = vadd.f32 -1.4531521, %v4104_v42 }
0x14c8   :  { %v6302_v43 = vpop.eup %6301  ;;  %v4132_v30 = vmul.f32 %v6296_v49, %v4127_v4  ;;  %v4123_v37 = vmul.f32 %v6298_v48, %v4118_v21  ;;  %v4114_v50 = vmul.f32 %v6300_v14, %v4109_v0 }
0x14c9   :  { %v4105_v7 = vmul.f32 1.0614054, %v6302_v43  ;;  %v6304_v11 = vpop.eup %6303 }
0x14ca   :  { %v4137_v26 = vadd.f32 0.2548296, %v4132_v30  ;;  %v4128_v34 = vadd.f32 -0.28449672, %v4123_v37  ;;  %v4119_v29 = vadd.f32 1.4214138, %v4114_v50  ;;  %v6306_v19 = vpop.eup %6305 }
0x14cb   :  { %v4110_v24 = vadd.f32 -1.4531521, %v4105_v7  ;;  %v6308_v22 = vpop.eup %6307 }
0x14cc   :  { %v4142_v63 = vmul.f32 %v6296_v49, %v4137_v26  ;;  %v4133_v52 = vmul.f32 %v6298_v48, %v4128_v34  ;;  %v4124_v57 = vmul.f32 %v6300_v14, %v4119_v29 }
0x14cd   :  { %v4115_v58 = vmul.f32 %v6302_v43, %v4110_v24 }
0x14ce   :  { %v4167_v46 = vmul.f32 %v6304_v11, %v4142_v63  ;;  %v4138_v33 = vadd.f32 0.2548296, %v4133_v52  ;;  %v4129_v47 = vadd.f32 -0.28449672, %v4124_v57 }
0x14cf   :  { %v4120_v10 = vadd.f32 1.4214138, %v4115_v58  ;;  %v4070_v58 = vmul.f32 0.5, %v8234_v18 }
0x14d0   :  { %v4172_v20 = vsub.f32 1.0, %v4167_v46  ;;  %v4143_v62 = vmul.f32 %v6298_v48, %v4138_v33  ;;  %v4134_v36 = vmul.f32 %v6300_v14, %v4129_v47 }
0x14d1   :  { %v4125_v56 = vmul.f32 %v6302_v43, %v4120_v10 }
0x14d2   :  { %v4182_v28 = vsub.f32 0.0, %v4172_v20  ;;  %v4168_v15 = vmul.f32 %v6306_v19, %v4143_v62  ;;  %v4139_v49 = vadd.f32 0.2548296, %v4134_v36 }
0x14d3   :  { %v4130_v31 = vadd.f32 -0.28449672, %v4125_v56 }
0x14d4   :  { %v4187_v35 = vsel %vm4177_vm1, %v4172_v20, %v4182_v28  ;;  %v4173_v41 = vsub.f32 1.0, %v4168_v15  ;;  %v4144_v40 = vmul.f32 %v6300_v14, %v4139_v49  ;;  %v6310_v14 = vpop.eup %6309 }
0x14d5   :  { %v4192_v9 = vadd.f32 1.0, %v4187_v35  ;;  %v4135_v45 = vmul.f32 %v6302_v43, %v4130_v31 }
0x14d6   :  { %v4183_v42 = vsub.f32 0.0, %v4173_v41  ;;  %v4169_v21 = vmul.f32 %v6308_v22, %v4144_v40 }
0x14d7   :  { %v4197_v4 = vmul.f32 %v4192_v9, %v4067_v1  ;;  %v4063_v48 = vpop.f32.mrb[118].mxu1  ;;  %v4140_v0 = vadd.f32 0.2548296, %v4135_v45 }
0x14d8   :  { %v4064_v30 = vadd.f32 %v8210_v2, %v4063_v48  ;;  %v5608_v32 = vpop.f32.mrb[119].mxu1  ;;  %v4188_v60 = vsel %vm4178_vm4, %v4173_v41, %v4183_v42  ;;  %v4174_v51 = vsub.f32 1.0, %v4169_v21  ;;  %v4317_v48 = vrot.slane %v8077_v17, %v1863_v5 }
0x14d9   :  { %5642 = vmatmul.mubr.f32.vlgmr.msra.gmra.mrb[120].mxu0 %v4197_v4  ;;  %v4193_v37 = vadd.f32 1.0, %v4188_v60  ;;  %v4145_v50 = vmul.f32 %v6302_v43, %v4140_v0 }
0x14da   :  { %v4076_v7 = vmul.f32 0.70710677, %v4064_v30  ;;  %5644 = vmatprep.mubr.msk.f32.mxu0 %vm6348_vm0, %v6349_v6  ;;  %v4184_v54 = vsub.f32 0.0, %v4174_v51  ;;  %v4071_v9 = vmul.f32 0.5, %v4064_v30 }
0x14db   :  { %v4198_v26 = vmul.f32 %v4193_v37, %v4068_v25  ;;  %v4170_v34 = vmul.f32 %v6310_v14, %v4145_v50 }
0x14dc   :  { %v4081_v29 = vand.u32 2147483647, %v4076_v7  ;;  %v4189_v2 = vsel %vm4179_vm5, %v4174_v51, %v4184_v54  ;;  %vm4181_vm9 = vcmp.ge.f32.partialorder %v4076_v7, 0.0 }
0x14dd   :  { %5645 = vmatmul.mubr.f32.gmra.mrb[122].mxu0 %v4198_v26  ;;  %v4175_v24 = vsub.f32 1.0, %v4170_v34  ;;  %v4194_v43 = vadd.f32 1.0, %v4189_v2 }
0x14de   :  { %v4086_v63 = vmul.f32 0.3275911, %v4081_v29  ;;  %5647 = vmatprep.mubr.msk.f32.mxu0 %vm6348_vm0, %v6349_v6  ;;  %v4151_v46 = vsub.f32 0.0, %v4081_v29 }
0x14df   :  { %v4185_v44 = vsub.f32 0.0, %v4175_v24  ;;  %v4199_v11 = vmul.f32 %v4194_v43, %v4069_v53 }
0x14e0   :  { %v4091_v52 = vadd.f32 1.0, %v4086_v63  ;;  %v4156_v47 = vmul.f32 %v4151_v46, %v4081_v29 }
0x14e1   :  { %v4190_v57 = vsel %vm4180_vm8, %v4175_v24, %v4185_v44  ;;  %5648 = vmatmul.mubr.f32.gmra.mrb[124].mxu0 %v4199_v11  ;;  %v4423_v11 = vld [vmem:[%s8322_s10] sm:$0xff] }
0x14e2   :  { %6311 = vrcp.f32 %v4091_v52  ;;  %v4195_v38 = vadd.f32 1.0, %v4190_v57  ;;  %5650 = vmatprep.mubr.msk.f32.mxu0 %vm6348_vm0, %v6349_v6  ;;  %v4165_v20 = vmul.f32 1.442695, %v4156_v47 }
0x14e4   :  { %v4200_v27 = vmul.f32 %v4195_v38, %v4070_v58  ;;  %6313 = vpow2.f32 %v4165_v20  ;;  %v4425_v58 = vld [vmem:[%s8322_s10 + $0x10] sm:$0xff]  ;;  %v4426_v38 = vld [vmem:[%s8322_s10 + $0x18] sm:$0xff]  ;;  %v4421_v20 = vrot.slane %v8077_v17, %v2241_v13 }
0x14e6   :  { %5651 = vmatmul.mubr.f32.gmra.mrb[126].mxu0 %v4200_v27  ;;  %v5895_v27 = vpack.c.bf16 %v4426_v38, %v4425_v58 }
0x14e7   :  { %5653 = vmatprep.mubr.msk.f32.mxu0 %vm6348_vm0, %v6349_v6 }
0x14ec   :  { %v6312_v33 = vpop.eup %6311 }
0x14ed   :  { %v4106_v8 = vmul.f32 1.0614054, %v6312_v33 }
0x14ee   :  { %v6314_v49 = vpop.eup %6313 }
0x14ef   :  { %v4111_v10 = vadd.f32 -1.4531521, %v4106_v8  ;;  %v4416_v8 = vrot.slane %v8077_v17, %v1872_v59 }
0x14f1   :  { %v4116_v62 = vmul.f32 %v6312_v33, %v4111_v10 }
0x14f3   :  { %v4121_v19 = vadd.f32 1.4214138, %v4116_v62 }
0x14f5   :  { %v4126_v18 = vmul.f32 %v6312_v33, %v4121_v19 }
0x14f7   :  { %v4131_v36 = vadd.f32 -0.28449672, %v4126_v18  ;;  %v4717_v18 = vld [vmem:[%s8322_s10 + $0x20] ss:$0 sm:$0xff] }
0x14f9   :  { %v4136_v56 = vmul.f32 %v6312_v33, %v4131_v36 }
0x14fb   :  { %v4141_v28 = vadd.f32 0.2548296, %v4136_v56 }
0x14fd   :  { %v4146_v15 = vmul.f32 %v6312_v33, %v4141_v28 }
0x14ff   :  { %v4171_v31 = vmul.f32 %v6314_v49, %v4146_v15 }
0x1501   :  { %v4176_v35 = vsub.f32 1.0, %v4171_v31 }
0x1503   :  { %v4186_v41 = vsub.f32 0.0, %v4176_v35 }
0x1505   :  { %v4191_v1 = vsel %vm4181_vm9, %v4176_v35, %v4186_v41 }
0x1506   :  { %v4196_v40 = vadd.f32 1.0, %v4191_v1 }
0x1508   :  { %v4201_v45 = vmul.f32 %v4196_v40, %v4071_v9 }
0x150a   :  { %5654 = vmatmul.mubr.f32.gmra.mrb[128].mxu0 %v4201_v45 }
0x15ac   :  { %v4285_v22 = vpop.f32.mrb[120].mxu0 }
0x15ad   :  { %v5643_v42 = vpop.f32.mrb[121].mxu0  ;;  %v4309_v4 = vadd.f32 %v4285_v22, %v8083_v55 }
0x15af   :  { %v4318_v60 = vadd.f32 %v4317_v48, %v4309_v4 }
0x15b0   :  { %v4290_v21 = vpop.f32.mrb[122].mxu0 }
0x15b1   :  { %v4310_v0 = vadd.f32 %v4290_v21, %v8088_v39  ;;  %v5646_v32 = vpop.f32.mrb[123].mxu0 }
0x15b3   :  { %v4319_v25 = vadd.f32 %v4317_v48, %v4310_v0 }
0x15b4   :  { %v4295_v51 = vpop.f32.mrb[124].mxu0 }
0x15b5   :  { %v5886_v37 = vpack.c.bf16 %v4319_v25, %v4318_v60  ;;  %v5649_v30 = vpop.f32.mrb[125].mxu0  ;;  %v4311_v50 = vadd.f32 %v4295_v51, %v8093_v61  ;;  %v4323_v61 = vld [vmem:[%s8314_s2] sm:$0x3] }
0x15b7   :  { %5887 = vmatpush3.bf16.msra.mxu1 %v5886_v37  ;;  %v4320_v26 = vadd.f32 %v4317_v48, %v4311_v50 }
0x15b8   :  { %5888 = vmatprep.subr.bf16.mxu1 %v6347_v3 }
0x15b9   :  { %v4300_v14 = vpop.f32.mrb[126].mxu0 }
0x15ba   :  { %v4312_v55 = vadd.f32 %v4300_v14, %v8098_v12  ;;  %v5652_v7 = vpop.f32.mrb[127].mxu0 }
0x15bc   :  { %v4321_v5 = vadd.f32 %v4317_v48, %v4312_v55 }
0x15be   :  { %v5889_v54 = vpack.c.bf16 %v4321_v5, %v4320_v26 }
0x15c0   :  { %5890 = vmatpush3.bf16.msra.mxu1 %v5889_v54 }
0x15c1   :  { %5664 = vmatprep.subr.mxu1 %v6349_v6 }
0x15dd   :  { %v4305_v39 = vpop.f32.mrb[128].mxu0 }
0x15de   :  { %v4313_v34 = vadd.f32 %v4305_v39, %v8103_v23  ;;  %v5655_v29 = vpop.f32.mrb[129].mxu0 }
0x15e0   :  { %v4322_v2 = vadd.f32 %v4317_v48, %v4313_v34 }
0x15e2   :  { %5665 = vmatpush3.msk.msra.mxu1 %vm585_vm6, %v4322_v2 }
0x15e3   :  { %5667 = vmatmul.mubr.msk.f32.vlgmr.msra.gmra.mrb[120].mxu1 %vm499_vm7, %v4323_v61  ;;  %5891 = vmatprep.subr.bf16.mxu1 %v6347_v3 }
0x15e4   :  { %5677 = vmatprep.mubr.msk.f32.mxu1 %vm6348_vm0, %v6349_v6  ;;  %v4424_v6 = vld [vmem:[%s8322_s10 + $0x8] sm:$0xff]  ;;  %vm4505_vm0 = vcmask 123904  }
0x15e5   :  { %v5892_v57 = vpack.c.bf16 %v4424_v6, %v4423_v11 }
0x15e7   :  { %5893 = vmatpush3.bf16.msra.mxu1 %v5892_v57 }
0x15e8   :  { %5894 = vmatprep.subr.bf16.mxu1 %v6347_v3 }
0x15eb   :  { %5896 = vmatpush3.bf16.msra.mxu1 %v5895_v27 }
0x16b6   :  { %v4396_v12 = vpop.f32.mrb[120].mxu1 }
0x16b7   :  { %v4400_v24 = vsel %vm181_vm3, %v4396_v12, 0.0  ;;  %v5668_v53 = vpop.f32.mrb[121].mxu1 }
0x16b8   :  { %4401 = vadd.xlane.f32.xlu0 %v4400_v24 }
0x1745   :  { %v4402_v23 = vpop.xlane.xlu0 %4401 }
0x1746   :  { %v4403_v63 = vmul.f32 0.03125, %v4402_v23 }
0x1748   :  { %v4404_v43 = vsub.f32 %v4396_v12, %v4403_v63 }
0x174a   :  { %v4405_v44 = vmul.f32 %v4404_v43, %v4404_v43 }
0x174c   :  { %v4406_v52 = vsel %vm181_vm3, %v4405_v44, 0.0 }
0x174d   :  { %4407 = vadd.xlane.f32.xlu1 %v4406_v52 }
0x17da   :  { %v4408_v46 = vpop.xlane.xlu1 %4407 }
0x17db   :  { %v4409_v33 = vmul.f32 0.03125, %v4408_v46 }
0x17dd   :  { %v4410_v47 = vadd.f32 1e-05, %v4409_v33 }
0x17df   :  { %6315 = vrsqrt.f32 %v4410_v47 }
0x17e9   :  { %v6316_v10 = vpop.eup %6315 }
0x17ea   :  { %v4412_v3 = vmul.f32 %v6316_v10, %v4404_v43 }
0x17ec   :  { %v4417_v62 = vmul.f32 %v4416_v8, %v4412_v3 }
0x17ee   :  { %v4422_v19 = vadd.f32 %v4421_v20, %v4417_v62 }
0x17f0   :  { %5678 = vmatmul.mubr.msk.f32.vlgmr.msra.gmra.mrb[122].mxu1 %vm168_vm2, %v4422_v19 }
0x18c3   :  { %v4501_v36 = vpop.f32.mrb[122].mxu1 }
0x18c4   :  { %v4502_v56 = vadd.f32 %v4717_v18, %v4501_v36  ;;  %v5679_v59 = vpop.f32.mrb[123].mxu1 }
0x18c6   :  { %4506 = vst.msk [vmem:[#allocation2] sm:$0x3] %vm4505_vm0, %v4502_v56 }
0x18c7   :  { %6334 = shalt.err (!%p6331_p4)
}
0x18c8   :  { %s6335_s4 = scalar_lea.hbm %s8323_s11, 32 }
0x18c9   :  { %p6336_p5 = scmp.ne.s32.totalorder %s8323_s11, %s6335_s4  ;;  %p6339_p6 = scmp.lt.u32.totalorder %s6335_s4, %s8323_s11 }
0x18cb   :  { %p6341_p7 = pnand %p6339_p6, %p6336_p5 }
0x18cd   :  { %6344 = shalt.err (!%p6341_p7)
}
0x18ce   :  { %4516 = dma.vmem_to_hbm [thread:$0]  %s4514_s5, 32, %s8323_s11, [#allocation3]  }
0x18cf   :  { %6345 = dma.done.wait [#allocation3], 32  }
0x18d0   :  { %6346 = vsyncadd [#allocation3], 4294967264 }
0x18d1   :  { %4520 = vsyncpa [#allocation3], 1 }

</bundles_post_ra>
